<compile_context>
chip_gen: v5e
topology: v5e:2x2
jax: 0.10.0
libtpu: 0.0.40
codegen_flags: <defaults>
</compile_context>

<pallas_src>
import dataclasses
import functools

import jax
import jax.numpy as jnp
from jax import lax
from jax.experimental import pallas as pl
from jax.experimental.pallas import tpu as pltpu


# ----------------------------------------------------------------------------- config
@dataclasses.dataclass(frozen=True)
class Config:
    encoder_word_size: int = 32
    decoder_word_size: int = 32
    decoder_max_len: int = 6
    current_decode_size: int = 16
    # The torch module hardcodes 300 / 256; smaller lane-aligned dims for the test.
    encoder_embed_dim: int = 128
    encoder_hidden_dim: int = 128
    decoder_embed_dim: int = 128


# ------------------------------------------------------------------- shared LSTM cell
def _lstm_cell(gx, h, c, w_hh_ref, b):
    """One LSTM cell step. gx = x_t @ W_ih precomputed. PyTorch gate order (i, f, g, o)."""
    H = h.shape[-1]
    gates = gx + jnp.dot(h, w_hh_ref[...], preferred_element_type=jnp.float32) + b
    i = jax.nn.sigmoid(gates[:, 0 * H:1 * H])
    f = jax.nn.sigmoid(gates[:, 1 * H:2 * H])
    g = jnp.tanh(gates[:, 2 * H:3 * H])
    o = jax.nn.sigmoid(gates[:, 3 * H:4 * H])
    c_new = f * c + i * g
    h_new = o * jnp.tanh(c_new)
    return h_new, c_new


# --------------------------------------------------------- encoder: 2-layer biLSTM
def _encoder_kernel(emb_ref,                                   # [S, B, E] time-major
                    w_f0_ref, u_f0_ref, b_f0_ref,              # layer0 fwd
                    w_b0_ref, u_b0_ref, b_b0_ref,              # layer0 bwd
                    w_f1f_ref, w_f1b_ref, u_f1_ref, b_f1_ref,  # layer1 fwd (input split f/b)
                    w_b1f_ref, w_b1b_ref, u_b1_ref, b_b1_ref,  # layer1 bwd
                    enc_f_ref, enc_b_ref,                      # [S, B, H] layer-1 outputs
                    h_n_ref, c_n_ref,                          # [4, B, H] (l0f, l0b, l1f, l1b)
                    l0f_ref, l0b_ref):                         # [S, B, H] layer-0 buffers
    S, B, _ = emb_ref.shape
    H = u_f0_ref.shape[0]
    f32 = jnp.float32
    zeros = jnp.zeros((B, H), f32)

    # hoist bias reads out of the recurrent loops
    b_f0 = b_f0_ref[...]
    b_b0 = b_b0_ref[...]
    b_f1 = b_f1_ref[...]
    b_b1 = b_b1_ref[...]

    # ---- layer 0, forward direction ----
    def l0f_body(t, carry):
        h, c = carry
        gx = jnp.dot(emb_ref[t], w_f0_ref[...], preferred_element_type=f32)
        h, c = _lstm_cell(gx, h, c, u_f0_ref, b_f0)
        l0f_ref[t] = h
        return h, c

    h0f, c0f = lax.fori_loop(0, S, l0f_body, (zeros, zeros))

    # ---- layer 0, backward direction ----
    def l0b_body(i, carry):
        t = S - 1 - i
        h, c = carry
        gx = jnp.dot(emb_ref[t], w_b0_ref[...], preferred_element_type=f32)
        h, c = _lstm_cell(gx, h, c, u_b0_ref, b_b0)
        l0b_ref[t] = h
        return h, c

    h0b, c0b = lax.fori_loop(0, S, l0b_body, (zeros, zeros))

    # ---- layer 1, forward direction (input = [l0_fwd ; l0_bwd], weights pre-split) ----
    def l1f_body(t, carry):
        h, c = carry
        gx = (jnp.dot(l0f_ref[t], w_f1f_ref[...], preferred_element_type=f32)
              + jnp.dot(l0b_ref[t], w_f1b_ref[...], preferred_element_type=f32))
        h, c = _lstm_cell(gx, h, c, u_f1_ref, b_f1)
        enc_f_ref[t] = h
        return h, c

    h1f, c1f = lax.fori_loop(0, S, l1f_body, (zeros, zeros))

    # ---- layer 1, backward direction ----
    def l1b_body(i, carry):
        t = S - 1 - i
        h, c = carry
        gx = (jnp.dot(l0f_ref[t], w_b1f_ref[...], preferred_element_type=f32)
              + jnp.dot(l0b_ref[t], w_b1b_ref[...], preferred_element_type=f32))
        h, c = _lstm_cell(gx, h, c, u_b1_ref, b_b1)
        enc_b_ref[t] = h
        return h, c

    h1b, c1b = lax.fori_loop(0, S, l1b_body, (zeros, zeros))

    # final states in PyTorch h_n layout [layer0_fwd, layer0_bwd, layer1_fwd, layer1_bwd]
    h_n_ref[0] = h0f
    h_n_ref[1] = h0b
    h_n_ref[2] = h1f
    h_n_ref[3] = h1b
    c_n_ref[0] = c0f
    c_n_ref[1] = c0b
    c_n_ref[2] = c1f
    c_n_ref[3] = c1b


def encoder_forward(emb_sbe, enc_p):
    S, B, _ = emb_sbe.shape
    H = enc_p['u_f0'].shape[0]
    f32 = jnp.float32
    outs = pl.pallas_call(
        _encoder_kernel,
        out_shape=(
            jax.ShapeDtypeStruct((S, B, H), f32),   # layer-1 fwd per-step outputs
            jax.ShapeDtypeStruct((S, B, H), f32),   # layer-1 bwd per-step outputs
            jax.ShapeDtypeStruct((4, B, H), f32),   # h_n
            jax.ShapeDtypeStruct((4, B, H), f32),   # c_n
            # NOTE: layer-0 sequence buffers are emitted as (ignored) outputs; at
            # production scale these become pltpu.VMEM scratch.
            jax.ShapeDtypeStruct((S, B, H), f32),
            jax.ShapeDtypeStruct((S, B, H), f32),
        ),
        compiler_params=pltpu.CompilerParams(vmem_limit_bytes=32 * 1024 * 1024),
    )(emb_sbe,
      enc_p['w_f0'], enc_p['u_f0'], enc_p['b_f0'],
      enc_p['w_b0'], enc_p['u_b0'], enc_p['b_b0'],
      enc_p['w_f1'][:H], enc_p['w_f1'][H:], enc_p['u_f1'], enc_p['b_f1'],
      enc_p['w_b1'][:H], enc_p['w_b1'][H:], enc_p['u_b1'], enc_p['b_b1'])
    enc_f, enc_b, h_n, c_n, _, _ = outs
    return enc_f, enc_b, h_n, c_n


# ---------------------------------------- decoder: fused greedy decode with attention
def _decoder_kernel(encT_ref,        # [Dh, B*S]  encoder_output, transposed, flattened
                    enc2d_ref,       # [B*S, Dh]
                    mask_ref,        # [B, B*S]   block-diagonal attention mask
                    h0_ref, c0_ref,  # [2, B, Dh] decoder initial state
                    emb_ref,         # [Vd, De]   decoder embedding table
                    w0_ref, u0_ref, b0_ref,       # decoder LSTM layer 0
                    w1_ref, u1_ref, b1_ref,       # decoder LSTM layer 1
                    wm_d_ref, wm_c_ref, bm_ref,   # attention_mixing (split dec / ctx halves)
                    wl_ref, bl_ref,               # decoder_linear
                    logits_ref,                   # [T, B, Vd] output
                    *, decode_size):
    T, B, Vd = logits_ref.shape
    De = emb_ref.shape[1]
    f32 = jnp.float32

    # hoisted loop-invariants
    b0 = b0_ref[...]
    b1 = b1_ref[...]
    bm = bm_ref[...]
    bl = bl_ref[...]
    mask = mask_ref[...]
    neg_big = jnp.float32(-1e30)
    col_dec = lax.broadcasted_iota(jnp.int32, (B, decode_size), 1).astype(f32)
    col_voc = lax.broadcasted_iota(jnp.int32, (B, Vd), 1).astype(f32)

    # start token id = 1 (torch.ones(batch, 1).long())
    x0 = jnp.broadcast_to(emb_ref[1:2, :], (B, De))

    def step(t, carry):
        x, h_l0, c_l0, h_l1, c_l1 = carry

        # two-layer unidirectional LSTM step
        gx0 = jnp.dot(x, w0_ref[...], preferred_element_type=f32)
        h_l0, c_l0 = _lstm_cell(gx0, h_l0, c_l0, u0_ref, b0)
        gx1 = jnp.dot(h_l0, w1_ref[...], preferred_element_type=f32)
        h_l1, c_l1 = _lstm_cell(gx1, h_l1, c_l1, u1_ref, b1)
        dec_out = h_l1                                                     # [B, Dh]

        # attention over encoder outputs: dense [B, B*S] scores + block-diagonal mask
        # (keeps everything as lane-dense 2-D MXU matmuls; switch to a batched einsum
        #  for large B where the B x waste would matter).
        scores = jnp.dot(dec_out, encT_ref[...], preferred_element_type=f32)
        scores = jnp.where(mask > 0.5, scores, neg_big)
        scores = scores - jnp.max(scores, axis=-1, keepdims=True)
        p = jnp.exp(scores) * mask
        attn = p * pl.reciprocal(jnp.sum(p, axis=-1, keepdims=True), approx=True)
        ctx = jnp.dot(attn, enc2d_ref[...], preferred_element_type=f32)    # [B, Dh]

        # attention_mixing(cat(dec_out, ctx)) done as two matmuls on the split weight
        mixed = jnp.tanh(
            jnp.dot(dec_out, wm_d_ref[...], preferred_element_type=f32)
            + jnp.dot(ctx, wm_c_ref[...], preferred_element_type=f32) + bm)
        logits = jnp.dot(mixed, wl_ref[...], preferred_element_type=f32) + bl  # [B, Vd]
        logits_ref[t] = logits

        # greedy argmax over the first `decode_size` logits (manual first-max argmax),
        # then feed the token back through the embedding as a one-hot matmul.
        sl = logits[:, 0:decode_size]
        m = jnp.max(sl, axis=-1, keepdims=True)
        idx = jnp.min(jnp.where(sl >= m, col_dec, jnp.float32(Vd)),
                      axis=-1, keepdims=True)                              # [B, 1]
        onehot = (col_voc == idx).astype(f32)                              # [B, Vd]
        x_next = jnp.dot(onehot, emb_ref[...], preferred_element_type=f32)  # [B, De]
        return x_next, h_l0, c_l0, h_l1, c_l1

    lax.fori_loop(0, T, step, (x0, h0_ref[0], c0_ref[0], h0_ref[1], c0_ref[1]))


def decoder_forward(encT, enc2d, mask, dec_h0, dec_c0, dec_p, max_len, decode_size):
    Dh = encT.shape[0]
    B = dec_h0.shape[1]
    Vd = dec_p['wl'].shape[1]
    kernel = functools.partial(_decoder_kernel, decode_size=decode_size)
    return pl.pallas_call(
        kernel,
        out_shape=jax.ShapeDtypeStruct((max_len, B, Vd), jnp.float32),
        compiler_params=pltpu.CompilerParams(vmem_limit_bytes=32 * 1024 * 1024),
    )(encT, enc2d, mask, dec_h0, dec_c0, dec_p['emb'],
      dec_p['w0'], dec_p['u0'], dec_p['b0'],
      dec_p['w1'], dec_p['u1'], dec_p['b1'],
      dec_p['wm'][:Dh], dec_p['wm'][Dh:], dec_p['bm'],
      dec_p['wl'], dec_p['bl'])


# ---------------------------------------------------------------------- full forward
def pn_program_predictor_forward(x_tokens, params, cfg):
    """Eval-mode PN_ProgramPredictor.forward (greedy decode). Returns (program_fin, aux)."""
    enc_p, dec_p = params['enc'], params['dec']
    B, S = x_tokens.shape
    H = cfg.encoder_hidden_dim
    Dh = 2 * H

    # encoder token-embedding gather stays in XLA (no clean BlockSpec form for gather).
    emb = jnp.take(enc_p['emb'], x_tokens, axis=0)           # [B, S, E]
    emb_sbe = jnp.transpose(emb, (1, 0, 2))                  # time-major [S, B, E]

    enc_f, enc_b, h_n, c_n = encoder_forward(emb_sbe, enc_p)

    enc_out = jnp.transpose(jnp.concatenate([enc_f, enc_b], axis=-1), (1, 0, 2))  # [B,S,Dh]
    dec_h0 = jnp.concatenate([h_n[0::2], h_n[1::2]], axis=-1)                     # [2,B,Dh]
    dec_c0 = jnp.concatenate([c_n[0::2], c_n[1::2]], axis=-1)

    enc2d = enc_out.reshape(B * S, Dh)
    encT = enc2d.T
    mask = (jnp.arange(B * S)[None, :] // S == jnp.arange(B)[:, None]).astype(jnp.float32)

    logits_tbv = decoder_forward(encT, enc2d, mask, dec_h0, dec_c0, dec_p,
                                 cfg.decoder_max_len, cfg.current_decode_size)
    logits = jnp.transpose(logits_tbv, (1, 0, 2))            # [B, T, Vd]
    program_fin = jnp.argmax(logits[:, :, :cfg.current_decode_size], axis=-1).astype(jnp.int32)
    aux = dict(logits=logits, enc_out=enc_out, dec_h0=dec_h0, dec_c0=dec_c0)
    return program_fin, aux


# ------------------------------------------------------------------------ parameters
def init_params(key, cfg):
    E = cfg.encoder_embed_dim
    H = cfg.encoder_hidden_dim
    De = cfg.decoder_embed_dim
    Dh = 2 * H
    Ve = cfg.encoder_word_size
    Vd = cfg.decoder_word_size

    keys = iter(jax.random.split(key, 40))

    def u(shape, scale):
        return jax.random.uniform(next(keys), shape, jnp.float32, -scale, scale)

    se = 1.0 / (H ** 0.5)
    sd = 1.0 / (Dh ** 0.5)
    sm = 1.0 / ((2 * Dh) ** 0.5)

    enc = dict(
        emb=u((Ve, E), 1.0),
        w_f0=u((E, 4 * H), se), u_f0=u((H, 4 * H), se), b_f0=u((1, 4 * H), se),
        w_b0=u((E, 4 * H), se), u_b0=u((H, 4 * H), se), b_b0=u((1, 4 * H), se),
        w_f1=u((2 * H, 4 * H), se), u_f1=u((H, 4 * H), se), b_f1=u((1, 4 * H), se),
        w_b1=u((2 * H, 4 * H), se), u_b1=u((H, 4 * H), se), b_b1=u((1, 4 * H), se),
    )
    dec = dict(
        emb=u((Vd, De), 1.0),
        w0=u((De, 4 * Dh), sd), u0=u((Dh, 4 * Dh), sd), b0=u((1, 4 * Dh), sd),
        w1=u((Dh, 4 * Dh), sd), u1=u((Dh, 4 * Dh), sd), b1=u((1, 4 * Dh), sd),
        wm=u((2 * Dh, Dh), sm), bm=u((1, Dh), sm),
        wl=u((Dh, Vd), sd), bl=u((1, Vd), sd),
    )
    return dict(enc=enc, dec=dec)


# ------------------------------------------------------------------ pure-JAX reference
def _ref_lstm_cell(x, h, c, w, uu, b):
    H = h.shape[-1]
    gates = x @ w + h @ uu + b
    i = jax.nn.sigmoid(gates[:, 0:H])
    f = jax.nn.sigmoid(gates[:, H:2 * H])
    g = jnp.tanh(gates[:, 2 * H:3 * H])
    o = jax.nn.sigmoid(gates[:, 3 * H:4 * H])
    c2 = f * c + i * g
    return o * jnp.tanh(c2), c2


def reference_forward(x_tokens, params, cfg):
    enc_p, dec_p = params['enc'], params['dec']
    B, S = x_tokens.shape
    H = cfg.encoder_hidden_dim
    f32 = jnp.float32

    emb = jnp.take(enc_p['emb'], x_tokens, axis=0)           # [B, S, E]

    def run_direction(xs, w, uu, b):
        h = jnp.zeros((B, H), f32)
        c = jnp.zeros((B, H), f32)
        outs = []
        for x_t in xs:
            h, c = _ref_lstm_cell(x_t, h, c, w, uu, b)
            outs.append(h)
        return outs, h, c

    xs = [emb[:, t, :] for t in range(S)]
    f0, h0f, c0f = run_direction(xs, enc_p['w_f0'], enc_p['u_f0'], enc_p['b_f0'])
    bk0_rev, h0b, c0b = run_direction(xs[::-1], enc_p['w_b0'], enc_p['u_b0'], enc_p['b_b0'])
    bk0 = bk0_rev[::-1]
    l0 = [jnp.concatenate([a, b], axis=-1) for a, b in zip(f0, bk0)]
    f1, h1f, c1f = run_direction(l0, enc_p['w_f1'], enc_p['u_f1'], enc_p['b_f1'])
    bk1_rev, h1b, c1b = run_direction(l0[::-1], enc_p['w_b1'], enc_p['u_b1'], enc_p['b_b1'])
    bk1 = bk1_rev[::-1]
    enc_out = jnp.stack([jnp.concatenate([a, b], -1) for a, b in zip(f1, bk1)], axis=1)

    dec_h0 = jnp.stack([jnp.concatenate([h0f, h0b], -1), jnp.concatenate([h1f, h1b], -1)], 0)
    dec_c0 = jnp.stack([jnp.concatenate([c0f, c0b], -1), jnp.concatenate([c1f, c1b], -1)], 0)

    De = dec_p['emb'].shape[1]
    x = jnp.broadcast_to(dec_p['emb'][1:2, :], (B, De))
    hl0, cl0, hl1, cl1 = dec_h0[0], dec_c0[0], dec_h0[1], dec_c0[1]
    logits_steps = []
    for _ in range(cfg.decoder_max_len):
        hl0, cl0 = _ref_lstm_cell(x, hl0, cl0, dec_p['w0'], dec_p['u0'], dec_p['b0'])
        hl1, cl1 = _ref_lstm_cell(hl0, hl1, cl1, dec_p['w1'], dec_p['u1'], dec_p['b1'])
        scores = jnp.einsum('bf,bsf->bs', hl1, enc_out)
        attn = jax.nn.softmax(scores, axis=-1)
        ctx = jnp.einsum('bs,bsf->bf', attn, enc_out)
        mixed = jnp.tanh(jnp.concatenate([hl1, ctx], axis=-1) @ dec_p['wm'] + dec_p['bm'])
        logits = mixed @ dec_p['wl'] + dec_p['bl']
        logits_steps.append(logits)
        pred = jnp.argmax(logits[:, :cfg.current_decode_size], axis=-1)
        x = jnp.take(dec_p['emb'], pred, axis=0)
    logits_btv = jnp.stack(logits_steps, axis=1)
    program_fin = jnp.argmax(logits_btv[:, :, :cfg.current_decode_size], -1).astype(jnp.int32)
    aux = dict(logits=logits_btv, enc_out=enc_out, dec_h0=dec_h0, dec_c0=dec_c0)
    return program_fin, aux


# -------------------------------------------------------------------------------- main
if __name__ == "__main__":
    cfg = Config()
    B, S = 8, 8

    key = jax.random.PRNGKey(0)
    k_p, k_x = jax.random.split(key)
    params = init_params(k_p, cfg)
    x = jax.random.randint(k_x, (B, S), 0, cfg.encoder_word_size, dtype=jnp.int32)

    program_fin, aux = pn_program_predictor_forward(x, params, cfg)
    program_fin = jax.block_until_ready(program_fin)
    jax.block_until_ready(aux['logits'])

    ref_program, ref_aux = reference_forward(x, params, cfg)

    assert program_fin.shape == (B, cfg.decoder_max_len)
    assert aux['logits'].shape == (B, cfg.decoder_max_len, cfg.decoder_word_size)
    assert bool(jnp.all(jnp.isfinite(aux['logits'])))

    tol = dict(atol=5e-2, rtol=5e-2)
    assert bool(jnp.allclose(aux['enc_out'], ref_aux['enc_out'], **tol))
    assert bool(jnp.allclose(aux['dec_h0'], ref_aux['dec_h0'], **tol))
    assert bool(jnp.allclose(aux['dec_c0'], ref_aux['dec_c0'], **tol))
    # Only decode step 0 is compared: later steps depend on greedy-token feedback,
    # where a near-tie argmax may legitimately differ between kernel and reference.
    assert bool(jnp.allclose(aux['logits'][:, 0], ref_aux['logits'][:, 0], **tol))

    print("KERNEL_OK")
</pallas_src>

<mosaic_0001>
module attributes {stable_mosaic.version = 11 : i64} {
  func.func @_encoder_kernel(%arg0: memref<8x8x128xf32, #tpu.memory_space<vmem>>, %arg1: memref<128x512xf32, #tpu.memory_space<vmem>>, %arg2: memref<128x512xf32, #tpu.memory_space<vmem>>, %arg3: memref<1x512xf32, #tpu.memory_space<vmem>>, %arg4: memref<128x512xf32, #tpu.memory_space<vmem>>, %arg5: memref<128x512xf32, #tpu.memory_space<vmem>>, %arg6: memref<1x512xf32, #tpu.memory_space<vmem>>, %arg7: memref<128x512xf32, #tpu.memory_space<vmem>>, %arg8: memref<128x512xf32, #tpu.memory_space<vmem>>, %arg9: memref<128x512xf32, #tpu.memory_space<vmem>>, %arg10: memref<1x512xf32, #tpu.memory_space<vmem>>, %arg11: memref<128x512xf32, #tpu.memory_space<vmem>>, %arg12: memref<128x512xf32, #tpu.memory_space<vmem>>, %arg13: memref<128x512xf32, #tpu.memory_space<vmem>>, %arg14: memref<1x512xf32, #tpu.memory_space<vmem>>, %arg15: memref<8x8x128xf32, #tpu.memory_space<vmem>>, %arg16: memref<8x8x128xf32, #tpu.memory_space<vmem>>, %arg17: memref<4x8x128xf32, #tpu.memory_space<vmem>>, %arg18: memref<4x8x128xf32, #tpu.memory_space<vmem>>, %arg19: memref<8x8x128xf32, #tpu.memory_space<vmem>>, %arg20: memref<8x8x128xf32, #tpu.memory_space<vmem>>) attributes {dimension_semantics = [], scalar_prefetch = 0 : i64, scratch_operands = 0 : i64, tpu.core_type = #tpu.core_type<tc>} {
    %cst = arith.constant 0.000000e+00 : f32
    %0 = vector.broadcast %cst : f32 to vector<8x128xf32>
    %c0 = arith.constant 0 : index
    %c0_0 = arith.constant 0 : index
    %1 = vector.load %arg3[%c0, %c0_0] : memref<1x512xf32, #tpu.memory_space<vmem>>, vector<1x512xf32>
    %c0_1 = arith.constant 0 : index
    %c0_2 = arith.constant 0 : index
    %2 = vector.load %arg6[%c0_1, %c0_2] : memref<1x512xf32, #tpu.memory_space<vmem>>, vector<1x512xf32>
    %c0_3 = arith.constant 0 : index
    %c0_4 = arith.constant 0 : index
    %3 = vector.load %arg10[%c0_3, %c0_4] : memref<1x512xf32, #tpu.memory_space<vmem>>, vector<1x512xf32>
    %c0_5 = arith.constant 0 : index
    %c0_6 = arith.constant 0 : index
    %4 = vector.load %arg14[%c0_5, %c0_6] : memref<1x512xf32, #tpu.memory_space<vmem>>, vector<1x512xf32>
    %c0_i32 = arith.constant 0 : i32
    %c8_i32 = arith.constant 8 : i32
    %5 = arith.addi %c0_i32, %c8_i32 : i32
    %c1_i32 = arith.constant 1 : i32
    %6:2 = scf.for %arg21 = %c0_i32 to %5 step %c1_i32 iter_args(%arg22 = %0, %arg23 = %0) -> (vector<8x128xf32>, vector<8x128xf32>)  : i32 {
      %37 = arith.index_cast %arg21 : i32 to index
      %c0_41 = arith.constant 0 : index
      %c0_42 = arith.constant 0 : index
      %38 = vector.load %arg0[%37, %c0_41, %c0_42] : memref<8x8x128xf32, #tpu.memory_space<vmem>>, vector<1x8x128xf32>
      %39 = vector.shape_cast %38 : vector<1x8x128xf32> to vector<8x128xf32>
      %c0_43 = arith.constant 0 : index
      %c0_44 = arith.constant 0 : index
      %40 = vector.load %arg1[%c0_43, %c0_44] : memref<128x512xf32, #tpu.memory_space<vmem>>, vector<128x512xf32>
      %cst_45 = arith.constant dense<0.000000e+00> : vector<8x512xf32>
      %41 = tpu.matmul %39, %40, %cst_45 {dimension_numbers = #tpu.dot_dimension_numbers<[1], [0], [0], [1], [0, 0, 1, 1], [], []>} : vector<8x128xf32>, vector<128x512xf32>, vector<8x512xf32> -> vector<8x512xf32>
      %c0_46 = arith.constant 0 : index
      %c0_47 = arith.constant 0 : index
      %42 = vector.load %arg2[%c0_46, %c0_47] : memref<128x512xf32, #tpu.memory_space<vmem>>, vector<128x512xf32>
      %cst_48 = arith.constant dense<0.000000e+00> : vector<8x512xf32>
      %43 = tpu.matmul %arg22, %42, %cst_48 {dimension_numbers = #tpu.dot_dimension_numbers<[1], [0], [0], [1], [0, 0, 1, 1], [], []>} : vector<8x128xf32>, vector<128x512xf32>, vector<8x512xf32> -> vector<8x512xf32>
      %44 = arith.addf %41, %43 : vector<8x512xf32>
      %45 = vector.broadcast %1 : vector<1x512xf32> to vector<8x512xf32>
      %46 = arith.addf %44, %45 : vector<8x512xf32>
      %47 = vector.extract_strided_slice %46 {offsets = [0, 0], sizes = [8, 128], strides = [1, 1]} : vector<8x512xf32> to vector<8x128xf32>
      %48 = arith.negf %47 : vector<8x128xf32>
      %49 = math.exp %48 : vector<8x128xf32>
      %cst_49 = arith.constant 1.000000e+00 : f32
      %50 = vector.broadcast %cst_49 : f32 to vector<8x128xf32>
      %51 = arith.addf %50, %49 : vector<8x128xf32>
      %52 = arith.divf %50, %51 : vector<8x128xf32>
      %53 = vector.extract_strided_slice %46 {offsets = [0, 128], sizes = [8, 128], strides = [1, 1]} : vector<8x512xf32> to vector<8x128xf32>
      %54 = arith.negf %53 : vector<8x128xf32>
      %55 = math.exp %54 : vector<8x128xf32>
      %cst_50 = arith.constant 1.000000e+00 : f32
      %56 = vector.broadcast %cst_50 : f32 to vector<8x128xf32>
      %57 = arith.addf %56, %55 : vector<8x128xf32>
      %58 = arith.divf %56, %57 : vector<8x128xf32>
      %59 = vector.extract_strided_slice %46 {offsets = [0, 256], sizes = [8, 128], strides = [1, 1]} : vector<8x512xf32> to vector<8x128xf32>
      %60 = math.tanh %59 : vector<8x128xf32>
      %61 = vector.extract_strided_slice %46 {offsets = [0, 384], sizes = [8, 128], strides = [1, 1]} : vector<8x512xf32> to vector<8x128xf32>
      %62 = arith.negf %61 : vector<8x128xf32>
      %63 = math.exp %62 : vector<8x128xf32>
      %cst_51 = arith.constant 1.000000e+00 : f32
      %64 = vector.broadcast %cst_51 : f32 to vector<8x128xf32>
      %65 = arith.addf %64, %63 : vector<8x128xf32>
      %66 = arith.divf %64, %65 : vector<8x128xf32>
      %67 = arith.mulf %58, %arg23 : vector<8x128xf32>
      %68 = arith.mulf %52, %60 : vector<8x128xf32>
      %69 = arith.addf %67, %68 : vector<8x128xf32>
      %70 = math.tanh %69 : vector<8x128xf32>
      %71 = arith.mulf %66, %70 : vector<8x128xf32>
      %72 = arith.index_cast %arg21 : i32 to index
      %c0_52 = arith.constant 0 : index
      %c0_53 = arith.constant 0 : index
      %73 = vector.load %arg19[%72, %c0_52, %c0_53] : memref<8x8x128xf32, #tpu.memory_space<vmem>>, vector<1x8x128xf32>
      %74 = vector.shape_cast %73 : vector<1x8x128xf32> to vector<8x128xf32>
      %75 = vector.shape_cast %71 : vector<8x128xf32> to vector<1x8x128xf32>
      tpu.vector_store %arg19[%72, %c0_52, %c0_53], %75 {strides = array<i32>} : memref<8x8x128xf32, #tpu.memory_space<vmem>>, vector<1x8x128xf32>,
      scf.yield %71, %69 : vector<8x128xf32>, vector<8x128xf32>
    }
    %c8_i32_7 = arith.constant 8 : i32
    %c0_i32_8 = arith.constant 0 : i32
    %c8_i32_9 = arith.constant 8 : i32
    %7 = arith.addi %c0_i32_8, %c8_i32_9 : i32
    %c1_i32_10 = arith.constant 1 : i32
    %8:2 = scf.for %arg21 = %c0_i32_8 to %7 step %c1_i32_10 iter_args(%arg22 = %0, %arg23 = %0) -> (vector<8x128xf32>, vector<8x128xf32>)  : i32 {
      %c7_i32 = arith.constant 7 : i32
      %37 = arith.subi %c7_i32, %arg21 : i32
      %38 = arith.index_cast %37 : i32 to index
      %c0_41 = arith.constant 0 : index
      %c0_42 = arith.constant 0 : index
      %39 = vector.load %arg0[%38, %c0_41, %c0_42] : memref<8x8x128xf32, #tpu.memory_space<vmem>>, vector<1x8x128xf32>
      %40 = vector.shape_cast %39 : vector<1x8x128xf32> to vector<8x128xf32>
      %c0_43 = arith.constant 0 : index
      %c0_44 = arith.constant 0 : index
      %41 = vector.load %arg4[%c0_43, %c0_44] : memref<128x512xf32, #tpu.memory_space<vmem>>, vector<128x512xf32>
      %cst_45 = arith.constant dense<0.000000e+00> : vector<8x512xf32>
      %42 = tpu.matmul %40, %41, %cst_45 {dimension_numbers = #tpu.dot_dimension_numbers<[1], [0], [0], [1], [0, 0, 1, 1], [], []>} : vector<8x128xf32>, vector<128x512xf32>, vector<8x512xf32> -> vector<8x512xf32>
      %c0_46 = arith.constant 0 : index
      %c0_47 = arith.constant 0 : index
      %43 = vector.load %arg5[%c0_46, %c0_47] : memref<128x512xf32, #tpu.memory_space<vmem>>, vector<128x512xf32>
      %cst_48 = arith.constant dense<0.000000e+00> : vector<8x512xf32>
      %44 = tpu.matmul %arg22, %43, %cst_48 {dimension_numbers = #tpu.dot_dimension_numbers<[1], [0], [0], [1], [0, 0, 1, 1], [], []>} : vector<8x128xf32>, vector<128x512xf32>, vector<8x512xf32> -> vector<8x512xf32>
      %45 = arith.addf %42, %44 : vector<8x512xf32>
      %46 = vector.broadcast %2 : vector<1x512xf32> to vector<8x512xf32>
      %47 = arith.addf %45, %46 : vector<8x512xf32>
      %48 = vector.extract_strided_slice %47 {offsets = [0, 0], sizes = [8, 128], strides = [1, 1]} : vector<8x512xf32> to vector<8x128xf32>
      %49 = arith.negf %48 : vector<8x128xf32>
      %50 = math.exp %49 : vector<8x128xf32>
      %cst_49 = arith.constant 1.000000e+00 : f32
      %51 = vector.broadcast %cst_49 : f32 to vector<8x128xf32>
      %52 = arith.addf %51, %50 : vector<8x128xf32>
      %53 = arith.divf %51, %52 : vector<8x128xf32>
      %54 = vector.extract_strided_slice %47 {offsets = [0, 128], sizes = [8, 128], strides = [1, 1]} : vector<8x512xf32> to vector<8x128xf32>
      %55 = arith.negf %54 : vector<8x128xf32>
      %56 = math.exp %55 : vector<8x128xf32>
      %cst_50 = arith.constant 1.000000e+00 : f32
      %57 = vector.broadcast %cst_50 : f32 to vector<8x128xf32>
      %58 = arith.addf %57, %56 : vector<8x128xf32>
      %59 = arith.divf %57, %58 : vector<8x128xf32>
      %60 = vector.extract_strided_slice %47 {offsets = [0, 256], sizes = [8, 128], strides = [1, 1]} : vector<8x512xf32> to vector<8x128xf32>
      %61 = math.tanh %60 : vector<8x128xf32>
      %62 = vector.extract_strided_slice %47 {offsets = [0, 384], sizes = [8, 128], strides = [1, 1]} : vector<8x512xf32> to vector<8x128xf32>
      %63 = arith.negf %62 : vector<8x128xf32>
      %64 = math.exp %63 : vector<8x128xf32>
      %cst_51 = arith.constant 1.000000e+00 : f32
      %65 = vector.broadcast %cst_51 : f32 to vector<8x128xf32>
      %66 = arith.addf %65, %64 : vector<8x128xf32>
      %67 = arith.divf %65, %66 : vector<8x128xf32>
      %68 = arith.mulf %59, %arg23 : vector<8x128xf32>
      %69 = arith.mulf %53, %61 : vector<8x128xf32>
      %70 = arith.addf %68, %69 : vector<8x128xf32>
      %71 = math.tanh %70 : vector<8x128xf32>
      %72 = arith.mulf %67, %71 : vector<8x128xf32>
      %73 = arith.index_cast %37 : i32 to index
      %c0_52 = arith.constant 0 : index
      %c0_53 = arith.constant 0 : index
      %74 = vector.load %arg20[%73, %c0_52, %c0_53] : memref<8x8x128xf32, #tpu.memory_space<vmem>>, vector<1x8x128xf32>
      %75 = vector.shape_cast %74 : vector<1x8x128xf32> to vector<8x128xf32>
      %76 = vector.shape_cast %72 : vector<8x128xf32> to vector<1x8x128xf32>
      tpu.vector_store %arg20[%73, %c0_52, %c0_53], %76 {strides = array<i32>} : memref<8x8x128xf32, #tpu.memory_space<vmem>>, vector<1x8x128xf32>,
      scf.yield %72, %70 : vector<8x128xf32>, vector<8x128xf32>
    }
    %c8_i32_11 = arith.constant 8 : i32
    %c0_i32_12 = arith.constant 0 : i32
    %c8_i32_13 = arith.constant 8 : i32
    %9 = arith.addi %c0_i32_12, %c8_i32_13 : i32
    %c1_i32_14 = arith.constant 1 : i32
    %10:2 = scf.for %arg21 = %c0_i32_12 to %9 step %c1_i32_14 iter_args(%arg22 = %0, %arg23 = %0) -> (vector<8x128xf32>, vector<8x128xf32>)  : i32 {
      %37 = arith.index_cast %arg21 : i32 to index
      %c0_41 = arith.constant 0 : index
      %c0_42 = arith.constant 0 : index
      %38 = vector.load %arg19[%37, %c0_41, %c0_42] : memref<8x8x128xf32, #tpu.memory_space<vmem>>, vector<1x8x128xf32>
      %39 = vector.shape_cast %38 : vector<1x8x128xf32> to vector<8x128xf32>
      %c0_43 = arith.constant 0 : index
      %c0_44 = arith.constant 0 : index
      %40 = vector.load %arg7[%c0_43, %c0_44] : memref<128x512xf32, #tpu.memory_space<vmem>>, vector<128x512xf32>
      %cst_45 = arith.constant dense<0.000000e+00> : vector<8x512xf32>
      %41 = tpu.matmul %39, %40, %cst_45 {dimension_numbers = #tpu.dot_dimension_numbers<[1], [0], [0], [1], [0, 0, 1, 1], [], []>} : vector<8x128xf32>, vector<128x512xf32>, vector<8x512xf32> -> vector<8x512xf32>
      %42 = arith.index_cast %arg21 : i32 to index
      %c0_46 = arith.constant 0 : index
      %c0_47 = arith.constant 0 : index
      %43 = vector.load %arg20[%42, %c0_46, %c0_47] : memref<8x8x128xf32, #tpu.memory_space<vmem>>, vector<1x8x128xf32>
      %44 = vector.shape_cast %43 : vector<1x8x128xf32> to vector<8x128xf32>
      %c0_48 = arith.constant 0 : index
      %c0_49 = arith.constant 0 : index
      %45 = vector.load %arg8[%c0_48, %c0_49] : memref<128x512xf32, #tpu.memory_space<vmem>>, vector<128x512xf32>
      %cst_50 = arith.constant dense<0.000000e+00> : vector<8x512xf32>
      %46 = tpu.matmul %44, %45, %cst_50 {dimension_numbers = #tpu.dot_dimension_numbers<[1], [0], [0], [1], [0, 0, 1, 1], [], []>} : vector<8x128xf32>, vector<128x512xf32>, vector<8x512xf32> -> vector<8x512xf32>
      %47 = arith.addf %41, %46 : vector<8x512xf32>
      %c0_51 = arith.constant 0 : index
      %c0_52 = arith.constant 0 : index
      %48 = vector.load %arg9[%c0_51, %c0_52] : memref<128x512xf32, #tpu.memory_space<vmem>>, vector<128x512xf32>
      %cst_53 = arith.constant dense<0.000000e+00> : vector<8x512xf32>
      %49 = tpu.matmul %arg22, %48, %cst_53 {dimension_numbers = #tpu.dot_dimension_numbers<[1], [0], [0], [1], [0, 0, 1, 1], [], []>} : vector<8x128xf32>, vector<128x512xf32>, vector<8x512xf32> -> vector<8x512xf32>
      %50 = arith.addf %47, %49 : vector<8x512xf32>
      %51 = vector.broadcast %3 : vector<1x512xf32> to vector<8x512xf32>
      %52 = arith.addf %50, %51 : vector<8x512xf32>
      %53 = vector.extract_strided_slice %52 {offsets = [0, 0], sizes = [8, 128], strides = [1, 1]} : vector<8x512xf32> to vector<8x128xf32>
      %54 = arith.negf %53 : vector<8x128xf32>
      %55 = math.exp %54 : vector<8x128xf32>
      %cst_54 = arith.constant 1.000000e+00 : f32
      %56 = vector.broadcast %cst_54 : f32 to vector<8x128xf32>
      %57 = arith.addf %56, %55 : vector<8x128xf32>
      %58 = arith.divf %56, %57 : vector<8x128xf32>
      %59 = vector.extract_strided_slice %52 {offsets = [0, 128], sizes = [8, 128], strides = [1, 1]} : vector<8x512xf32> to vector<8x128xf32>
      %60 = arith.negf %59 : vector<8x128xf32>
      %61 = math.exp %60 : vector<8x128xf32>
      %cst_55 = arith.constant 1.000000e+00 : f32
      %62 = vector.broadcast %cst_55 : f32 to vector<8x128xf32>
      %63 = arith.addf %62, %61 : vector<8x128xf32>
      %64 = arith.divf %62, %63 : vector<8x128xf32>
      %65 = vector.extract_strided_slice %52 {offsets = [0, 256], sizes = [8, 128], strides = [1, 1]} : vector<8x512xf32> to vector<8x128xf32>
      %66 = math.tanh %65 : vector<8x128xf32>
      %67 = vector.extract_strided_slice %52 {offsets = [0, 384], sizes = [8, 128], strides = [1, 1]} : vector<8x512xf32> to vector<8x128xf32>
      %68 = arith.negf %67 : vector<8x128xf32>
      %69 = math.exp %68 : vector<8x128xf32>
      %cst_56 = arith.constant 1.000000e+00 : f32
      %70 = vector.broadcast %cst_56 : f32 to vector<8x128xf32>
      %71 = arith.addf %70, %69 : vector<8x128xf32>
      %72 = arith.divf %70, %71 : vector<8x128xf32>
      %73 = arith.mulf %64, %arg23 : vector<8x128xf32>
      %74 = arith.mulf %58, %66 : vector<8x128xf32>
      %75 = arith.addf %73, %74 : vector<8x128xf32>
      %76 = math.tanh %75 : vector<8x128xf32>
      %77 = arith.mulf %72, %76 : vector<8x128xf32>
      %78 = arith.index_cast %arg21 : i32 to index
      %c0_57 = arith.constant 0 : index
      %c0_58 = arith.constant 0 : index
      %79 = vector.load %arg15[%78, %c0_57, %c0_58] : memref<8x8x128xf32, #tpu.memory_space<vmem>>, vector<1x8x128xf32>
      %80 = vector.shape_cast %79 : vector<1x8x128xf32> to vector<8x128xf32>
      %81 = vector.shape_cast %77 : vector<8x128xf32> to vector<1x8x128xf32>
      tpu.vector_store %arg15[%78, %c0_57, %c0_58], %81 {strides = array<i32>} : memref<8x8x128xf32, #tpu.memory_space<vmem>>, vector<1x8x128xf32>,
      scf.yield %77, %75 : vector<8x128xf32>, vector<8x128xf32>
    }
    %c8_i32_15 = arith.constant 8 : i32
    %c0_i32_16 = arith.constant 0 : i32
    %c8_i32_17 = arith.constant 8 : i32
    %11 = arith.addi %c0_i32_16, %c8_i32_17 : i32
    %c1_i32_18 = arith.constant 1 : i32
    %12:2 = scf.for %arg21 = %c0_i32_16 to %11 step %c1_i32_18 iter_args(%arg22 = %0, %arg23 = %0) -> (vector<8x128xf32>, vector<8x128xf32>)  : i32 {
      %c7_i32 = arith.constant 7 : i32
      %37 = arith.subi %c7_i32, %arg21 : i32
      %38 = arith.index_cast %37 : i32 to index
      %c0_41 = arith.constant 0 : index
      %c0_42 = arith.constant 0 : index
      %39 = vector.load %arg19[%38, %c0_41, %c0_42] : memref<8x8x128xf32, #tpu.memory_space<vmem>>, vector<1x8x128xf32>
      %40 = vector.shape_cast %39 : vector<1x8x128xf32> to vector<8x128xf32>
      %c0_43 = arith.constant 0 : index
      %c0_44 = arith.constant 0 : index
      %41 = vector.load %arg11[%c0_43, %c0_44] : memref<128x512xf32, #tpu.memory_space<vmem>>, vector<128x512xf32>
      %cst_45 = arith.constant dense<0.000000e+00> : vector<8x512xf32>
      %42 = tpu.matmul %40, %41, %cst_45 {dimension_numbers = #tpu.dot_dimension_numbers<[1], [0], [0], [1], [0, 0, 1, 1], [], []>} : vector<8x128xf32>, vector<128x512xf32>, vector<8x512xf32> -> vector<8x512xf32>
      %43 = arith.index_cast %37 : i32 to index
      %c0_46 = arith.constant 0 : index
      %c0_47 = arith.constant 0 : index
      %44 = vector.load %arg20[%43, %c0_46, %c0_47] : memref<8x8x128xf32, #tpu.memory_space<vmem>>, vector<1x8x128xf32>
      %45 = vector.shape_cast %44 : vector<1x8x128xf32> to vector<8x128xf32>
      %c0_48 = arith.constant 0 : index
      %c0_49 = arith.constant 0 : index
      %46 = vector.load %arg12[%c0_48, %c0_49] : memref<128x512xf32, #tpu.memory_space<vmem>>, vector<128x512xf32>
      %cst_50 = arith.constant dense<0.000000e+00> : vector<8x512xf32>
      %47 = tpu.matmul %45, %46, %cst_50 {dimension_numbers = #tpu.dot_dimension_numbers<[1], [0], [0], [1], [0, 0, 1, 1], [], []>} : vector<8x128xf32>, vector<128x512xf32>, vector<8x512xf32> -> vector<8x512xf32>
      %48 = arith.addf %42, %47 : vector<8x512xf32>
      %c0_51 = arith.constant 0 : index
      %c0_52 = arith.constant 0 : index
      %49 = vector.load %arg13[%c0_51, %c0_52] : memref<128x512xf32, #tpu.memory_space<vmem>>, vector<128x512xf32>
      %cst_53 = arith.constant dense<0.000000e+00> : vector<8x512xf32>
      %50 = tpu.matmul %arg22, %49, %cst_53 {dimension_numbers = #tpu.dot_dimension_numbers<[1], [0], [0], [1], [0, 0, 1, 1], [], []>} : vector<8x128xf32>, vector<128x512xf32>, vector<8x512xf32> -> vector<8x512xf32>
      %51 = arith.addf %48, %50 : vector<8x512xf32>
      %52 = vector.broadcast %4 : vector<1x512xf32> to vector<8x512xf32>
      %53 = arith.addf %51, %52 : vector<8x512xf32>
      %54 = vector.extract_strided_slice %53 {offsets = [0, 0], sizes = [8, 128], strides = [1, 1]} : vector<8x512xf32> to vector<8x128xf32>
      %55 = arith.negf %54 : vector<8x128xf32>
      %56 = math.exp %55 : vector<8x128xf32>
      %cst_54 = arith.constant 1.000000e+00 : f32
      %57 = vector.broadcast %cst_54 : f32 to vector<8x128xf32>
      %58 = arith.addf %57, %56 : vector<8x128xf32>
      %59 = arith.divf %57, %58 : vector<8x128xf32>
      %60 = vector.extract_strided_slice %53 {offsets = [0, 128], sizes = [8, 128], strides = [1, 1]} : vector<8x512xf32> to vector<8x128xf32>
      %61 = arith.negf %60 : vector<8x128xf32>
      %62 = math.exp %61 : vector<8x128xf32>
      %cst_55 = arith.constant 1.000000e+00 : f32
      %63 = vector.broadcast %cst_55 : f32 to vector<8x128xf32>
      %64 = arith.addf %63, %62 : vector<8x128xf32>
      %65 = arith.divf %63, %64 : vector<8x128xf32>
      %66 = vector.extract_strided_slice %53 {offsets = [0, 256], sizes = [8, 128], strides = [1, 1]} : vector<8x512xf32> to vector<8x128xf32>
      %67 = math.tanh %66 : vector<8x128xf32>
      %68 = vector.extract_strided_slice %53 {offsets = [0, 384], sizes = [8, 128], strides = [1, 1]} : vector<8x512xf32> to vector<8x128xf32>
      %69 = arith.negf %68 : vector<8x128xf32>
      %70 = math.exp %69 : vector<8x128xf32>
      %cst_56 = arith.constant 1.000000e+00 : f32
      %71 = vector.broadcast %cst_56 : f32 to vector<8x128xf32>
      %72 = arith.addf %71, %70 : vector<8x128xf32>
      %73 = arith.divf %71, %72 : vector<8x128xf32>
      %74 = arith.mulf %65, %arg23 : vector<8x128xf32>
      %75 = arith.mulf %59, %67 : vector<8x128xf32>
      %76 = arith.addf %74, %75 : vector<8x128xf32>
      %77 = math.tanh %76 : vector<8x128xf32>
      %78 = arith.mulf %73, %77 : vector<8x128xf32>
      %79 = arith.index_cast %37 : i32 to index
      %c0_57 = arith.constant 0 : index
      %c0_58 = arith.constant 0 : index
      %80 = vector.load %arg16[%79, %c0_57, %c0_58] : memref<8x8x128xf32, #tpu.memory_space<vmem>>, vector<1x8x128xf32>
      %81 = vector.shape_cast %80 : vector<1x8x128xf32> to vector<8x128xf32>
      %82 = vector.shape_cast %78 : vector<8x128xf32> to vector<1x8x128xf32>
      tpu.vector_store %arg16[%79, %c0_57, %c0_58], %82 {strides = array<i32>} : memref<8x8x128xf32, #tpu.memory_space<vmem>>, vector<1x8x128xf32>,
      scf.yield %78, %76 : vector<8x128xf32>, vector<8x128xf32>
    }
    %c8_i32_19 = arith.constant 8 : i32
    %c0_20 = arith.constant 0 : index
    %c0_21 = arith.constant 0 : index
    %c0_22 = arith.constant 0 : index
    %13 = vector.load %arg17[%c0_20, %c0_21, %c0_22] : memref<4x8x128xf32, #tpu.memory_space<vmem>>, vector<1x8x128xf32>
    %14 = vector.shape_cast %13 : vector<1x8x128xf32> to vector<8x128xf32>
    %15 = vector.shape_cast %6#0 : vector<8x128xf32> to vector<1x8x128xf32>
    tpu.vector_store %arg17[%c0_20, %c0_21, %c0_22], %15 {strides = array<i32>} : memref<4x8x128xf32, #tpu.memory_space<vmem>>, vector<1x8x128xf32>,
    %c1 = arith.constant 1 : index
    %c0_23 = arith.constant 0 : index
    %c0_24 = arith.constant 0 : index
    %16 = vector.load %arg17[%c1, %c0_23, %c0_24] : memref<4x8x128xf32, #tpu.memory_space<vmem>>, vector<1x8x128xf32>
    %17 = vector.shape_cast %16 : vector<1x8x128xf32> to vector<8x128xf32>
    %18 = vector.shape_cast %8#0 : vector<8x128xf32> to vector<1x8x128xf32>
    tpu.vector_store %arg17[%c1, %c0_23, %c0_24], %18 {strides = array<i32>} : memref<4x8x128xf32, #tpu.memory_space<vmem>>, vector<1x8x128xf32>,
    %c2 = arith.constant 2 : index
    %c0_25 = arith.constant 0 : index
    %c0_26 = arith.constant 0 : index
    %19 = vector.load %arg17[%c2, %c0_25, %c0_26] : memref<4x8x128xf32, #tpu.memory_space<vmem>>, vector<1x8x128xf32>
    %20 = vector.shape_cast %19 : vector<1x8x128xf32> to vector<8x128xf32>
    %21 = vector.shape_cast %10#0 : vector<8x128xf32> to vector<1x8x128xf32>
    tpu.vector_store %arg17[%c2, %c0_25, %c0_26], %21 {strides = array<i32>} : memref<4x8x128xf32, #tpu.memory_space<vmem>>, vector<1x8x128xf32>,
    %c3 = arith.constant 3 : index
    %c0_27 = arith.constant 0 : index
    %c0_28 = arith.constant 0 : index
    %22 = vector.load %arg17[%c3, %c0_27, %c0_28] : memref<4x8x128xf32, #tpu.memory_space<vmem>>, vector<1x8x128xf32>
    %23 = vector.shape_cast %22 : vector<1x8x128xf32> to vector<8x128xf32>
    %24 = vector.shape_cast %12#0 : vector<8x128xf32> to vector<1x8x128xf32>
    tpu.vector_store %arg17[%c3, %c0_27, %c0_28], %24 {strides = array<i32>} : memref<4x8x128xf32, #tpu.memory_space<vmem>>, vector<1x8x128xf32>,
    %c0_29 = arith.constant 0 : index
    %c0_30 = arith.constant 0 : index
    %c0_31 = arith.constant 0 : index
    %25 = vector.load %arg18[%c0_29, %c0_30, %c0_31] : memref<4x8x128xf32, #tpu.memory_space<vmem>>, vector<1x8x128xf32>
    %26 = vector.shape_cast %25 : vector<1x8x128xf32> to vector<8x128xf32>
    %27 = vector.shape_cast %6#1 : vector<8x128xf32> to vector<1x8x128xf32>
    tpu.vector_store %arg18[%c0_29, %c0_30, %c0_31], %27 {strides = array<i32>} : memref<4x8x128xf32, #tpu.memory_space<vmem>>, vector<1x8x128xf32>,
    %c1_32 = arith.constant 1 : index
    %c0_33 = arith.constant 0 : index
    %c0_34 = arith.constant 0 : index
    %28 = vector.load %arg18[%c1_32, %c0_33, %c0_34] : memref<4x8x128xf32, #tpu.memory_space<vmem>>, vector<1x8x128xf32>
    %29 = vector.shape_cast %28 : vector<1x8x128xf32> to vector<8x128xf32>
    %30 = vector.shape_cast %8#1 : vector<8x128xf32> to vector<1x8x128xf32>
    tpu.vector_store %arg18[%c1_32, %c0_33, %c0_34], %30 {strides = array<i32>} : memref<4x8x128xf32, #tpu.memory_space<vmem>>, vector<1x8x128xf32>,
    %c2_35 = arith.constant 2 : index
    %c0_36 = arith.constant 0 : index
    %c0_37 = arith.constant 0 : index
    %31 = vector.load %arg18[%c2_35, %c0_36, %c0_37] : memref<4x8x128xf32, #tpu.memory_space<vmem>>, vector<1x8x128xf32>
    %32 = vector.shape_cast %31 : vector<1x8x128xf32> to vector<8x128xf32>
    %33 = vector.shape_cast %10#1 : vector<8x128xf32> to vector<1x8x128xf32>
    tpu.vector_store %arg18[%c2_35, %c0_36, %c0_37], %33 {strides = array<i32>} : memref<4x8x128xf32, #tpu.memory_space<vmem>>, vector<1x8x128xf32>,
    %c3_38 = arith.constant 3 : index
    %c0_39 = arith.constant 0 : index
    %c0_40 = arith.constant 0 : index
    %34 = vector.load %arg18[%c3_38, %c0_39, %c0_40] : memref<4x8x128xf32, #tpu.memory_space<vmem>>, vector<1x8x128xf32>
    %35 = vector.shape_cast %34 : vector<1x8x128xf32> to vector<8x128xf32>
    %36 = vector.shape_cast %12#1 : vector<8x128xf32> to vector<1x8x128xf32>
    tpu.vector_store %arg18[%c3_38, %c0_39, %c0_40], %36 {strides = array<i32>} : memref<4x8x128xf32, #tpu.memory_space<vmem>>, vector<1x8x128xf32>,
    return
  }
}

</mosaic_0001>

<bundles_post_ra>
// kernel: tpu_custom_call.1
= control target key start
LH: loop header
LB: loop body
LE: loop exit
PB: predicated region body
PF: predicated region fallthrough
CT: control target
= control target key end

     0   :  { %s3435_s0 = inlined_call_operand.hbm [shape: f32[8,8,128], index: 0, kind: input, shape index: {}]   ;;  %s3436_s1 = inlined_call_operand.hbm [shape: f32[128,512], index: 1, kind: input, shape index: {}]   ;;  %s3437_s2 = inlined_call_operand.hbm [shape: f32[128,512], index: 2, kind: input, shape index: {}]   ;;  %s3438_s3 = inlined_call_operand.hbm [shape: f32[1,512], index: 3, kind: input, shape index: {}]   ;;  %s3439_s4 = inlined_call_operand.hbm [shape: f32[128,512], index: 4, kind: input, shape index: {}]   ;;  %s3440_s5 = inlined_call_operand.hbm [shape: f32[128,512], index: 5, kind: input, shape index: {}]   ;;  %s3441_s6 = inlined_call_operand.vmem [shape: f32[1,512], index: 6, kind: input, shape index: {}]   ;;  %s3442_s7 = inlined_call_operand.hbm [shape: f32[128,512], index: 7, kind: input, shape index: {}]   ;;  %s3443_s8 = inlined_call_operand.hbm [shape: f32[128,512], index: 8, kind: input, shape index: {}]   ;;  %s3444_s9 = inlined_call_operand.hbm [shape: f32[128,512], index: 9, kind: input, shape index: {}]   ;;  %s3445_s10 = inlined_call_operand.vmem [shape: f32[1,512], index: 10, kind: input, shape index: {}]   ;;  %s3446_s11 = inlined_call_operand.hbm [shape: f32[128,512], index: 11, kind: input, shape index: {}]   ;;  %s3447_s12 = inlined_call_operand.hbm [shape: f32[128,512], index: 12, kind: input, shape index: {}]   ;;  %s3448_s13 = inlined_call_operand.hbm [shape: f32[128,512], index: 13, kind: input, shape index: {}]   ;;  %s3449_s14 = inlined_call_operand.vmem [shape: f32[1,512], index: 14, kind: input, shape index: {}]   ;;  %s3450_s15 = inlined_call_operand.hbm [shape: f32[8,8,128], index: 15, kind: output, shape index: {0}]   ;;  %s3451_s16 = inlined_call_operand.hbm [shape: f32[8,8,128], index: 16, kind: output, shape index: {1}]   ;;  %s3452_s17 = inlined_call_operand.hbm [shape: f32[4,8,128], index: 17, kind: output, shape index: {2}]   ;;  %s3453_s18 = inlined_call_operand.hbm [shape: f32[4,8,128], index: 18, kind: output, shape index: {3}]   ;;  %s3454_s19 = inlined_call_operand.hbm [shape: f32[8,8,128], index: 19, kind: output, shape index: {4}]   ;;  %s3455_s20 = inlined_call_operand.hbm [shape: f32[8,8,128], index: 20, kind: output, shape index: {5}]  }
   0x1   :  { %3456 = sst [smem:[#allocation42_spill]] %s3435_s0 }
   0x2   :  { %3457 = sst [smem:[#allocation43_spill]] %s3436_s1 }
   0x3   :  { %3458 = sst [smem:[#allocation44_spill]] %s3437_s2 }
   0x4   :  { %3459 = sst [smem:[#allocation45_spill]] %s3438_s3 }
   0x5   :  { %3460 = sst [smem:[#allocation46_spill]] %s3439_s4 }
   0x6   :  { %26 = vsyncpa [#allocation3], 0 }
   0x7   :  { %27 = vsyncpa [#allocation6], 0 }
   0x8   :  { %28 = vsyncpa [#allocation9], 0 }
   0x9   :  { %29 = vsyncpa [#allocation12], 0 }
   0xa   :  { %30 = vsyncpa [#allocation15], 0 }
   0xb   :  { %31 = vsyncpa [#allocation18], 0 }
   0xc   :  { %32 = vsyncpa [#allocation21], 0 }
   0xd   :  { %33 = vsyncpa [#allocation4], 0 }
   0xe   :  { %34 = vsyncpa [#allocation24], 0 }
   0xf   :  { %35 = vsyncpa [#allocation27], 0  ;;  %s3461_s23 = sld [smem:[#allocation43_spill]] }
  0x15   :  { %s54_s24 = sshll.u32 %s3461_s23, 4  ;;  %s55_s24 = int_to_ptr.hbm [resolvable:$true] %s54_s24 }
  0x16   :  { %36 = vsyncpa [#allocation30], 0  ;;  %s2998_s2 = smov [#allocation5]   ;;  %s3462_s27 = sld [smem:[#allocation45_spill]] }
  0x17   :  { %s56_s25 = sshll.u32 %s2998_s2, 4  ;;  %s2999_s4 = smov 512   ;;  %s57_s25 = int_to_ptr.vmem [resolvable:$true] %s56_s25 }
  0x18   :  { %s3000_s29 = smov 32   ;;  %s3001_s30 = smov [#allocation8]  }
  0x19   :  { %62 = dma.hbm_to_vmem [thread:$0]  %s55_s24, 8192, %s57_s25, [#allocation6], %s2999_s4, %s2999_s4, %s3000_s29  }
  0x1a   :  { %s83_s0 = sshll.u32 %s3001_s30, 4  ;;  %s104_s22 = sshll.u32 %s3440_s5, 4  ;;  %s84_s0 = int_to_ptr.vmem [resolvable:$true] %s83_s0  ;;  %s105_s22 = int_to_ptr.hbm [resolvable:$true] %s104_s22 }
  0x1b   :  { %s132_s3 = sshll.u32 %s3443_s8, 4  ;;  %s3002_s26 = smov [#allocation11]   ;;  %s133_s3 = int_to_ptr.hbm [resolvable:$true] %s132_s3 }
  0x1c   :  { %s81_s28 = sshll.u32 %s3462_s27, 4  ;;  %s106_s27 = sshll.u32 %s3002_s26, 4  ;;  %s82_s28 = int_to_ptr.hbm [resolvable:$true] %s81_s28  ;;  %s107_s27 = int_to_ptr.vmem [resolvable:$true] %s106_s27 }
  0x1d   :  { %86 = dma.hbm_to_vmem [thread:$0]  %s82_s28, 64, %s84_s0, [#allocation9]  }
  0x1e   :  { %112 = dma.hbm_to_vmem [thread:$0]  %s105_s22, 8192, %s107_s27, [#allocation12], %s2999_s4, %s2999_s4, %s3000_s29  }
  0x1f   :  { %s3003_s24 = smov [#allocation14]   ;;  %s160_s5 = sshll.u32 %s3446_s11, 4  ;;  %s161_s5 = int_to_ptr.hbm [resolvable:$true] %s160_s5 }
  0x20   :  { %s134_s25 = sshll.u32 %s3003_s24, 4  ;;  %s3463_s0 = sld [smem:[#allocation42_spill]]  ;;  %s135_s25 = int_to_ptr.vmem [resolvable:$true] %s134_s25 }
  0x21   :  { %140 = dma.hbm_to_vmem [thread:$0]  %s133_s3, 8192, %s135_s25, [#allocation15], %s2999_s4, %s2999_s4, %s3000_s29  }
  0x22   :  { %s3004_s23 = smov [#allocation17]   ;;  %s3005_s22 = smov [#allocation2]  }
  0x23   :  { %s162_s2 = sshll.u32 %s3004_s23, 4  ;;  %s43_s11 = sshll.u32 %s3005_s22, 4  ;;  %s163_s2 = int_to_ptr.vmem [resolvable:$true] %s162_s2  ;;  %s44_s11 = int_to_ptr.vmem [resolvable:$true] %s43_s11 }
  0x24   :  { %168 = dma.hbm_to_vmem [thread:$0]  %s161_s5, 8192, %s163_s2, [#allocation18], %s2999_s4, %s2999_s4, %s3000_s29  }
  0x25   :  { %s3006_s26 = smov 128   ;;  %s3007_s27 = smov 8  }
  0x26   :  { %s41_s1 = sshll.u32 %s3463_s0, 4  ;;  %s3464_s25 = sld [smem:[#allocation44_spill]]  ;;  %s42_s1 = int_to_ptr.hbm [resolvable:$true] %s41_s1 }
  0x27   :  { %49 = dma.hbm_to_vmem [thread:$0]  %s42_s1, 1024, %s44_s11, [#allocation3], %s3006_s26, %s3006_s26, %s3007_s27  }
  0x28   :  { %s3008_s21 = smov [#allocation7]   ;;  %s3465_s5 = sld [smem:[#allocation46_spill]] }
  0x29   :  { %s69_s8 = sshll.u32 %s3008_s21, 4  ;;  %s3009_s2 = smov [#allocation10]   ;;  %s70_s8 = int_to_ptr.vmem [resolvable:$true] %s69_s8 }
  0x2a   :  { %s93_s22 = sshll.u32 %s3009_s2, 4  ;;  %s119_s3 = sshll.u32 %s3442_s7, 4  ;;  %s94_s22 = int_to_ptr.vmem [resolvable:$true] %s93_s22  ;;  %s120_s3 = int_to_ptr.hbm [resolvable:$true] %s119_s3 }
  0x2b   :  { %s145_s21 = sshll.u32 %s3444_s9, 4  ;;  %s3010_s28 = smov [#allocation13]   ;;  %s146_s21 = int_to_ptr.hbm [resolvable:$true] %s145_s21 }
  0x2c   :  { %s67_s30 = sshll.u32 %s3464_s25, 4  ;;  %s121_s0 = sshll.u32 %s3010_s28, 4  ;;  %s68_s30 = int_to_ptr.hbm [resolvable:$true] %s67_s30  ;;  %s122_s0 = int_to_ptr.vmem [resolvable:$true] %s121_s0 }
  0x2d   :  { %75 = dma.hbm_to_vmem [thread:$0]  %s68_s30, 8192, %s70_s8, [#allocation6], %s2999_s4, %s2999_s4, %s3000_s29  }
  0x2e   :  { %s91_s23 = sshll.u32 %s3465_s5, 4  ;;  %s3011_s30 = smov [#allocation16]   ;;  %s92_s23 = int_to_ptr.hbm [resolvable:$true] %s91_s23 }
  0x2f   :  { %99 = dma.hbm_to_vmem [thread:$0]  %s92_s23, 8192, %s94_s22, [#allocation9], %s2999_s4, %s2999_s4, %s3000_s29  }
  0x30   :  { %127 = dma.hbm_to_vmem [thread:$0]  %s120_s3, 8192, %s122_s0, [#allocation12], %s2999_s4, %s2999_s4, %s3000_s29  }
  0x31   :  { %s147_s7 = sshll.u32 %s3011_s30, 4  ;;  %s173_s2 = sshll.u32 %s3447_s12, 4  ;;  %s148_s7 = int_to_ptr.vmem [resolvable:$true] %s147_s7  ;;  %s174_s2 = int_to_ptr.hbm [resolvable:$true] %s173_s2 }
  0x32   :  { %153 = dma.hbm_to_vmem [thread:$0]  %s146_s21, 8192, %s148_s7, [#allocation15], %s2999_s4, %s2999_s4, %s3000_s29  }
  0x33   :  { %s186_s22 = sshll.u32 %s3448_s13, 4  ;;  %s3012_s1 = smov [#allocation19]   ;;  %s187_s22 = int_to_ptr.hbm [resolvable:$true] %s186_s22 }
  0x34   :  { %s175_s11 = sshll.u32 %s3012_s1, 4  ;;  %s3013_s3 = smov [#allocation20]   ;;  %s176_s11 = int_to_ptr.vmem [resolvable:$true] %s175_s11 }
  0x35   :  { %181 = dma.hbm_to_vmem [thread:$0]  %s174_s2, 8192, %s176_s11, [#allocation18], %s2999_s4, %s2999_s4, %s3000_s29  }
  0x36   :  { %s188_s12 = sshll.u32 %s3013_s3, 4  ;;  %s189_s12 = int_to_ptr.vmem [resolvable:$true] %s188_s12 }
  0x37   :  { %194 = dma.hbm_to_vmem [thread:$0]  %s187_s22, 8192, %s189_s12, [#allocation21], %s2999_s4, %s2999_s4, %s3000_s29  }
  0x38   :  { %2928 = dma.done.wait [#allocation3], 1024  }
  0x39   :  { %2929 = vsyncadd [#allocation3], 4294966272 }
  0x3a   :  { %2930 = dma.done.wait [#allocation6], 16384  }
  0x3b   :  { %2931 = vsyncadd [#allocation6], 4294950912 }
  0x3c   :  { %2932 = dma.done.wait [#allocation9], 8256  }
  0x3d   :  { %2933 = vsyncadd [#allocation9], 4294959040 }
  0x3e   :  { %2934 = dma.done.wait [#allocation12], 16384  }
  0x3f   :  { %2935 = vsyncadd [#allocation12], 4294950912 }
  0x40   :  { %2936 = dma.done.wait [#allocation15], 16384  }
  0x41   :  { %2937 = vsyncadd [#allocation15], 4294950912 }
  0x42   :  { %2938 = dma.done.wait [#allocation18], 16384  }
  0x43   :  { %2939 = vsyncadd [#allocation18], 4294950912 }
  0x44   :  { %2940 = dma.done.wait [#allocation21], 8192  }
  0x45   :  { %2941 = vsyncadd [#allocation21], 4294959104  ;;  %v3194_v0 = vld [vmem:[#allocation8] sm:$0xf]  ;;  %v3211_v4 = vmov 0.0   ;;  %v3213_v5 = vmov 0.0  }
  0x46   :  { %v3199_v1 = vld [vmem:[%s3441_s6] sm:$0xf]  ;;  %s3215_s28 = smov 0  }
  0x47   :  { %v3204_v2 = vld [vmem:[%s3445_s10] sm:$0xf] }
  0x48   :  { %v3209_v3 = vld [vmem:[%s3449_s14] sm:$0xf] }
  0x49 LB: > { %v384_v6 = vld [vmem:[#allocation7 + $0x1e0] sm:$0xff]  ;;  %v385_v7 = vld [vmem:[#allocation7 + $0x1e8] sm:$0xff]  ;;  %v387_v8 = vld [vmem:[#allocation7 + $0x1f8] sm:$0xff]  ;;  %s2250_s6 = sshll.u32 %s2960_s28, 3  ;;  %s254_s28 = sadd.s32 1, %s2960_s28   ;;  %s2960_s28 = sphi %s3215_s28, %s254_s28   ;;  %v2956_v5 = vphi %v3213_v5, %v3469_v5   ;;  %v2952_v4 = vphi %v3211_v4, %v3468_v4  }
  0x4a   : > { %388 = vmatpush.msra.mxu0 %v384_v6  ;;  %408 = vmatpush.msra.mxu1 %v385_v7  ;;  %v380_v9 = vld [vmem:[#allocation7 + $0x1c0] sm:$0xff]  ;;  %v381_v10 = vld [vmem:[#allocation7 + $0x1c8] sm:$0xff]  ;;  %v383_v11 = vld [vmem:[#allocation7 + $0x1d8] sm:$0xff]  ;;  %s258_s10 = scalar_lea.vmem [#allocation2], %s2250_s6  ;;  %s624_s14 = scalar_lea.vmem [#allocation28], %s2250_s6 }
  0x4b   : > { %448 = vmatpush.msra.mxu3 %v387_v8  ;;  %v376_v12 = vld [vmem:[#allocation7 + $0x1a0] sm:$0xff]  ;;  %v377_v13 = vld [vmem:[#allocation7 + $0x1a8] sm:$0xff]  ;;  %v379_v14 = vld [vmem:[#allocation7 + $0x1b8] sm:$0xff]  ;;  %p251_p0 = scmp.ge.s32.totalorder %s254_s28, 8  }
  0x4c   : > { %389 = vmatpush.msra.mxu0 %v380_v9  ;;  %409 = vmatpush.msra.mxu1 %v381_v10  ;;  %v372_v15 = vld [vmem:[#allocation7 + $0x180] sm:$0xff]  ;;  %v373_v16 = vld [vmem:[#allocation7 + $0x188] sm:$0xff]  ;;  %v386_v17 = vld [vmem:[#allocation7 + $0x1f0] sm:$0xff]  ;;  %s3259_s0 = smov (%p251_p0), 0  }
  0x4d   : > { %449 = vmatpush.msra.mxu3 %v383_v11  ;;  %v375_v18 = vld [vmem:[#allocation7 + $0x198] sm:$0xff]  ;;  %v382_v19 = vld [vmem:[#allocation7 + $0x1d0] sm:$0xff]  ;;  %428 = vmatpush.msra.mxu2 %v386_v17  ;;  %v368_v20 = vld [vmem:[#allocation7 + $0x160] sm:$0xff] }
  0x4e   : > { %390 = vmatpush.msra.mxu0 %v376_v12  ;;  %410 = vmatpush.msra.mxu1 %v377_v13  ;;  %v369_v21 = vld [vmem:[#allocation7 + $0x168] sm:$0xff]  ;;  %v371_v22 = vld [vmem:[#allocation7 + $0x178] sm:$0xff]  ;;  %v378_v23 = vld [vmem:[#allocation7 + $0x1b0] sm:$0xff] }
  0x4f   : > { %450 = vmatpush.msra.mxu3 %v379_v14  ;;  %429 = vmatpush.msra.mxu2 %v382_v19  ;;  %v364_v24 = vld [vmem:[#allocation7 + $0x140] sm:$0xff]  ;;  %v365_v25 = vld [vmem:[#allocation7 + $0x148] sm:$0xff]  ;;  %v367_v26 = vld [vmem:[#allocation7 + $0x158] sm:$0xff] }
  0x50   : > { %391 = vmatpush.msra.mxu0 %v372_v15  ;;  %411 = vmatpush.msra.mxu1 %v373_v16  ;;  %v374_v27 = vld [vmem:[#allocation7 + $0x190] sm:$0xff]  ;;  %v360_v28 = vld [vmem:[#allocation7 + $0x120] sm:$0xff]  ;;  %v361_v29 = vld [vmem:[#allocation7 + $0x128] sm:$0xff] }
  0x51   : > { %451 = vmatpush.msra.mxu3 %v375_v18  ;;  %430 = vmatpush.msra.mxu2 %v378_v23  ;;  %v363_v30 = vld [vmem:[#allocation7 + $0x138] sm:$0xff]  ;;  %v370_v31 = vld [vmem:[#allocation7 + $0x170] sm:$0xff]  ;;  %v356_v32 = vld [vmem:[#allocation7 + $0x100] sm:$0xff] }
  0x52   : > { %392 = vmatpush.msra.mxu0 %v368_v20  ;;  %412 = vmatpush.msra.mxu1 %v369_v21  ;;  %v357_v33 = vld [vmem:[#allocation7 + $0x108] sm:$0xff]  ;;  %v359_v34 = vld [vmem:[#allocation7 + $0x118] sm:$0xff]  ;;  %v366_v35 = vld [vmem:[#allocation7 + $0x150] sm:$0xff] }
  0x53   : > { %452 = vmatpush.msra.mxu3 %v371_v22  ;;  %431 = vmatpush.msra.mxu2 %v374_v27  ;;  %v352_v36 = vld [vmem:[#allocation7 + $0xe0] sm:$0xff]  ;;  %v353_v37 = vld [vmem:[#allocation7 + $0xe8] sm:$0xff]  ;;  %v355_v38 = vld [vmem:[#allocation7 + $0xf8] sm:$0xff] }
  0x54   : > { %393 = vmatpush.msra.mxu0 %v364_v24  ;;  %413 = vmatpush.msra.mxu1 %v365_v25  ;;  %v362_v39 = vld [vmem:[#allocation7 + $0x130] sm:$0xff]  ;;  %v348_v40 = vld [vmem:[#allocation7 + $0xc0] sm:$0xff]  ;;  %v349_v41 = vld [vmem:[#allocation7 + $0xc8] sm:$0xff] }
  0x55   : > { %453 = vmatpush.msra.mxu3 %v367_v26  ;;  %432 = vmatpush.msra.mxu2 %v370_v31  ;;  %v351_v42 = vld [vmem:[#allocation7 + $0xd8] sm:$0xff]  ;;  %v358_v43 = vld [vmem:[#allocation7 + $0x110] sm:$0xff]  ;;  %v344_v44 = vld [vmem:[#allocation7 + $0xa0] sm:$0xff] }
  0x56   : > { %394 = vmatpush.msra.mxu0 %v360_v28  ;;  %414 = vmatpush.msra.mxu1 %v361_v29  ;;  %v345_v45 = vld [vmem:[#allocation7 + $0xa8] sm:$0xff]  ;;  %v347_v46 = vld [vmem:[#allocation7 + $0xb8] sm:$0xff]  ;;  %v354_v47 = vld [vmem:[#allocation7 + $0xf0] sm:$0xff] }
  0x57   : > { %454 = vmatpush.msra.mxu3 %v363_v30  ;;  %433 = vmatpush.msra.mxu2 %v366_v35  ;;  %v340_v48 = vld [vmem:[#allocation7 + $0x80] sm:$0xff]  ;;  %v341_v49 = vld [vmem:[#allocation7 + $0x88] sm:$0xff]  ;;  %v343_v50 = vld [vmem:[#allocation7 + $0x98] sm:$0xff] }
  0x58   : > { %395 = vmatpush.msra.mxu0 %v356_v32  ;;  %415 = vmatpush.msra.mxu1 %v357_v33  ;;  %v350_v51 = vld [vmem:[#allocation7 + $0xd0] sm:$0xff]  ;;  %v336_v52 = vld [vmem:[#allocation7 + $0x60] sm:$0xff]  ;;  %v337_v53 = vld [vmem:[#allocation7 + $0x68] sm:$0xff] }
  0x59   : > { %455 = vmatpush.msra.mxu3 %v359_v34  ;;  %434 = vmatpush.msra.mxu2 %v362_v39  ;;  %v339_v54 = vld [vmem:[#allocation7 + $0x78] sm:$0xff]  ;;  %v346_v55 = vld [vmem:[#allocation7 + $0xb0] sm:$0xff]  ;;  %v332_v56 = vld [vmem:[#allocation7 + $0x40] sm:$0xff] }
  0x5a   : > { %396 = vmatpush.msra.mxu0 %v352_v36  ;;  %416 = vmatpush.msra.mxu1 %v353_v37  ;;  %v333_v57 = vld [vmem:[#allocation7 + $0x48] sm:$0xff]  ;;  %v335_v58 = vld [vmem:[#allocation7 + $0x58] sm:$0xff]  ;;  %v342_v59 = vld [vmem:[#allocation7 + $0x90] sm:$0xff] }
  0x5b   : > { %456 = vmatpush.msra.mxu3 %v355_v38  ;;  %435 = vmatpush.msra.mxu2 %v358_v43  ;;  %v328_v60 = vld [vmem:[#allocation7 + $0x20] sm:$0xff]  ;;  %v329_v61 = vld [vmem:[#allocation7 + $0x28] sm:$0xff]  ;;  %v331_v62 = vld [vmem:[#allocation7 + $0x38] sm:$0xff] }
  0x5c   : > { %397 = vmatpush.msra.mxu0 %v348_v40  ;;  %417 = vmatpush.msra.mxu1 %v349_v41  ;;  %v338_v63 = vld [vmem:[#allocation7 + $0x70] sm:$0xff]  ;;  %v324_v6 = vld [vmem:[#allocation7] sm:$0xff]  ;;  %v325_v7 = vld [vmem:[#allocation7 + $0x8] sm:$0xff] }
  0x5d   : > { %457 = vmatpush.msra.mxu3 %v351_v42  ;;  %436 = vmatpush.msra.mxu2 %v354_v47  ;;  %v327_v8 = vld [vmem:[#allocation7 + $0x18] sm:$0xff]  ;;  %v320_v9 = vld [vmem:[#allocation5 + $0x1e0] sm:$0xff]  ;;  %v321_v10 = vld [vmem:[#allocation5 + $0x1e8] sm:$0xff] }
  0x5e   : > { %398 = vmatpush.msra.mxu0 %v344_v44  ;;  %418 = vmatpush.msra.mxu1 %v345_v45  ;;  %v323_v11 = vld [vmem:[#allocation5 + $0x1f8] sm:$0xff]  ;;  %v334_v12 = vld [vmem:[#allocation7 + $0x50] sm:$0xff]  ;;  %v316_v13 = vld [vmem:[#allocation5 + $0x1c0] sm:$0xff] }
  0x5f   : > { %458 = vmatpush.msra.mxu3 %v347_v46  ;;  %437 = vmatpush.msra.mxu2 %v350_v51  ;;  %v317_v14 = vld [vmem:[#allocation5 + $0x1c8] sm:$0xff]  ;;  %v319_v15 = vld [vmem:[#allocation5 + $0x1d8] sm:$0xff]  ;;  %v330_v16 = vld [vmem:[#allocation7 + $0x30] sm:$0xff] }
  0x60   : > { %399 = vmatpush.msra.mxu0 %v340_v48  ;;  %419 = vmatpush.msra.mxu1 %v341_v49  ;;  %v312_v17 = vld [vmem:[#allocation5 + $0x1a0] sm:$0xff]  ;;  %v313_v18 = vld [vmem:[#allocation5 + $0x1a8] sm:$0xff]  ;;  %v315_v19 = vld [vmem:[#allocation5 + $0x1b8] sm:$0xff] }
  0x61   : > { %459 = vmatpush.msra.mxu3 %v343_v50  ;;  %438 = vmatpush.msra.mxu2 %v346_v55  ;;  %v326_v20 = vld [vmem:[#allocation7 + $0x10] sm:$0xff]  ;;  %v308_v21 = vld [vmem:[#allocation5 + $0x180] sm:$0xff]  ;;  %v309_v22 = vld [vmem:[#allocation5 + $0x188] sm:$0xff] }
  0x62   : > { %400 = vmatpush.msra.mxu0 %v336_v52  ;;  %420 = vmatpush.msra.mxu1 %v337_v53  ;;  %v311_v23 = vld [vmem:[#allocation5 + $0x198] sm:$0xff]  ;;  %v322_v24 = vld [vmem:[#allocation5 + $0x1f0] sm:$0xff]  ;;  %v304_v25 = vld [vmem:[#allocation5 + $0x160] sm:$0xff] }
  0x63   : > { %460 = vmatpush.msra.mxu3 %v339_v54  ;;  %439 = vmatpush.msra.mxu2 %v342_v59  ;;  %v305_v26 = vld [vmem:[#allocation5 + $0x168] sm:$0xff]  ;;  %v307_v27 = vld [vmem:[#allocation5 + $0x178] sm:$0xff]  ;;  %v318_v28 = vld [vmem:[#allocation5 + $0x1d0] sm:$0xff] }
  0x64   : > { %401 = vmatpush.msra.mxu0 %v332_v56  ;;  %421 = vmatpush.msra.mxu1 %v333_v57  ;;  %v300_v29 = vld [vmem:[#allocation5 + $0x140] sm:$0xff]  ;;  %v301_v30 = vld [vmem:[#allocation5 + $0x148] sm:$0xff]  ;;  %v303_v31 = vld [vmem:[#allocation5 + $0x158] sm:$0xff] }
  0x65   : > { %461 = vmatpush.msra.mxu3 %v335_v58  ;;  %440 = vmatpush.msra.mxu2 %v338_v63  ;;  %v314_v32 = vld [vmem:[#allocation5 + $0x1b0] sm:$0xff]  ;;  %v296_v33 = vld [vmem:[#allocation5 + $0x120] sm:$0xff]  ;;  %v297_v34 = vld [vmem:[#allocation5 + $0x128] sm:$0xff] }
  0x66   : > { %402 = vmatpush.msra.mxu0 %v328_v60  ;;  %422 = vmatpush.msra.mxu1 %v329_v61  ;;  %v299_v35 = vld [vmem:[#allocation5 + $0x138] sm:$0xff]  ;;  %v310_v36 = vld [vmem:[#allocation5 + $0x190] sm:$0xff]  ;;  %v292_v37 = vld [vmem:[#allocation5 + $0x100] sm:$0xff] }
  0x67   : > { %462 = vmatpush.msra.mxu3 %v331_v62  ;;  %441 = vmatpush.msra.mxu2 %v334_v12  ;;  %v293_v38 = vld [vmem:[#allocation5 + $0x108] sm:$0xff]  ;;  %v295_v39 = vld [vmem:[#allocation5 + $0x118] sm:$0xff]  ;;  %v306_v40 = vld [vmem:[#allocation5 + $0x170] sm:$0xff] }
  0x68   : > { %403 = vmatpush.msra.mxu0 %v324_v6  ;;  %423 = vmatpush.msra.mxu1 %v325_v7  ;;  %v288_v41 = vld [vmem:[#allocation5 + $0xe0] sm:$0xff]  ;;  %v289_v42 = vld [vmem:[#allocation5 + $0xe8] sm:$0xff]  ;;  %v291_v43 = vld [vmem:[#allocation5 + $0xf8] sm:$0xff] }
  0x69   : > { %463 = vmatpush.msra.mxu3 %v327_v8  ;;  %442 = vmatpush.msra.mxu2 %v330_v16  ;;  %v302_v44 = vld [vmem:[#allocation5 + $0x150] sm:$0xff]  ;;  %v284_v45 = vld [vmem:[#allocation5 + $0xc0] sm:$0xff]  ;;  %v285_v46 = vld [vmem:[#allocation5 + $0xc8] sm:$0xff] }
  0x6a   : > { %468 = vmatpush.msrb.mxu0 %v320_v9  ;;  %488 = vmatpush.msrb.mxu1 %v321_v10  ;;  %v287_v47 = vld [vmem:[#allocation5 + $0xd8] sm:$0xff]  ;;  %v298_v48 = vld [vmem:[#allocation5 + $0x130] sm:$0xff]  ;;  %v280_v49 = vld [vmem:[#allocation5 + $0xa0] sm:$0xff] }
  0x6b   : > { %528 = vmatpush.msrb.mxu3 %v323_v11  ;;  %443 = vmatpush.msra.mxu2 %v326_v20  ;;  %v281_v50 = vld [vmem:[#allocation5 + $0xa8] sm:$0xff]  ;;  %v283_v51 = vld [vmem:[#allocation5 + $0xb8] sm:$0xff]  ;;  %v294_v52 = vld [vmem:[#allocation5 + $0x110] sm:$0xff] }
  0x6c   : > { %469 = vmatpush.msrb.mxu0 %v316_v13  ;;  %489 = vmatpush.msrb.mxu1 %v317_v14  ;;  %v276_v53 = vld [vmem:[#allocation5 + $0x80] sm:$0xff]  ;;  %v277_v54 = vld [vmem:[#allocation5 + $0x88] sm:$0xff]  ;;  %v279_v55 = vld [vmem:[#allocation5 + $0x98] sm:$0xff] }
  0x6d   : > { %529 = vmatpush.msrb.mxu3 %v319_v15  ;;  %508 = vmatpush.msrb.mxu2 %v322_v24  ;;  %v290_v56 = vld [vmem:[#allocation5 + $0xf0] sm:$0xff]  ;;  %v272_v57 = vld [vmem:[#allocation5 + $0x60] sm:$0xff]  ;;  %v273_v58 = vld [vmem:[#allocation5 + $0x68] sm:$0xff] }
  0x6e   : > { %470 = vmatpush.msrb.mxu0 %v312_v17  ;;  %490 = vmatpush.msrb.mxu1 %v313_v18  ;;  %v275_v59 = vld [vmem:[#allocation5 + $0x78] sm:$0xff]  ;;  %v286_v60 = vld [vmem:[#allocation5 + $0xd0] sm:$0xff]  ;;  %v268_v61 = vld [vmem:[#allocation5 + $0x40] sm:$0xff] }
  0x6f   : > { %530 = vmatpush.msrb.mxu3 %v315_v19  ;;  %509 = vmatpush.msrb.mxu2 %v318_v28  ;;  %v269_v62 = vld [vmem:[#allocation5 + $0x48] sm:$0xff]  ;;  %v271_v63 = vld [vmem:[#allocation5 + $0x58] sm:$0xff]  ;;  %v282_v6 = vld [vmem:[#allocation5 + $0xb0] sm:$0xff] }
  0x70   : > { %471 = vmatpush.msrb.mxu0 %v308_v21  ;;  %491 = vmatpush.msrb.mxu1 %v309_v22  ;;  %v264_v7 = vld [vmem:[#allocation5 + $0x20] sm:$0xff]  ;;  %v265_v8 = vld [vmem:[#allocation5 + $0x28] sm:$0xff]  ;;  %v267_v9 = vld [vmem:[#allocation5 + $0x38] sm:$0xff]  ;;  %v550_v22 = vperm.slane %v3194_v0, 1 }
  0x71   : > { %531 = vmatpush.msrb.mxu3 %v311_v23  ;;  %510 = vmatpush.msrb.mxu2 %v314_v32  ;;  %v278_v10 = vld [vmem:[#allocation5 + $0x90] sm:$0xff]  ;;  %v260_v11 = vld [vmem:[#allocation5] sm:$0xff]  ;;  %v261_v12 = vld [vmem:[#allocation5 + $0x8] sm:$0xff]  ;;  %v552_v32 = vperm.slane %v3194_v0, 3 }
  0x72   : > { %472 = vmatpush.msrb.mxu0 %v304_v25  ;;  %492 = vmatpush.msrb.mxu1 %v305_v26  ;;  %v263_v13 = vld [vmem:[#allocation5 + $0x18] sm:$0xff]  ;;  %v259_v14 = vld [vmem:[%s258_s10] sm:$0xff]  ;;  %v274_v15 = vld [vmem:[#allocation5 + $0x70] sm:$0xff] }
  0x73   : > { %532 = vmatpush.msrb.mxu3 %v307_v27  ;;  %511 = vmatpush.msrb.mxu2 %v310_v36  ;;  %v270_v16 = vld [vmem:[#allocation5 + $0x50] sm:$0xff] }
  0x74   : > { %473 = vmatpush.msrb.mxu0 %v300_v29  ;;  %493 = vmatpush.msrb.mxu1 %v301_v30  ;;  %v266_v17 = vld [vmem:[#allocation5 + $0x30] sm:$0xff] }
  0x75   : > { %533 = vmatpush.msrb.mxu3 %v303_v31  ;;  %512 = vmatpush.msrb.mxu2 %v306_v40  ;;  %v262_v18 = vld [vmem:[#allocation5 + $0x10] sm:$0xff] }
  0x76   : > { %474 = vmatpush.msrb.mxu0 %v296_v33  ;;  %494 = vmatpush.msrb.mxu1 %v297_v34 }
  0x77   : > { %534 = vmatpush.msrb.mxu3 %v299_v35  ;;  %513 = vmatpush.msrb.mxu2 %v302_v44 }
  0x78   : > { %475 = vmatpush.msrb.mxu0 %v292_v37  ;;  %495 = vmatpush.msrb.mxu1 %v293_v38 }
  0x79   : > { %535 = vmatpush.msrb.mxu3 %v295_v39  ;;  %514 = vmatpush.msrb.mxu2 %v298_v48 }
  0x7a   : > { %476 = vmatpush.msrb.mxu0 %v288_v41  ;;  %496 = vmatpush.msrb.mxu1 %v289_v42 }
  0x7b   : > { %536 = vmatpush.msrb.mxu3 %v291_v43  ;;  %515 = vmatpush.msrb.mxu2 %v294_v52  ;;  %v551_v43 = vperm.slane %v3194_v0, 2 }
  0x7c   : > { %477 = vmatpush.msrb.mxu0 %v284_v45  ;;  %497 = vmatpush.msrb.mxu1 %v285_v46 }
  0x7d   : > { %537 = vmatpush.msrb.mxu3 %v287_v47  ;;  %404 = vmatmul.f32.vlgmr.msra.gmra.mxu0 %v2956_v5 }
  0x7e   : > { %478 = vmatpush.msrb.mxu0 %v280_v49  ;;  %498 = vmatpush.msrb.mxu1 %v281_v50 }
  0x7f   : > { %538 = vmatpush.msrb.mxu3 %v283_v51  ;;  %424 = vmatmul.f32.vlgmr.msra.gmra.mxu1 %v2956_v5 }
  0x80   : > { %479 = vmatpush.msrb.mxu0 %v276_v53  ;;  %499 = vmatpush.msrb.mxu1 %v277_v54 }
  0x81   : > { %539 = vmatpush.msrb.mxu3 %v279_v55  ;;  %516 = vmatpush.msrb.mxu2 %v290_v56 }
  0x82   : > { %464 = vmatmul.f32.vlgmr.msra.gmra.mxu3 %v2956_v5  ;;  %480 = vmatpush.msrb.mxu0 %v272_v57 }
  0x83   : > { %500 = vmatpush.msrb.mxu1 %v273_v58  ;;  %540 = vmatpush.msrb.mxu3 %v275_v59 }
  0x84   : > { %517 = vmatpush.msrb.mxu2 %v286_v60  ;;  %481 = vmatpush.msrb.mxu0 %v268_v61 }
  0x85   : > { %501 = vmatpush.msrb.mxu1 %v269_v62  ;;  %541 = vmatpush.msrb.mxu3 %v271_v63 }
  0x86   : > { %518 = vmatpush.msrb.mxu2 %v282_v6  ;;  %482 = vmatpush.msrb.mxu0 %v264_v7 }
  0x87   : > { %502 = vmatpush.msrb.mxu1 %v265_v8  ;;  %542 = vmatpush.msrb.mxu3 %v267_v9 }
  0x88   : > { %519 = vmatpush.msrb.mxu2 %v278_v10  ;;  %483 = vmatpush.msrb.mxu0 %v260_v11 }
  0x89   : > { %444 = vmatmul.f32.vlgmr.msra.gmra.mxu2 %v2956_v5  ;;  %503 = vmatpush.msrb.mxu1 %v261_v12  ;;  %v549_v5 = vperm.slane %v3194_v0, 0 }
  0x8a   : > { %543 = vmatpush.msrb.mxu3 %v263_v13  ;;  %484 = vmatmul.f32.vlgmr.msrb.gmra.mxu0 %v259_v14 }
  0x8b   : > { %504 = vmatmul.f32.vlgmr.msrb.gmra.mxu1 %v259_v14  ;;  %520 = vmatpush.msrb.mxu2 %v274_v15 }
  0x8c   : > { %544 = vmatmul.f32.vlgmr.msrb.gmra.mxu3 %v259_v14 }
  0x8d   : > { %521 = vmatpush.msrb.mxu2 %v270_v16 }
  0x8f   : > { %522 = vmatpush.msrb.mxu2 %v266_v17 }
  0x91   : > { %523 = vmatpush.msrb.mxu2 %v262_v18 }
  0x92   : > { %524 = vmatmul.f32.vlgmr.msrb.gmra.mxu2 %v259_v14 }
  0xfa   : > { %v405_v19 = vpop.f32.mrf.mxu0 }
  0xfc   : > { %v425_v20 = vpop.f32.mrf.mxu1 }
 0x105   : > { %v465_v21 = vpop.f32.mrf.mxu3 }
 0x107   : > { %v485_v23 = vpop.f32.mrf.mxu0 }
 0x108   : > { %v505_v24 = vpop.f32.mrf.mxu1  ;;  %v486_v25 = vadd.f32 %v485_v23, %v405_v19 }
 0x109   : > { %v506_v26 = vadd.f32 %v505_v24, %v425_v20  ;;  %v3255_v24 = vmov (%p251_p0), 0.0  }
 0x10a   : > { %v557_v27 = vadd.f32 %v549_v5, %v486_v25  ;;  %v3257_v25 = vmov (%p251_p0), 0.0  }
 0x10b   : > { %v558_v28 = vadd.f32 %v550_v22, %v506_v26 }
 0x10c   : > { %v2251_v29 = vmul.f32 -1.442695, %v557_v27  ;;  %v445_v31 = vpop.f32.mrf.mxu2 }
 0x10d   : > { %v2252_v30 = vmul.f32 -1.442695, %v558_v28 }
 0x10e   : > { %2384 = vpow2.f32 %v2251_v29 }
 0x10f   : > { %v545_v33 = vpop.f32.mrf.mxu3  ;;  %2386 = vpow2.f32 %v2252_v30 }
 0x110   : > { %v546_v34 = vadd.f32 %v545_v33, %v465_v21 }
 0x112   : > { %v560_v35 = vadd.f32 %v552_v32, %v546_v34 }
 0x114   : > { %v2253_v36 = vmul.f32 -1.442695, %v560_v35  ;;  %v2385_v37 = vpop.eup %2384 }
 0x115   : > { %v2387_v38 = vpop.eup %2386  ;;  %v564_v39 = vadd.f32 1.0, %v2385_v37  ;;  %v525_v41 = vpop.f32.mrf.mxu2 }
 0x116   : > { %2388 = vpow2.f32 %v2253_v36  ;;  %v583_v40 = vadd.f32 1.0, %v2387_v38  ;;  %v526_v42 = vadd.f32 %v525_v41, %v445_v31 }
 0x117   : > { %2390 = vrcp.f32 %v564_v39  ;;  %v576_v53 = vand.u32 2147483648, %v564_v39  ;;  %v574_v56 = vand.u32 2147483647, %v564_v39  ;;  %vm570_vm2 = vweird.f32 %v564_v39 }
 0x118   : > { %2392 = vrcp.f32 %v583_v40  ;;  %v559_v47 = vadd.f32 %v551_v43, %v526_v42  ;;  %v595_v54 = vand.u32 2147483648, %v583_v40  ;;  %v593_v58 = vand.u32 2147483647, %v583_v40 }
 0x119   : > { %vm589_vm3 = vweird.f32 %v583_v40  ;;  %v577_v62 = vor.u32 1.1754944e-38, %v576_v53  ;;  %vm575_vm6 = vcmp.eq.f32.partialorder %v574_v56, 8.507059e+37 }
 0x11a   : > { %v596_v6 = vor.u32 1.1754944e-38, %v595_v54  ;;  %vm594_vm7 = vcmp.eq.f32.partialorder %v593_v58, 8.507059e+37 }
 0x11c   : > { %v2389_v44 = vpop.eup %2388 }
 0x11d   : > { %v603_v45 = vadd.f32 1.0, %v2389_v44  ;;  %v2391_v46 = vpop.eup %2390 }
 0x11e   : > { %v2393_v48 = vpop.eup %2392  ;;  %v566_v49 = vmul.f32 %v2391_v46, %v564_v39  ;;  %vm571_vm0 = vweird.f32 %v2391_v46 }
 0x11f   : > { %2394 = vrcp.f32 %v603_v45  ;;  %v585_v50 = vmul.f32 %v2393_v48, %v583_v40  ;;  %vm590_vm1 = vweird.f32 %v2393_v48  ;;  %vm572_vm4 = vmor %vm570_vm2, %vm571_vm0  ;;  %v615_v18 = vand.u32 2147483648, %v603_v45 }
 0x120   : > { %v567_v51 = vsub.f32 1.0, %v566_v49  ;;  %2396 = vtanh.f32 %v559_v47  ;;  %vm591_vm5 = vmor %vm589_vm3, %vm590_vm1  ;;  %vm609_vm9 = vweird.f32 %v603_v45  ;;  %v613_v19 = vand.u32 2147483647, %v603_v45 }
 0x121   : > { %v586_v52 = vsub.f32 1.0, %v585_v50  ;;  %v616_v21 = vor.u32 1.1754944e-38, %v615_v18 }
 0x122   : > { %v568_v55 = vmul.f32 %v2391_v46, %v567_v51  ;;  %vm614_vm11 = vcmp.eq.f32.partialorder %v613_v19, 8.507059e+37 }
 0x123   : > { %v587_v57 = vmul.f32 %v2393_v48, %v586_v52 }
 0x124   : > { %v569_v60 = vadd.f32 %v2391_v46, %v568_v55 }
 0x125   : > { %v2395_v59 = vpop.eup %2394  ;;  %v588_v63 = vadd.f32 %v2393_v48, %v587_v57 }
 0x126   : > { %v605_v61 = vmul.f32 %v2395_v59, %v603_v45  ;;  %v573_v7 = vsel %vm572_vm4, %v2391_v46, %v569_v60  ;;  %v2397_v8 = vpop.eup %2396  ;;  %vm610_vm8 = vweird.f32 %v2395_v59 }
 0x127   : > { %v578_v10 = vsel %vm575_vm6, %v577_v62, %v573_v7  ;;  %v592_v11 = vsel %vm591_vm5, %v2393_v48, %v588_v63  ;;  %vm611_vm10 = vmor %vm609_vm9, %vm610_vm8 }
 0x128   : > { %v606_v9 = vsub.f32 1.0, %v605_v61  ;;  %v597_v12 = vsel %vm594_vm7, %v596_v6, %v592_v11  ;;  %v620_v13 = vmul.f32 %v2397_v8, %v578_v10 }
 0x129   : > { %v619_v15 = vmul.f32 %v2952_v4, %v597_v12 }
 0x12a   : > { %v607_v14 = vmul.f32 %v2395_v59, %v606_v9 }
 0x12b   : > { %v3238_v4 = vadd.f32 %v620_v13, %v619_v15  }
 0x12c   : > { %v608_v17 = vadd.f32 %v2395_v59, %v607_v14 }
 0x12d   : > { %v3466_v16 = vmov %v3238_v4 }
 0x12e   : > { %2398 = vtanh.f32 %v3466_v16  ;;  %v612_v20 = vsel %vm611_vm10, %v2395_v59, %v608_v17  ;;  %v3468_v4 = vmov %v3466_v16 }
 0x12f   : > { %v617_v22 = vsel %vm614_vm11, %v616_v21, %v612_v20 }
 0x134   : > { %v2399_v5 = vpop.eup %2398  ;;  %253 = sbr.rel (!%p251_p0) target bundleno = 73 (0x49), region = 212 }
 0x135   : > { %v3241_v5 = vmul.f32 %v2399_v5, %v617_v22  }
 0x137   : > { %v3467_v23 = vmov %v3241_v5 }
 0x138   : > { %625 = vst [vmem:[%s624_s14] sm:$0xff] %v3467_v23  ;;  %v3469_v5 = vmov %v3467_v23 }
 0x139 LB: > { %v762_v26 = vld [vmem:[#allocation11 + $0x1e0] sm:$0xff]  ;;  %v763_v27 = vld [vmem:[#allocation11 + $0x1e8] sm:$0xff]  ;;  %v765_v28 = vld [vmem:[#allocation11 + $0x1f8] sm:$0xff]  ;;  %s634_s30 = ssub.s32 7, %s2972_s0  ;;  %s631_s0 = sadd.s32 1, %s2972_s0   ;;  %s2972_s0 = sphi %s3259_s0, %s631_s0   ;;  %v2968_v25 = vphi %v3257_v25, %v3473_v25   ;;  %v2964_v24 = vphi %v3255_v24, %v3472_v24  }
 0x13a   : > { %766 = vmatpush.msra.mxu0 %v762_v26  ;;  %786 = vmatpush.msra.mxu1 %v763_v27  ;;  %v758_v0 = vld [vmem:[#allocation11 + $0x1c0] sm:$0xff]  ;;  %v759_v4 = vld [vmem:[#allocation11 + $0x1c8] sm:$0xff]  ;;  %v761_v29 = vld [vmem:[#allocation11 + $0x1d8] sm:$0xff]  ;;  %s3274_s7 = sshll.u32 %s634_s30, 3  ;;  %p628_p1 = scmp.ge.s32.totalorder %s631_s0, 8  }
 0x13b   : > { %826 = vmatpush.msra.mxu3 %v765_v28  ;;  %v754_v30 = vld [vmem:[#allocation11 + $0x1a0] sm:$0xff]  ;;  %v755_v31 = vld [vmem:[#allocation11 + $0x1a8] sm:$0xff]  ;;  %v757_v32 = vld [vmem:[#allocation11 + $0x1b8] sm:$0xff]  ;;  %s636_s8 = scalar_lea.vmem [#allocation2], %s3274_s7  ;;  %s1002_s5 = scalar_lea.vmem [#allocation29], %s3274_s7 }
 0x13c   : > { %767 = vmatpush.msra.mxu0 %v758_v0  ;;  %787 = vmatpush.msra.mxu1 %v759_v4  ;;  %v750_v33 = vld [vmem:[#allocation11 + $0x180] sm:$0xff]  ;;  %v751_v34 = vld [vmem:[#allocation11 + $0x188] sm:$0xff]  ;;  %v764_v35 = vld [vmem:[#allocation11 + $0x1f0] sm:$0xff]  ;;  %s3303_s2 = smov (%p628_p1), 0  }
 0x13d   : > { %827 = vmatpush.msra.mxu3 %v761_v29  ;;  %v753_v36 = vld [vmem:[#allocation11 + $0x198] sm:$0xff]  ;;  %v760_v37 = vld [vmem:[#allocation11 + $0x1d0] sm:$0xff]  ;;  %806 = vmatpush.msra.mxu2 %v764_v35  ;;  %v746_v38 = vld [vmem:[#allocation11 + $0x160] sm:$0xff] }
 0x13e   : > { %768 = vmatpush.msra.mxu0 %v754_v30  ;;  %788 = vmatpush.msra.mxu1 %v755_v31  ;;  %v747_v39 = vld [vmem:[#allocation11 + $0x168] sm:$0xff]  ;;  %v749_v40 = vld [vmem:[#allocation11 + $0x178] sm:$0xff]  ;;  %v756_v41 = vld [vmem:[#allocation11 + $0x1b0] sm:$0xff] }
 0x13f   : > { %828 = vmatpush.msra.mxu3 %v757_v32  ;;  %807 = vmatpush.msra.mxu2 %v760_v37  ;;  %v742_v42 = vld [vmem:[#allocation11 + $0x140] sm:$0xff]  ;;  %v743_v43 = vld [vmem:[#allocation11 + $0x148] sm:$0xff]  ;;  %v745_v44 = vld [vmem:[#allocation11 + $0x158] sm:$0xff] }
 0x140   : > { %769 = vmatpush.msra.mxu0 %v750_v33  ;;  %789 = vmatpush.msra.mxu1 %v751_v34  ;;  %v752_v45 = vld [vmem:[#allocation11 + $0x190] sm:$0xff]  ;;  %v738_v46 = vld [vmem:[#allocation11 + $0x120] sm:$0xff]  ;;  %v739_v47 = vld [vmem:[#allocation11 + $0x128] sm:$0xff] }
 0x141   : > { %829 = vmatpush.msra.mxu3 %v753_v36  ;;  %808 = vmatpush.msra.mxu2 %v756_v41  ;;  %v741_v48 = vld [vmem:[#allocation11 + $0x138] sm:$0xff]  ;;  %v748_v49 = vld [vmem:[#allocation11 + $0x170] sm:$0xff]  ;;  %v734_v50 = vld [vmem:[#allocation11 + $0x100] sm:$0xff] }
 0x142   : > { %770 = vmatpush.msra.mxu0 %v746_v38  ;;  %790 = vmatpush.msra.mxu1 %v747_v39  ;;  %v735_v51 = vld [vmem:[#allocation11 + $0x108] sm:$0xff]  ;;  %v737_v52 = vld [vmem:[#allocation11 + $0x118] sm:$0xff]  ;;  %v744_v53 = vld [vmem:[#allocation11 + $0x150] sm:$0xff] }
 0x143   : > { %830 = vmatpush.msra.mxu3 %v749_v40  ;;  %809 = vmatpush.msra.mxu2 %v752_v45  ;;  %v730_v54 = vld [vmem:[#allocation11 + $0xe0] sm:$0xff]  ;;  %v731_v55 = vld [vmem:[#allocation11 + $0xe8] sm:$0xff]  ;;  %v733_v56 = vld [vmem:[#allocation11 + $0xf8] sm:$0xff] }
 0x144   : > { %771 = vmatpush.msra.mxu0 %v742_v42  ;;  %791 = vmatpush.msra.mxu1 %v743_v43  ;;  %v740_v57 = vld [vmem:[#allocation11 + $0x130] sm:$0xff]  ;;  %v726_v58 = vld [vmem:[#allocation11 + $0xc0] sm:$0xff]  ;;  %v727_v59 = vld [vmem:[#allocation11 + $0xc8] sm:$0xff] }
 0x145   : > { %831 = vmatpush.msra.mxu3 %v745_v44  ;;  %810 = vmatpush.msra.mxu2 %v748_v49  ;;  %v729_v60 = vld [vmem:[#allocation11 + $0xd8] sm:$0xff]  ;;  %v736_v61 = vld [vmem:[#allocation11 + $0x110] sm:$0xff]  ;;  %v722_v62 = vld [vmem:[#allocation11 + $0xa0] sm:$0xff] }
 0x146   : > { %772 = vmatpush.msra.mxu0 %v738_v46  ;;  %792 = vmatpush.msra.mxu1 %v739_v47  ;;  %v723_v63 = vld [vmem:[#allocation11 + $0xa8] sm:$0xff]  ;;  %v725_v6 = vld [vmem:[#allocation11 + $0xb8] sm:$0xff]  ;;  %v732_v7 = vld [vmem:[#allocation11 + $0xf0] sm:$0xff] }
 0x147   : > { %832 = vmatpush.msra.mxu3 %v741_v48  ;;  %811 = vmatpush.msra.mxu2 %v744_v53  ;;  %v718_v8 = vld [vmem:[#allocation11 + $0x80] sm:$0xff]  ;;  %v719_v9 = vld [vmem:[#allocation11 + $0x88] sm:$0xff]  ;;  %v721_v10 = vld [vmem:[#allocation11 + $0x98] sm:$0xff] }
 0x148   : > { %773 = vmatpush.msra.mxu0 %v734_v50  ;;  %793 = vmatpush.msra.mxu1 %v735_v51  ;;  %v728_v11 = vld [vmem:[#allocation11 + $0xd0] sm:$0xff]  ;;  %v714_v12 = vld [vmem:[#allocation11 + $0x60] sm:$0xff]  ;;  %v715_v13 = vld [vmem:[#allocation11 + $0x68] sm:$0xff] }
 0x149   : > { %833 = vmatpush.msra.mxu3 %v737_v52  ;;  %812 = vmatpush.msra.mxu2 %v740_v57  ;;  %v717_v14 = vld [vmem:[#allocation11 + $0x78] sm:$0xff]  ;;  %v724_v15 = vld [vmem:[#allocation11 + $0xb0] sm:$0xff]  ;;  %v710_v17 = vld [vmem:[#allocation11 + $0x40] sm:$0xff] }
 0x14a   : > { %774 = vmatpush.msra.mxu0 %v730_v54  ;;  %794 = vmatpush.msra.mxu1 %v731_v55  ;;  %v711_v18 = vld [vmem:[#allocation11 + $0x48] sm:$0xff]  ;;  %v713_v19 = vld [vmem:[#allocation11 + $0x58] sm:$0xff]  ;;  %v720_v20 = vld [vmem:[#allocation11 + $0x90] sm:$0xff] }
 0x14b   : > { %834 = vmatpush.msra.mxu3 %v733_v56  ;;  %813 = vmatpush.msra.mxu2 %v736_v61  ;;  %v706_v21 = vld [vmem:[#allocation11 + $0x20] sm:$0xff]  ;;  %v707_v5 = vld [vmem:[#allocation11 + $0x28] sm:$0xff]  ;;  %v709_v22 = vld [vmem:[#allocation11 + $0x38] sm:$0xff] }
 0x14c   : > { %775 = vmatpush.msra.mxu0 %v726_v58  ;;  %795 = vmatpush.msra.mxu1 %v727_v59  ;;  %v716_v26 = vld [vmem:[#allocation11 + $0x70] sm:$0xff]  ;;  %v702_v27 = vld [vmem:[#allocation11] sm:$0xff]  ;;  %v703_v28 = vld [vmem:[#allocation11 + $0x8] sm:$0xff] }
 0x14d   : > { %835 = vmatpush.msra.mxu3 %v729_v60  ;;  %814 = vmatpush.msra.mxu2 %v732_v7  ;;  %v705_v0 = vld [vmem:[#allocation11 + $0x18] sm:$0xff]  ;;  %v698_v4 = vld [vmem:[#allocation10 + $0x1e0] sm:$0xff]  ;;  %v699_v29 = vld [vmem:[#allocation10 + $0x1e8] sm:$0xff] }
 0x14e   : > { %776 = vmatpush.msra.mxu0 %v722_v62  ;;  %796 = vmatpush.msra.mxu1 %v723_v63  ;;  %v701_v30 = vld [vmem:[#allocation10 + $0x1f8] sm:$0xff]  ;;  %v712_v31 = vld [vmem:[#allocation11 + $0x50] sm:$0xff]  ;;  %v694_v32 = vld [vmem:[#allocation10 + $0x1c0] sm:$0xff] }
 0x14f   : > { %836 = vmatpush.msra.mxu3 %v725_v6  ;;  %815 = vmatpush.msra.mxu2 %v728_v11  ;;  %v695_v33 = vld [vmem:[#allocation10 + $0x1c8] sm:$0xff]  ;;  %v697_v34 = vld [vmem:[#allocation10 + $0x1d8] sm:$0xff]  ;;  %v708_v35 = vld [vmem:[#allocation11 + $0x30] sm:$0xff] }
 0x150   : > { %777 = vmatpush.msra.mxu0 %v718_v8  ;;  %797 = vmatpush.msra.mxu1 %v719_v9  ;;  %v690_v36 = vld [vmem:[#allocation10 + $0x1a0] sm:$0xff]  ;;  %v691_v37 = vld [vmem:[#allocation10 + $0x1a8] sm:$0xff]  ;;  %v693_v38 = vld [vmem:[#allocation10 + $0x1b8] sm:$0xff] }
 0x151   : > { %837 = vmatpush.msra.mxu3 %v721_v10  ;;  %816 = vmatpush.msra.mxu2 %v724_v15  ;;  %v704_v39 = vld [vmem:[#allocation11 + $0x10] sm:$0xff]  ;;  %v686_v40 = vld [vmem:[#allocation10 + $0x180] sm:$0xff]  ;;  %v687_v41 = vld [vmem:[#allocation10 + $0x188] sm:$0xff] }
 0x152   : > { %778 = vmatpush.msra.mxu0 %v714_v12  ;;  %798 = vmatpush.msra.mxu1 %v715_v13  ;;  %v689_v42 = vld [vmem:[#allocation10 + $0x198] sm:$0xff]  ;;  %v700_v43 = vld [vmem:[#allocation10 + $0x1f0] sm:$0xff]  ;;  %v682_v44 = vld [vmem:[#allocation10 + $0x160] sm:$0xff] }
 0x153   : > { %838 = vmatpush.msra.mxu3 %v717_v14  ;;  %817 = vmatpush.msra.mxu2 %v720_v20  ;;  %v683_v45 = vld [vmem:[#allocation10 + $0x168] sm:$0xff]  ;;  %v685_v46 = vld [vmem:[#allocation10 + $0x178] sm:$0xff]  ;;  %v696_v47 = vld [vmem:[#allocation10 + $0x1d0] sm:$0xff] }
 0x154   : > { %779 = vmatpush.msra.mxu0 %v710_v17  ;;  %799 = vmatpush.msra.mxu1 %v711_v18  ;;  %v678_v48 = vld [vmem:[#allocation10 + $0x140] sm:$0xff]  ;;  %v679_v49 = vld [vmem:[#allocation10 + $0x148] sm:$0xff]  ;;  %v681_v50 = vld [vmem:[#allocation10 + $0x158] sm:$0xff] }
 0x155   : > { %839 = vmatpush.msra.mxu3 %v713_v19  ;;  %818 = vmatpush.msra.mxu2 %v716_v26  ;;  %v692_v51 = vld [vmem:[#allocation10 + $0x1b0] sm:$0xff]  ;;  %v674_v52 = vld [vmem:[#allocation10 + $0x120] sm:$0xff]  ;;  %v675_v53 = vld [vmem:[#allocation10 + $0x128] sm:$0xff] }
 0x156   : > { %780 = vmatpush.msra.mxu0 %v706_v21  ;;  %800 = vmatpush.msra.mxu1 %v707_v5  ;;  %v677_v54 = vld [vmem:[#allocation10 + $0x138] sm:$0xff]  ;;  %v688_v55 = vld [vmem:[#allocation10 + $0x190] sm:$0xff]  ;;  %v670_v56 = vld [vmem:[#allocation10 + $0x100] sm:$0xff] }
 0x157   : > { %840 = vmatpush.msra.mxu3 %v709_v22  ;;  %819 = vmatpush.msra.mxu2 %v712_v31  ;;  %v671_v57 = vld [vmem:[#allocation10 + $0x108] sm:$0xff]  ;;  %v673_v58 = vld [vmem:[#allocation10 + $0x118] sm:$0xff]  ;;  %v684_v59 = vld [vmem:[#allocation10 + $0x170] sm:$0xff] }
 0x158   : > { %781 = vmatpush.msra.mxu0 %v702_v27  ;;  %801 = vmatpush.msra.mxu1 %v703_v28  ;;  %v666_v60 = vld [vmem:[#allocation10 + $0xe0] sm:$0xff]  ;;  %v667_v61 = vld [vmem:[#allocation10 + $0xe8] sm:$0xff]  ;;  %v669_v62 = vld [vmem:[#allocation10 + $0xf8] sm:$0xff] }
 0x159   : > { %841 = vmatpush.msra.mxu3 %v705_v0  ;;  %820 = vmatpush.msra.mxu2 %v708_v35  ;;  %v680_v63 = vld [vmem:[#allocation10 + $0x150] sm:$0xff]  ;;  %v662_v6 = vld [vmem:[#allocation10 + $0xc0] sm:$0xff]  ;;  %v663_v7 = vld [vmem:[#allocation10 + $0xc8] sm:$0xff] }
 0x15a   : > { %846 = vmatpush.msrb.mxu0 %v698_v4  ;;  %866 = vmatpush.msrb.mxu1 %v699_v29  ;;  %v665_v8 = vld [vmem:[#allocation10 + $0xd8] sm:$0xff]  ;;  %v676_v9 = vld [vmem:[#allocation10 + $0x130] sm:$0xff]  ;;  %v658_v10 = vld [vmem:[#allocation10 + $0xa0] sm:$0xff] }
 0x15b   : > { %906 = vmatpush.msrb.mxu3 %v701_v30  ;;  %821 = vmatpush.msra.mxu2 %v704_v39  ;;  %v659_v11 = vld [vmem:[#allocation10 + $0xa8] sm:$0xff]  ;;  %v661_v12 = vld [vmem:[#allocation10 + $0xb8] sm:$0xff]  ;;  %v672_v13 = vld [vmem:[#allocation10 + $0x110] sm:$0xff] }
 0x15c   : > { %847 = vmatpush.msrb.mxu0 %v694_v32  ;;  %867 = vmatpush.msrb.mxu1 %v695_v33  ;;  %v654_v14 = vld [vmem:[#allocation10 + $0x80] sm:$0xff]  ;;  %v655_v15 = vld [vmem:[#allocation10 + $0x88] sm:$0xff]  ;;  %v657_v17 = vld [vmem:[#allocation10 + $0x98] sm:$0xff] }
 0x15d   : > { %907 = vmatpush.msrb.mxu3 %v697_v34  ;;  %886 = vmatpush.msrb.mxu2 %v700_v43  ;;  %v668_v18 = vld [vmem:[#allocation10 + $0xf0] sm:$0xff]  ;;  %v650_v19 = vld [vmem:[#allocation10 + $0x60] sm:$0xff]  ;;  %v651_v20 = vld [vmem:[#allocation10 + $0x68] sm:$0xff] }
 0x15e   : > { %848 = vmatpush.msrb.mxu0 %v690_v36  ;;  %868 = vmatpush.msrb.mxu1 %v691_v37  ;;  %v653_v21 = vld [vmem:[#allocation10 + $0x78] sm:$0xff]  ;;  %v664_v5 = vld [vmem:[#allocation10 + $0xd0] sm:$0xff]  ;;  %v646_v22 = vld [vmem:[#allocation10 + $0x40] sm:$0xff] }
 0x15f   : > { %908 = vmatpush.msrb.mxu3 %v693_v38  ;;  %887 = vmatpush.msrb.mxu2 %v696_v47  ;;  %v647_v26 = vld [vmem:[#allocation10 + $0x48] sm:$0xff]  ;;  %v649_v27 = vld [vmem:[#allocation10 + $0x58] sm:$0xff]  ;;  %v660_v28 = vld [vmem:[#allocation10 + $0xb0] sm:$0xff] }
 0x160   : > { %849 = vmatpush.msrb.mxu0 %v686_v40  ;;  %869 = vmatpush.msrb.mxu1 %v687_v41  ;;  %v642_v0 = vld [vmem:[#allocation10 + $0x20] sm:$0xff]  ;;  %v643_v4 = vld [vmem:[#allocation10 + $0x28] sm:$0xff]  ;;  %v645_v29 = vld [vmem:[#allocation10 + $0x38] sm:$0xff] }
 0x161   : > { %909 = vmatpush.msrb.mxu3 %v689_v42  ;;  %888 = vmatpush.msrb.mxu2 %v692_v51  ;;  %v656_v30 = vld [vmem:[#allocation10 + $0x90] sm:$0xff]  ;;  %v638_v31 = vld [vmem:[#allocation10] sm:$0xff]  ;;  %v639_v32 = vld [vmem:[#allocation10 + $0x8] sm:$0xff]  ;;  %v928_v42 = vperm.slane %v3199_v1, 1 }
 0x162   : > { %850 = vmatpush.msrb.mxu0 %v682_v44  ;;  %870 = vmatpush.msrb.mxu1 %v683_v45  ;;  %v641_v33 = vld [vmem:[#allocation10 + $0x18] sm:$0xff]  ;;  %v652_v35 = vld [vmem:[#allocation10 + $0x70] sm:$0xff] }
 0x163   : > { %910 = vmatpush.msrb.mxu3 %v685_v46  ;;  %889 = vmatpush.msrb.mxu2 %v688_v55  ;;  %v637_v34 = vld [vmem:[%s636_s8] sm:$0xff]  ;;  %v648_v36 = vld [vmem:[#allocation10 + $0x50] sm:$0xff] }
 0x164   : > { %851 = vmatpush.msrb.mxu0 %v678_v48  ;;  %871 = vmatpush.msrb.mxu1 %v679_v49  ;;  %v644_v37 = vld [vmem:[#allocation10 + $0x30] sm:$0xff] }
 0x165   : > { %911 = vmatpush.msrb.mxu3 %v681_v50  ;;  %890 = vmatpush.msrb.mxu2 %v684_v59  ;;  %v640_v38 = vld [vmem:[#allocation10 + $0x10] sm:$0xff] }
 0x166   : > { %852 = vmatpush.msrb.mxu0 %v674_v52  ;;  %872 = vmatpush.msrb.mxu1 %v675_v53  ;;  %v930_v52 = vperm.slane %v3199_v1, 3 }
 0x167   : > { %912 = vmatpush.msrb.mxu3 %v677_v54  ;;  %891 = vmatpush.msrb.mxu2 %v680_v63  ;;  %v929_v63 = vperm.slane %v3199_v1, 2 }
 0x168   : > { %853 = vmatpush.msrb.mxu0 %v670_v56  ;;  %873 = vmatpush.msrb.mxu1 %v671_v57 }
 0x169   : > { %913 = vmatpush.msrb.mxu3 %v673_v58  ;;  %892 = vmatpush.msrb.mxu2 %v676_v9 }
 0x16a   : > { %854 = vmatpush.msrb.mxu0 %v666_v60  ;;  %874 = vmatpush.msrb.mxu1 %v667_v61 }
 0x16b   : > { %914 = vmatpush.msrb.mxu3 %v669_v62  ;;  %893 = vmatpush.msrb.mxu2 %v672_v13 }
 0x16c   : > { %855 = vmatpush.msrb.mxu0 %v662_v6  ;;  %875 = vmatpush.msrb.mxu1 %v663_v7 }
 0x16d   : > { %915 = vmatpush.msrb.mxu3 %v665_v8  ;;  %782 = vmatmul.f32.vlgmr.msra.gmra.mxu0 %v2968_v25 }
 0x16e   : > { %856 = vmatpush.msrb.mxu0 %v658_v10  ;;  %876 = vmatpush.msrb.mxu1 %v659_v11 }
 0x16f   : > { %916 = vmatpush.msrb.mxu3 %v661_v12  ;;  %802 = vmatmul.f32.vlgmr.msra.gmra.mxu1 %v2968_v25 }
 0x170   : > { %857 = vmatpush.msrb.mxu0 %v654_v14  ;;  %877 = vmatpush.msrb.mxu1 %v655_v15 }
 0x171   : > { %917 = vmatpush.msrb.mxu3 %v657_v17  ;;  %894 = vmatpush.msrb.mxu2 %v668_v18 }
 0x172   : > { %842 = vmatmul.f32.vlgmr.msra.gmra.mxu3 %v2968_v25  ;;  %858 = vmatpush.msrb.mxu0 %v650_v19 }
 0x173   : > { %878 = vmatpush.msrb.mxu1 %v651_v20  ;;  %918 = vmatpush.msrb.mxu3 %v653_v21 }
 0x174   : > { %895 = vmatpush.msrb.mxu2 %v664_v5  ;;  %859 = vmatpush.msrb.mxu0 %v646_v22 }
 0x175   : > { %879 = vmatpush.msrb.mxu1 %v647_v26  ;;  %919 = vmatpush.msrb.mxu3 %v649_v27 }
 0x176   : > { %896 = vmatpush.msrb.mxu2 %v660_v28  ;;  %860 = vmatpush.msrb.mxu0 %v642_v0 }
 0x177   : > { %880 = vmatpush.msrb.mxu1 %v643_v4  ;;  %920 = vmatpush.msrb.mxu3 %v645_v29 }
 0x178   : > { %897 = vmatpush.msrb.mxu2 %v656_v30  ;;  %861 = vmatpush.msrb.mxu0 %v638_v31 }
 0x179   : > { %822 = vmatmul.f32.vlgmr.msra.gmra.mxu2 %v2968_v25  ;;  %881 = vmatpush.msrb.mxu1 %v639_v32  ;;  %v927_v25 = vperm.slane %v3199_v1, 0 }
 0x17a   : > { %921 = vmatpush.msrb.mxu3 %v641_v33  ;;  %862 = vmatmul.f32.vlgmr.msrb.gmra.mxu0 %v637_v34 }
 0x17b   : > { %882 = vmatmul.f32.vlgmr.msrb.gmra.mxu1 %v637_v34  ;;  %898 = vmatpush.msrb.mxu2 %v652_v35 }
 0x17c   : > { %922 = vmatmul.f32.vlgmr.msrb.gmra.mxu3 %v637_v34 }
 0x17d   : > { %899 = vmatpush.msrb.mxu2 %v648_v36 }
 0x17f   : > { %900 = vmatpush.msrb.mxu2 %v644_v37 }
 0x181   : > { %901 = vmatpush.msrb.mxu2 %v640_v38 }
 0x182   : > { %902 = vmatmul.f32.vlgmr.msrb.gmra.mxu2 %v637_v34 }
 0x1ea   : > { %v783_v39 = vpop.f32.mrf.mxu0 }
 0x1ec   : > { %v803_v40 = vpop.f32.mrf.mxu1 }
 0x1f5   : > { %v843_v41 = vpop.f32.mrf.mxu3 }
 0x1f7   : > { %v863_v43 = vpop.f32.mrf.mxu0 }
 0x1f8   : > { %v883_v44 = vpop.f32.mrf.mxu1  ;;  %v864_v45 = vadd.f32 %v863_v43, %v783_v39 }
 0x1f9   : > { %v884_v46 = vadd.f32 %v883_v44, %v803_v40 }
 0x1fa   : > { %v935_v47 = vadd.f32 %v927_v25, %v864_v45  ;;  %v3299_v45 = vmov (%p628_p1), 0.0  }
 0x1fb   : > { %v936_v48 = vadd.f32 %v928_v42, %v884_v46  ;;  %v3301_v46 = vmov (%p628_p1), 0.0  }
 0x1fc   : > { %v2255_v49 = vmul.f32 -1.442695, %v935_v47  ;;  %v823_v51 = vpop.f32.mrf.mxu2 }
 0x1fd   : > { %v2256_v50 = vmul.f32 -1.442695, %v936_v48 }
 0x1fe   : > { %2400 = vpow2.f32 %v2255_v49 }
 0x1ff   : > { %v923_v53 = vpop.f32.mrf.mxu3  ;;  %2402 = vpow2.f32 %v2256_v50 }
 0x200   : > { %v924_v54 = vadd.f32 %v923_v53, %v843_v41 }
 0x202   : > { %v938_v55 = vadd.f32 %v930_v52, %v924_v54 }
 0x204   : > { %v2257_v56 = vmul.f32 -1.442695, %v938_v55  ;;  %v2401_v57 = vpop.eup %2400 }
 0x205   : > { %v2403_v58 = vpop.eup %2402  ;;  %v942_v59 = vadd.f32 1.0, %v2401_v57  ;;  %v903_v61 = vpop.f32.mrf.mxu2 }
 0x206   : > { %2404 = vpow2.f32 %v2257_v56  ;;  %v961_v60 = vadd.f32 1.0, %v2403_v58  ;;  %v904_v62 = vadd.f32 %v903_v61, %v823_v51 }
 0x207   : > { %2406 = vrcp.f32 %v942_v59  ;;  %v954_v15 = vand.u32 2147483648, %v942_v59  ;;  %v952_v19 = vand.u32 2147483647, %v942_v59  ;;  %vm948_vm14 = vweird.f32 %v942_v59 }
 0x208   : > { %2408 = vrcp.f32 %v961_v60  ;;  %v937_v9 = vadd.f32 %v929_v63, %v904_v62  ;;  %v973_v17 = vand.u32 2147483648, %v961_v60  ;;  %v971_v21 = vand.u32 2147483647, %v961_v60 }
 0x209   : > { %vm967_vm15 = vweird.f32 %v961_v60  ;;  %v955_v27 = vor.u32 1.1754944e-38, %v954_v15  ;;  %vm953_vm2 = vcmp.eq.f32.partialorder %v952_v19, 8.507059e+37 }
 0x20a   : > { %v974_v0 = vor.u32 1.1754944e-38, %v973_v17  ;;  %vm972_vm3 = vcmp.eq.f32.partialorder %v971_v21, 8.507059e+37 }
 0x20c   : > { %v2405_v6 = vpop.eup %2404 }
 0x20d   : > { %v981_v7 = vadd.f32 1.0, %v2405_v6  ;;  %v2407_v8 = vpop.eup %2406 }
 0x20e   : > { %v2409_v10 = vpop.eup %2408  ;;  %v944_v11 = vmul.f32 %v2407_v8, %v942_v59  ;;  %vm949_vm12 = vweird.f32 %v2407_v8 }
 0x20f   : > { %2410 = vrcp.f32 %v981_v7  ;;  %v963_v12 = vmul.f32 %v2409_v10, %v961_v60  ;;  %vm968_vm13 = vweird.f32 %v2409_v10  ;;  %vm950_vm0 = vmor %vm948_vm14, %vm949_vm12  ;;  %v993_v39 = vand.u32 2147483648, %v981_v7 }
 0x210   : > { %v945_v13 = vsub.f32 1.0, %v944_v11  ;;  %2412 = vtanh.f32 %v937_v9  ;;  %vm969_vm1 = vmor %vm967_vm15, %vm968_vm13  ;;  %vm987_vm5 = vweird.f32 %v981_v7  ;;  %v991_v40 = vand.u32 2147483647, %v981_v7 }
 0x211   : > { %v964_v14 = vsub.f32 1.0, %v963_v12  ;;  %v994_v25 = vor.u32 1.1754944e-38, %v993_v39 }
 0x212   : > { %v946_v18 = vmul.f32 %v2407_v8, %v945_v13  ;;  %vm992_vm7 = vcmp.eq.f32.partialorder %v991_v40, 8.507059e+37 }
 0x213   : > { %v965_v20 = vmul.f32 %v2409_v10, %v964_v14 }
 0x214   : > { %v947_v22 = vadd.f32 %v2407_v8, %v946_v18 }
 0x215   : > { %v2411_v5 = vpop.eup %2410  ;;  %v966_v28 = vadd.f32 %v2409_v10, %v965_v20 }
 0x216   : > { %v983_v26 = vmul.f32 %v2411_v5, %v981_v7  ;;  %v951_v4 = vsel %vm950_vm0, %v2407_v8, %v947_v22  ;;  %v2413_v29 = vpop.eup %2412  ;;  %vm988_vm4 = vweird.f32 %v2411_v5 }
 0x217   : > { %v956_v31 = vsel %vm953_vm2, %v955_v27, %v951_v4  ;;  %v970_v32 = vsel %vm969_vm1, %v2409_v10, %v966_v28  ;;  %vm989_vm6 = vmor %vm987_vm5, %vm988_vm4 }
 0x218   : > { %v984_v30 = vsub.f32 1.0, %v983_v26  ;;  %v975_v33 = vsel %vm972_vm3, %v974_v0, %v970_v32  ;;  %v998_v34 = vmul.f32 %v2413_v29, %v956_v31 }
 0x219   : > { %v997_v36 = vmul.f32 %v2964_v24, %v975_v33 }
 0x21a   : > { %v985_v35 = vmul.f32 %v2411_v5, %v984_v30 }
 0x21b   : > { %v3283_v24 = vadd.f32 %v998_v34, %v997_v36  }
 0x21c   : > { %v986_v38 = vadd.f32 %v2411_v5, %v985_v35 }
 0x21d   : > { %v3470_v37 = vmov %v3283_v24 }
 0x21e   : > { %2414 = vtanh.f32 %v3470_v37  ;;  %v990_v41 = vsel %vm989_vm6, %v2411_v5, %v986_v38  ;;  %v3472_v24 = vmov %v3470_v37 }
 0x21f   : > { %v995_v43 = vsel %vm992_vm7, %v994_v25, %v990_v41 }
 0x224   : > { %v2415_v42 = vpop.eup %2414  ;;  %630 = sbr.rel (!%p628_p1) target bundleno = 313 (0x139), region = 223 }
 0x225   : > { %v3286_v25 = vmul.f32 %v2415_v42, %v995_v43  }
 0x227   : > { %v3471_v44 = vmov %v3286_v25 }
 0x228   : > { %1003 = vst [vmem:[%s1002_s5] sm:$0xff] %v3471_v44  ;;  %v3473_v25 = vmov %v3471_v44 }
 0x229 LB: > { %v1141_v47 = vld [vmem:[#allocation14 + $0x1e0] sm:$0xff]  ;;  %v1142_v48 = vld [vmem:[#allocation14 + $0x1e8] sm:$0xff]  ;;  %v1143_v49 = vld [vmem:[#allocation14 + $0x1f0] sm:$0xff]  ;;  %s3315_s9 = sshll.u32 %s2984_s2, 3  ;;  %s1009_s2 = sadd.s32 1, %s2984_s2   ;;  %s2984_s2 = sphi %s3303_s2, %s1009_s2   ;;  %v2980_v46 = vphi %v3301_v46, %v3477_v46   ;;  %v2976_v45 = vphi %v3299_v45, %v3476_v45  }
 0x22a   : > { %1145 = vmatpush.msra.mxu0 %v1141_v47  ;;  %1165 = vmatpush.msra.mxu1 %v1142_v48  ;;  %v1144_v1 = vld [vmem:[#allocation14 + $0x1f8] sm:$0xff]  ;;  %v1137_v24 = vld [vmem:[#allocation14 + $0x1c0] sm:$0xff]  ;;  %v1138_v50 = vld [vmem:[#allocation14 + $0x1c8] sm:$0xff]  ;;  %s1079_s23 = scalar_lea.vmem [#allocation29], %s3315_s9  ;;  %s1013_s22 = scalar_lea.vmem [#allocation28], %s3315_s9 }
 0x22b   : > { %1185 = vmatpush.msra.mxu2 %v1143_v49  ;;  %1205 = vmatpush.msra.mxu3 %v1144_v1  ;;  %v1139_v51 = vld [vmem:[#allocation14 + $0x1d0] sm:$0xff]  ;;  %v1140_v52 = vld [vmem:[#allocation14 + $0x1d8] sm:$0xff]  ;;  %v1133_v53 = vld [vmem:[#allocation14 + $0x1a0] sm:$0xff]  ;;  %s1529_s1 = scalar_lea.vmem [#allocation22], %s3315_s9  ;;  %p1006_p2 = scmp.ge.s32.totalorder %s1009_s2, 8  }
 0x22c   : > { %1146 = vmatpush.msra.mxu0 %v1137_v24  ;;  %1166 = vmatpush.msra.mxu1 %v1138_v50  ;;  %v1134_v54 = vld [vmem:[#allocation14 + $0x1a8] sm:$0xff]  ;;  %v1135_v55 = vld [vmem:[#allocation14 + $0x1b0] sm:$0xff]  ;;  %v1136_v56 = vld [vmem:[#allocation14 + $0x1b8] sm:$0xff]  ;;  %s3354_s11 = smov (%p1006_p2), 0  }
 0x22d   : > { %1186 = vmatpush.msra.mxu2 %v1139_v51  ;;  %1206 = vmatpush.msra.mxu3 %v1140_v52  ;;  %v1129_v57 = vld [vmem:[#allocation14 + $0x180] sm:$0xff]  ;;  %v1130_v58 = vld [vmem:[#allocation14 + $0x188] sm:$0xff]  ;;  %v1131_v59 = vld [vmem:[#allocation14 + $0x190] sm:$0xff] }
 0x22e   : > { %1147 = vmatpush.msra.mxu0 %v1133_v53  ;;  %1167 = vmatpush.msra.mxu1 %v1134_v54  ;;  %v1132_v60 = vld [vmem:[#allocation14 + $0x198] sm:$0xff]  ;;  %v1125_v61 = vld [vmem:[#allocation14 + $0x160] sm:$0xff]  ;;  %v1126_v62 = vld [vmem:[#allocation14 + $0x168] sm:$0xff] }
 0x22f   : > { %1187 = vmatpush.msra.mxu2 %v1135_v55  ;;  %1207 = vmatpush.msra.mxu3 %v1136_v56  ;;  %v1127_v63 = vld [vmem:[#allocation14 + $0x170] sm:$0xff]  ;;  %v1128_v6 = vld [vmem:[#allocation14 + $0x178] sm:$0xff]  ;;  %v1121_v7 = vld [vmem:[#allocation14 + $0x140] sm:$0xff] }
 0x230   : > { %1148 = vmatpush.msra.mxu0 %v1129_v57  ;;  %1168 = vmatpush.msra.mxu1 %v1130_v58  ;;  %v1122_v8 = vld [vmem:[#allocation14 + $0x148] sm:$0xff]  ;;  %v1123_v9 = vld [vmem:[#allocation14 + $0x150] sm:$0xff]  ;;  %v1124_v10 = vld [vmem:[#allocation14 + $0x158] sm:$0xff] }
 0x231   : > { %1188 = vmatpush.msra.mxu2 %v1131_v59  ;;  %1208 = vmatpush.msra.mxu3 %v1132_v60  ;;  %v1117_v11 = vld [vmem:[#allocation14 + $0x120] sm:$0xff]  ;;  %v1118_v12 = vld [vmem:[#allocation14 + $0x128] sm:$0xff]  ;;  %v1119_v13 = vld [vmem:[#allocation14 + $0x130] sm:$0xff] }
 0x232   : > { %1149 = vmatpush.msra.mxu0 %v1125_v61  ;;  %1169 = vmatpush.msra.mxu1 %v1126_v62  ;;  %v1120_v14 = vld [vmem:[#allocation14 + $0x138] sm:$0xff]  ;;  %v1113_v15 = vld [vmem:[#allocation14 + $0x100] sm:$0xff]  ;;  %v1114_v17 = vld [vmem:[#allocation14 + $0x108] sm:$0xff] }
 0x233   : > { %1189 = vmatpush.msra.mxu2 %v1127_v63  ;;  %1209 = vmatpush.msra.mxu3 %v1128_v6  ;;  %v1115_v18 = vld [vmem:[#allocation14 + $0x110] sm:$0xff]  ;;  %v1116_v19 = vld [vmem:[#allocation14 + $0x118] sm:$0xff]  ;;  %v1109_v20 = vld [vmem:[#allocation14 + $0xe0] sm:$0xff] }
 0x234   : > { %1150 = vmatpush.msra.mxu0 %v1121_v7  ;;  %1170 = vmatpush.msra.mxu1 %v1122_v8  ;;  %v1110_v21 = vld [vmem:[#allocation14 + $0xe8] sm:$0xff]  ;;  %v1111_v5 = vld [vmem:[#allocation14 + $0xf0] sm:$0xff]  ;;  %v1112_v22 = vld [vmem:[#allocation14 + $0xf8] sm:$0xff] }
 0x235   : > { %1190 = vmatpush.msra.mxu2 %v1123_v9  ;;  %1210 = vmatpush.msra.mxu3 %v1124_v10  ;;  %v1105_v26 = vld [vmem:[#allocation14 + $0xc0] sm:$0xff]  ;;  %v1106_v27 = vld [vmem:[#allocation14 + $0xc8] sm:$0xff]  ;;  %v1107_v28 = vld [vmem:[#allocation14 + $0xd0] sm:$0xff] }
 0x236   : > { %1151 = vmatpush.msra.mxu0 %v1117_v11  ;;  %1171 = vmatpush.msra.mxu1 %v1118_v12  ;;  %v1108_v0 = vld [vmem:[#allocation14 + $0xd8] sm:$0xff]  ;;  %v1101_v4 = vld [vmem:[#allocation14 + $0xa0] sm:$0xff]  ;;  %v1102_v29 = vld [vmem:[#allocation14 + $0xa8] sm:$0xff] }
 0x237   : > { %1191 = vmatpush.msra.mxu2 %v1119_v13  ;;  %1211 = vmatpush.msra.mxu3 %v1120_v14  ;;  %v1103_v30 = vld [vmem:[#allocation14 + $0xb0] sm:$0xff]  ;;  %v1104_v31 = vld [vmem:[#allocation14 + $0xb8] sm:$0xff]  ;;  %v1097_v32 = vld [vmem:[#allocation14 + $0x80] sm:$0xff] }
 0x238   : > { %1152 = vmatpush.msra.mxu0 %v1113_v15  ;;  %1172 = vmatpush.msra.mxu1 %v1114_v17  ;;  %v1098_v33 = vld [vmem:[#allocation14 + $0x88] sm:$0xff]  ;;  %v1099_v34 = vld [vmem:[#allocation14 + $0x90] sm:$0xff]  ;;  %v1100_v35 = vld [vmem:[#allocation14 + $0x98] sm:$0xff] }
 0x239   : > { %1192 = vmatpush.msra.mxu2 %v1115_v18  ;;  %1212 = vmatpush.msra.mxu3 %v1116_v19  ;;  %v1093_v36 = vld [vmem:[#allocation14 + $0x60] sm:$0xff]  ;;  %v1094_v38 = vld [vmem:[#allocation14 + $0x68] sm:$0xff]  ;;  %v1095_v39 = vld [vmem:[#allocation14 + $0x70] sm:$0xff] }
 0x23a   : > { %1153 = vmatpush.msra.mxu0 %v1109_v20  ;;  %1173 = vmatpush.msra.mxu1 %v1110_v21  ;;  %v1096_v40 = vld [vmem:[#allocation14 + $0x78] sm:$0xff]  ;;  %v1089_v41 = vld [vmem:[#allocation14 + $0x40] sm:$0xff]  ;;  %v1090_v25 = vld [vmem:[#allocation14 + $0x48] sm:$0xff] }
 0x23b   : > { %1193 = vmatpush.msra.mxu2 %v1111_v5  ;;  %1213 = vmatpush.msra.mxu3 %v1112_v22  ;;  %v1091_v42 = vld [vmem:[#allocation14 + $0x50] sm:$0xff]  ;;  %v1092_v43 = vld [vmem:[#allocation14 + $0x58] sm:$0xff]  ;;  %v1085_v47 = vld [vmem:[#allocation14 + $0x20] sm:$0xff] }
 0x23c   : > { %1154 = vmatpush.msra.mxu0 %v1105_v26  ;;  %1174 = vmatpush.msra.mxu1 %v1106_v27  ;;  %v1086_v48 = vld [vmem:[#allocation14 + $0x28] sm:$0xff]  ;;  %v1087_v49 = vld [vmem:[#allocation14 + $0x30] sm:$0xff]  ;;  %v1088_v1 = vld [vmem:[#allocation14 + $0x38] sm:$0xff] }
 0x23d   : > { %1194 = vmatpush.msra.mxu2 %v1107_v28  ;;  %1214 = vmatpush.msra.mxu3 %v1108_v0  ;;  %v1081_v24 = vld [vmem:[#allocation14] sm:$0xff]  ;;  %v1082_v50 = vld [vmem:[#allocation14 + $0x8] sm:$0xff]  ;;  %v1083_v51 = vld [vmem:[#allocation14 + $0x10] sm:$0xff] }
 0x23e   : > { %1155 = vmatpush.msra.mxu0 %v1101_v4  ;;  %1175 = vmatpush.msra.mxu1 %v1102_v29  ;;  %v1084_v52 = vld [vmem:[#allocation14 + $0x18] sm:$0xff]  ;;  %v1075_v53 = vld [vmem:[#allocation13 + $0x1e0] sm:$0xff]  ;;  %v1076_v54 = vld [vmem:[#allocation13 + $0x1e8] sm:$0xff] }
 0x23f   : > { %1195 = vmatpush.msra.mxu2 %v1103_v30  ;;  %1215 = vmatpush.msra.mxu3 %v1104_v31  ;;  %v1077_v55 = vld [vmem:[#allocation13 + $0x1f0] sm:$0xff]  ;;  %v1078_v56 = vld [vmem:[#allocation13 + $0x1f8] sm:$0xff]  ;;  %v1071_v57 = vld [vmem:[#allocation13 + $0x1c0] sm:$0xff] }
 0x240   : > { %1156 = vmatpush.msra.mxu0 %v1097_v32  ;;  %1176 = vmatpush.msra.mxu1 %v1098_v33  ;;  %v1072_v58 = vld [vmem:[#allocation13 + $0x1c8] sm:$0xff]  ;;  %v1073_v59 = vld [vmem:[#allocation13 + $0x1d0] sm:$0xff]  ;;  %v1074_v60 = vld [vmem:[#allocation13 + $0x1d8] sm:$0xff] }
 0x241   : > { %1196 = vmatpush.msra.mxu2 %v1099_v34  ;;  %1216 = vmatpush.msra.mxu3 %v1100_v35  ;;  %v1067_v61 = vld [vmem:[#allocation13 + $0x1a0] sm:$0xff]  ;;  %v1068_v62 = vld [vmem:[#allocation13 + $0x1a8] sm:$0xff]  ;;  %v1069_v63 = vld [vmem:[#allocation13 + $0x1b0] sm:$0xff] }
 0x242   : > { %1157 = vmatpush.msra.mxu0 %v1093_v36  ;;  %1177 = vmatpush.msra.mxu1 %v1094_v38  ;;  %v1070_v6 = vld [vmem:[#allocation13 + $0x1b8] sm:$0xff]  ;;  %v1063_v7 = vld [vmem:[#allocation13 + $0x180] sm:$0xff]  ;;  %v1064_v8 = vld [vmem:[#allocation13 + $0x188] sm:$0xff] }
 0x243   : > { %1197 = vmatpush.msra.mxu2 %v1095_v39  ;;  %1217 = vmatpush.msra.mxu3 %v1096_v40  ;;  %v1065_v9 = vld [vmem:[#allocation13 + $0x190] sm:$0xff]  ;;  %v1066_v10 = vld [vmem:[#allocation13 + $0x198] sm:$0xff]  ;;  %v1059_v11 = vld [vmem:[#allocation13 + $0x160] sm:$0xff] }
 0x244   : > { %1158 = vmatpush.msra.mxu0 %v1089_v41  ;;  %1178 = vmatpush.msra.mxu1 %v1090_v25  ;;  %v1060_v12 = vld [vmem:[#allocation13 + $0x168] sm:$0xff]  ;;  %v1061_v13 = vld [vmem:[#allocation13 + $0x170] sm:$0xff]  ;;  %v1062_v14 = vld [vmem:[#allocation13 + $0x178] sm:$0xff] }
 0x245   : > { %1198 = vmatpush.msra.mxu2 %v1091_v42  ;;  %1218 = vmatpush.msra.mxu3 %v1092_v43  ;;  %v1055_v15 = vld [vmem:[#allocation13 + $0x140] sm:$0xff]  ;;  %v1056_v17 = vld [vmem:[#allocation13 + $0x148] sm:$0xff]  ;;  %v1057_v18 = vld [vmem:[#allocation13 + $0x150] sm:$0xff] }
 0x246   : > { %1159 = vmatpush.msra.mxu0 %v1085_v47  ;;  %1179 = vmatpush.msra.mxu1 %v1086_v48  ;;  %v1058_v19 = vld [vmem:[#allocation13 + $0x158] sm:$0xff]  ;;  %v1051_v20 = vld [vmem:[#allocation13 + $0x120] sm:$0xff]  ;;  %v1052_v21 = vld [vmem:[#allocation13 + $0x128] sm:$0xff] }
 0x247   : > { %1199 = vmatpush.msra.mxu2 %v1087_v49  ;;  %1219 = vmatpush.msra.mxu3 %v1088_v1  ;;  %v1053_v5 = vld [vmem:[#allocation13 + $0x130] sm:$0xff]  ;;  %v1054_v22 = vld [vmem:[#allocation13 + $0x138] sm:$0xff]  ;;  %v1047_v26 = vld [vmem:[#allocation13 + $0x100] sm:$0xff] }
 0x248   : > { %1160 = vmatpush.msra.mxu0 %v1081_v24  ;;  %1180 = vmatpush.msra.mxu1 %v1082_v50  ;;  %v1048_v27 = vld [vmem:[#allocation13 + $0x108] sm:$0xff]  ;;  %v1049_v28 = vld [vmem:[#allocation13 + $0x110] sm:$0xff]  ;;  %v1050_v0 = vld [vmem:[#allocation13 + $0x118] sm:$0xff] }
 0x249   : > { %1200 = vmatpush.msra.mxu2 %v1083_v51  ;;  %1220 = vmatpush.msra.mxu3 %v1084_v52  ;;  %v1043_v4 = vld [vmem:[#allocation13 + $0xe0] sm:$0xff]  ;;  %v1044_v29 = vld [vmem:[#allocation13 + $0xe8] sm:$0xff]  ;;  %v1045_v30 = vld [vmem:[#allocation13 + $0xf0] sm:$0xff] }
 0x24a   : > { %1225 = vmatpush.msrb.mxu0 %v1075_v53  ;;  %1245 = vmatpush.msrb.mxu1 %v1076_v54  ;;  %v1046_v31 = vld [vmem:[#allocation13 + $0xf8] sm:$0xff]  ;;  %v1039_v32 = vld [vmem:[#allocation13 + $0xc0] sm:$0xff]  ;;  %v1040_v33 = vld [vmem:[#allocation13 + $0xc8] sm:$0xff] }
 0x24b   : > { %1265 = vmatpush.msrb.mxu2 %v1077_v55  ;;  %1285 = vmatpush.msrb.mxu3 %v1078_v56  ;;  %v1041_v34 = vld [vmem:[#allocation13 + $0xd0] sm:$0xff]  ;;  %v1042_v35 = vld [vmem:[#allocation13 + $0xd8] sm:$0xff]  ;;  %v1035_v36 = vld [vmem:[#allocation13 + $0xa0] sm:$0xff] }
 0x24c   : > { %1226 = vmatpush.msrb.mxu0 %v1071_v57  ;;  %1246 = vmatpush.msrb.mxu1 %v1072_v58  ;;  %v1036_v38 = vld [vmem:[#allocation13 + $0xa8] sm:$0xff]  ;;  %v1037_v39 = vld [vmem:[#allocation13 + $0xb0] sm:$0xff]  ;;  %v1038_v40 = vld [vmem:[#allocation13 + $0xb8] sm:$0xff] }
 0x24d   : > { %1266 = vmatpush.msrb.mxu2 %v1073_v59  ;;  %1286 = vmatpush.msrb.mxu3 %v1074_v60  ;;  %v1031_v41 = vld [vmem:[#allocation13 + $0x80] sm:$0xff]  ;;  %v1032_v25 = vld [vmem:[#allocation13 + $0x88] sm:$0xff]  ;;  %v1033_v42 = vld [vmem:[#allocation13 + $0x90] sm:$0xff] }
 0x24e   : > { %1227 = vmatpush.msrb.mxu0 %v1067_v61  ;;  %1247 = vmatpush.msrb.mxu1 %v1068_v62  ;;  %v1034_v43 = vld [vmem:[#allocation13 + $0x98] sm:$0xff]  ;;  %v1027_v48 = vld [vmem:[#allocation13 + $0x60] sm:$0xff]  ;;  %v1028_v49 = vld [vmem:[#allocation13 + $0x68] sm:$0xff] }
 0x24f   : > { %1267 = vmatpush.msrb.mxu2 %v1069_v63  ;;  %1287 = vmatpush.msrb.mxu3 %v1070_v6  ;;  %v1080_v47 = vld [vmem:[%s1079_s23] sm:$0xff]  ;;  %v1029_v1 = vld [vmem:[#allocation13 + $0x70] sm:$0xff]  ;;  %v1024_v51 = vld [vmem:[#allocation13 + $0x48] sm:$0xff] }
 0x250   : > { %1228 = vmatpush.msrb.mxu0 %v1063_v7  ;;  %1248 = vmatpush.msrb.mxu1 %v1064_v8  ;;  %v1030_v24 = vld [vmem:[#allocation13 + $0x78] sm:$0xff]  ;;  %v1023_v50 = vld [vmem:[#allocation13 + $0x40] sm:$0xff]  ;;  %v1025_v52 = vld [vmem:[#allocation13 + $0x50] sm:$0xff] }
 0x251   : > { %1268 = vmatpush.msrb.mxu2 %v1065_v9  ;;  %1288 = vmatpush.msrb.mxu3 %v1066_v10  ;;  %v1026_v53 = vld [vmem:[#allocation13 + $0x58] sm:$0xff]  ;;  %v1019_v54 = vld [vmem:[#allocation13 + $0x20] sm:$0xff]  ;;  %v1020_v55 = vld [vmem:[#allocation13 + $0x28] sm:$0xff] }
 0x252   : > { %1229 = vmatpush.msrb.mxu0 %v1059_v11  ;;  %1249 = vmatpush.msrb.mxu1 %v1060_v12  ;;  %v1021_v56 = vld [vmem:[#allocation13 + $0x30] sm:$0xff]  ;;  %v1022_v57 = vld [vmem:[#allocation13 + $0x38] sm:$0xff]  ;;  %v1015_v58 = vld [vmem:[#allocation13] sm:$0xff] }
 0x253   : > { %1269 = vmatpush.msrb.mxu2 %v1061_v13  ;;  %1289 = vmatpush.msrb.mxu3 %v1062_v14  ;;  %v1016_v59 = vld [vmem:[#allocation13 + $0x8] sm:$0xff]  ;;  %v1017_v60 = vld [vmem:[#allocation13 + $0x10] sm:$0xff]  ;;  %v1018_v61 = vld [vmem:[#allocation13 + $0x18] sm:$0xff] }
 0x254   : > { %1230 = vmatpush.msrb.mxu0 %v1055_v15  ;;  %1250 = vmatpush.msrb.mxu1 %v1056_v17  ;;  %v3319_v62 = vld [vmem:[%s1013_s22] sm:$0xff]  ;;  %v1366_v6 = vld [vmem:[#allocation16 + $0x1e8] sm:$0xff]  ;;  %v1367_v7 = vld [vmem:[#allocation16 + $0x1f0] sm:$0xff] }
 0x255   : > { %1270 = vmatpush.msrb.mxu2 %v1057_v18  ;;  %1290 = vmatpush.msrb.mxu3 %v1058_v19  ;;  %v1365_v63 = vld [vmem:[#allocation16 + $0x1e0] sm:$0xff]  ;;  %v1368_v8 = vld [vmem:[#allocation16 + $0x1f8] sm:$0xff]  ;;  %v1362_v10 = vld [vmem:[#allocation16 + $0x1c8] sm:$0xff] }
 0x256   : > { %1231 = vmatpush.msrb.mxu0 %v1051_v20  ;;  %1251 = vmatpush.msrb.mxu1 %v1052_v21  ;;  %v1361_v9 = vld [vmem:[#allocation16 + $0x1c0] sm:$0xff]  ;;  %v1363_v11 = vld [vmem:[#allocation16 + $0x1d0] sm:$0xff]  ;;  %v1364_v12 = vld [vmem:[#allocation16 + $0x1d8] sm:$0xff] }
 0x257   : > { %1271 = vmatpush.msrb.mxu2 %v1053_v5  ;;  %1291 = vmatpush.msrb.mxu3 %v1054_v22  ;;  %v1357_v13 = vld [vmem:[#allocation16 + $0x1a0] sm:$0xff]  ;;  %v1358_v14 = vld [vmem:[#allocation16 + $0x1a8] sm:$0xff]  ;;  %v1359_v15 = vld [vmem:[#allocation16 + $0x1b0] sm:$0xff] }
 0x258   : > { %1232 = vmatpush.msrb.mxu0 %v1047_v26  ;;  %1252 = vmatpush.msrb.mxu1 %v1048_v27  ;;  %v1360_v17 = vld [vmem:[#allocation16 + $0x1b8] sm:$0xff]  ;;  %v1353_v18 = vld [vmem:[#allocation16 + $0x180] sm:$0xff]  ;;  %v1354_v19 = vld [vmem:[#allocation16 + $0x188] sm:$0xff] }
 0x259   : > { %1272 = vmatpush.msrb.mxu2 %v1049_v28  ;;  %1292 = vmatpush.msrb.mxu3 %v1050_v0  ;;  %v1355_v20 = vld [vmem:[#allocation16 + $0x190] sm:$0xff]  ;;  %v1356_v21 = vld [vmem:[#allocation16 + $0x198] sm:$0xff]  ;;  %v1349_v5 = vld [vmem:[#allocation16 + $0x160] sm:$0xff] }
 0x25a   : > { %1233 = vmatpush.msrb.mxu0 %v1043_v4  ;;  %1253 = vmatpush.msrb.mxu1 %v1044_v29  ;;  %v1350_v22 = vld [vmem:[#allocation16 + $0x168] sm:$0xff]  ;;  %v1351_v26 = vld [vmem:[#allocation16 + $0x170] sm:$0xff]  ;;  %v1352_v27 = vld [vmem:[#allocation16 + $0x178] sm:$0xff] }
 0x25b   : > { %1273 = vmatpush.msrb.mxu2 %v1045_v30  ;;  %1293 = vmatpush.msrb.mxu3 %v1046_v31  ;;  %v1345_v28 = vld [vmem:[#allocation16 + $0x140] sm:$0xff]  ;;  %v1346_v0 = vld [vmem:[#allocation16 + $0x148] sm:$0xff]  ;;  %v1347_v4 = vld [vmem:[#allocation16 + $0x150] sm:$0xff] }
 0x25c   : > { %1234 = vmatpush.msrb.mxu0 %v1039_v32  ;;  %1254 = vmatpush.msrb.mxu1 %v1040_v33  ;;  %v1348_v29 = vld [vmem:[#allocation16 + $0x158] sm:$0xff]  ;;  %v1341_v30 = vld [vmem:[#allocation16 + $0x120] sm:$0xff]  ;;  %v1342_v31 = vld [vmem:[#allocation16 + $0x128] sm:$0xff] }
 0x25d   : > { %1274 = vmatpush.msrb.mxu2 %v1041_v34  ;;  %1294 = vmatpush.msrb.mxu3 %v1042_v35  ;;  %v1343_v32 = vld [vmem:[#allocation16 + $0x130] sm:$0xff]  ;;  %v1344_v33 = vld [vmem:[#allocation16 + $0x138] sm:$0xff]  ;;  %v1337_v34 = vld [vmem:[#allocation16 + $0x100] sm:$0xff] }
 0x25e   : > { %1235 = vmatpush.msrb.mxu0 %v1035_v36  ;;  %1255 = vmatpush.msrb.mxu1 %v1036_v38  ;;  %v1338_v35 = vld [vmem:[#allocation16 + $0x108] sm:$0xff]  ;;  %v1339_v36 = vld [vmem:[#allocation16 + $0x110] sm:$0xff]  ;;  %v1340_v38 = vld [vmem:[#allocation16 + $0x118] sm:$0xff] }
 0x25f   : > { %1275 = vmatpush.msrb.mxu2 %v1037_v39  ;;  %1295 = vmatpush.msrb.mxu3 %v1038_v40  ;;  %v1333_v39 = vld [vmem:[#allocation16 + $0xe0] sm:$0xff]  ;;  %v1334_v40 = vld [vmem:[#allocation16 + $0xe8] sm:$0xff] }
 0x260   : > { %1236 = vmatpush.msrb.mxu0 %v1031_v41  ;;  %1256 = vmatpush.msrb.mxu1 %v1032_v25  ;;  %v1335_v41 = vld [vmem:[#allocation16 + $0xf0] sm:$0xff]  ;;  %v1336_v25 = vld [vmem:[#allocation16 + $0xf8] sm:$0xff] }
 0x261   : > { %1276 = vmatpush.msrb.mxu2 %v1033_v42  ;;  %1296 = vmatpush.msrb.mxu3 %v1034_v43  ;;  %v1329_v42 = vld [vmem:[#allocation16 + $0xc0] sm:$0xff]  ;;  %v1330_v43 = vld [vmem:[#allocation16 + $0xc8] sm:$0xff] }
 0x262   : > { %1161 = vmatmul.f32.vlgmr.msra.gmra.mxu0 %v1080_v47  ;;  %1181 = vmatmul.f32.vlgmr.msra.gmra.mxu1 %v1080_v47 }
 0x263   : > { %1237 = vmatpush.msrb.mxu0 %v1027_v48  ;;  %1257 = vmatpush.msrb.mxu1 %v1028_v49  ;;  %v1332_v48 = vld [vmem:[#allocation16 + $0xd8] sm:$0xff]  ;;  %v1325_v49 = vld [vmem:[#allocation16 + $0xa0] sm:$0xff] }
 0x264   : > { %1277 = vmatpush.msrb.mxu2 %v1029_v1  ;;  %1297 = vmatpush.msrb.mxu3 %v1030_v24  ;;  %v1326_v1 = vld [vmem:[#allocation16 + $0xa8] sm:$0xff]  ;;  %v1327_v24 = vld [vmem:[#allocation16 + $0xb0] sm:$0xff] }
 0x265   : > { %1238 = vmatpush.msrb.mxu0 %v1023_v50  ;;  %1258 = vmatpush.msrb.mxu1 %v1024_v51  ;;  %v1328_v50 = vld [vmem:[#allocation16 + $0xb8] sm:$0xff]  ;;  %v1321_v51 = vld [vmem:[#allocation16 + $0x80] sm:$0xff] }
 0x266   : > { %1278 = vmatpush.msrb.mxu2 %v1025_v52  ;;  %1298 = vmatpush.msrb.mxu3 %v1026_v53  ;;  %v1322_v52 = vld [vmem:[#allocation16 + $0x88] sm:$0xff]  ;;  %v1323_v53 = vld [vmem:[#allocation16 + $0x90] sm:$0xff] }
 0x267   : > { %1221 = vmatmul.f32.vlgmr.msra.gmra.mxu3 %v1080_v47  ;;  %1239 = vmatpush.msrb.mxu0 %v1019_v54  ;;  %v1324_v54 = vld [vmem:[#allocation16 + $0x98] sm:$0xff] }
 0x268   : > { %1259 = vmatpush.msrb.mxu1 %v1020_v55  ;;  %1279 = vmatpush.msrb.mxu2 %v1021_v56  ;;  %v1317_v55 = vld [vmem:[#allocation16 + $0x60] sm:$0xff]  ;;  %v1318_v56 = vld [vmem:[#allocation16 + $0x68] sm:$0xff] }
 0x269   : > { %1299 = vmatpush.msrb.mxu3 %v1022_v57  ;;  %1240 = vmatpush.msrb.mxu0 %v1015_v58  ;;  %v1319_v57 = vld [vmem:[#allocation16 + $0x70] sm:$0xff]  ;;  %v1320_v58 = vld [vmem:[#allocation16 + $0x78] sm:$0xff] }
 0x26a   : > { %1260 = vmatpush.msrb.mxu1 %v1016_v59  ;;  %1280 = vmatpush.msrb.mxu2 %v1017_v60  ;;  %v1313_v59 = vld [vmem:[#allocation16 + $0x40] sm:$0xff]  ;;  %v1314_v60 = vld [vmem:[#allocation16 + $0x48] sm:$0xff] }
 0x26b   : > { %1300 = vmatpush.msrb.mxu3 %v1018_v61  ;;  %1201 = vmatmul.f32.vlgmr.msra.gmra.mxu2 %v1080_v47  ;;  %v1331_v47 = vld [vmem:[#allocation16 + $0xd0] sm:$0xff] }
 0x26c   : > { %1241 = vmatmul.f32.vlgmr.msrb.gmra.mxu0 %v3319_v62  ;;  %1261 = vmatmul.f32.vlgmr.msrb.gmra.mxu1 %v3319_v62  ;;  %v1315_v61 = vld [vmem:[#allocation16 + $0x50] sm:$0xff] }
 0x26d   : > { %1369 = vmatpush.msra.mxu0 %v1365_v63  ;;  %1389 = vmatpush.msra.mxu1 %v1366_v6  ;;  %v1309_v63 = vld [vmem:[#allocation16 + $0x20] sm:$0xff]  ;;  %v1310_v6 = vld [vmem:[#allocation16 + $0x28] sm:$0xff] }
 0x26e   : > { %1409 = vmatpush.msra.mxu2 %v1367_v7  ;;  %1429 = vmatpush.msra.mxu3 %v1368_v8  ;;  %v1311_v7 = vld [vmem:[#allocation16 + $0x30] sm:$0xff]  ;;  %v1312_v8 = vld [vmem:[#allocation16 + $0x38] sm:$0xff] }
 0x26f   : > { %1370 = vmatpush.msra.mxu0 %v1361_v9  ;;  %1390 = vmatpush.msra.mxu1 %v1362_v10  ;;  %v1305_v9 = vld [vmem:[#allocation16] sm:$0xff]  ;;  %v1306_v10 = vld [vmem:[#allocation16 + $0x8] sm:$0xff] }
 0x270   : > { %1410 = vmatpush.msra.mxu2 %v1363_v11  ;;  %1430 = vmatpush.msra.mxu3 %v1364_v12  ;;  %v1307_v11 = vld [vmem:[#allocation16 + $0x10] sm:$0xff]  ;;  %v1308_v12 = vld [vmem:[#allocation16 + $0x18] sm:$0xff] }
 0x271   : > { %1371 = vmatpush.msra.mxu0 %v1357_v13  ;;  %1391 = vmatpush.msra.mxu1 %v1358_v14 }
 0x272   : > { %1411 = vmatpush.msra.mxu2 %v1359_v15  ;;  %1431 = vmatpush.msra.mxu3 %v1360_v17 }
 0x273   : > { %1301 = vmatmul.f32.vlgmr.msrb.gmra.mxu3 %v3319_v62  ;;  %1372 = vmatpush.msra.mxu0 %v1353_v18 }
 0x274   : > { %1392 = vmatpush.msra.mxu1 %v1354_v19  ;;  %1412 = vmatpush.msra.mxu2 %v1355_v20 }
 0x275   : > { %1432 = vmatpush.msra.mxu3 %v1356_v21  ;;  %1373 = vmatpush.msra.mxu0 %v1349_v5 }
 0x276   : > { %1393 = vmatpush.msra.mxu1 %v1350_v22  ;;  %1413 = vmatpush.msra.mxu2 %v1351_v26  ;;  %v1454_v22 = vperm.slane %v3204_v2, 0  ;;  %v1455_v26 = vperm.slane %v3204_v2, 1 }
 0x277   : > { %1433 = vmatpush.msra.mxu3 %v1352_v27  ;;  %1374 = vmatpush.msra.mxu0 %v1345_v28 }
 0x278   : > { %1394 = vmatpush.msra.mxu1 %v1346_v0  ;;  %1414 = vmatpush.msra.mxu2 %v1347_v4 }
 0x279   : > { %1434 = vmatpush.msra.mxu3 %v1348_v29  ;;  %1375 = vmatpush.msra.mxu0 %v1341_v30 }
 0x27a   : > { %1395 = vmatpush.msra.mxu1 %v1342_v31  ;;  %1415 = vmatpush.msra.mxu2 %v1343_v32 }
 0x27b   : > { %1435 = vmatpush.msra.mxu3 %v1344_v33  ;;  %1376 = vmatpush.msra.mxu0 %v1337_v34  ;;  %v1457_v33 = vperm.slane %v3204_v2, 3 }
 0x27c   : > { %1396 = vmatpush.msra.mxu1 %v1338_v35  ;;  %1416 = vmatpush.msra.mxu2 %v1339_v36 }
 0x27d   : > { %1436 = vmatpush.msra.mxu3 %v1340_v38  ;;  %1281 = vmatmul.f32.vlgmr.msrb.gmra.mxu2 %v3319_v62  ;;  %v1316_v62 = vld [vmem:[#allocation16 + $0x58] sm:$0xff] }
 0x27e   : > { %1377 = vmatpush.msra.mxu0 %v1333_v39  ;;  %1397 = vmatpush.msra.mxu1 %v1334_v40 }
 0x27f   : > { %1417 = vmatpush.msra.mxu2 %v1335_v41  ;;  %1437 = vmatpush.msra.mxu3 %v1336_v25 }
 0x280   : > { %1378 = vmatpush.msra.mxu0 %v1329_v42  ;;  %1398 = vmatpush.msra.mxu1 %v1330_v43 }
 0x281   : > { %1418 = vmatpush.msra.mxu2 %v1331_v47  ;;  %1438 = vmatpush.msra.mxu3 %v1332_v48 }
 0x282   : > { %1379 = vmatpush.msra.mxu0 %v1325_v49  ;;  %1399 = vmatpush.msra.mxu1 %v1326_v1  ;;  %v1456_v49 = vperm.slane %v3204_v2, 2 }
 0x283   : > { %1419 = vmatpush.msra.mxu2 %v1327_v24  ;;  %1439 = vmatpush.msra.mxu3 %v1328_v50 }
 0x284   : > { %1380 = vmatpush.msra.mxu0 %v1321_v51  ;;  %1400 = vmatpush.msra.mxu1 %v1322_v52 }
 0x285   : > { %1420 = vmatpush.msra.mxu2 %v1323_v53  ;;  %1440 = vmatpush.msra.mxu3 %v1324_v54 }
 0x286   : > { %1381 = vmatpush.msra.mxu0 %v1317_v55  ;;  %1401 = vmatpush.msra.mxu1 %v1318_v56 }
 0x287   : > { %1421 = vmatpush.msra.mxu2 %v1319_v57  ;;  %1441 = vmatpush.msra.mxu3 %v1320_v58 }
 0x288   : > { %1382 = vmatpush.msra.mxu0 %v1313_v59  ;;  %1402 = vmatpush.msra.mxu1 %v1314_v60 }
 0x289   : > { %1422 = vmatpush.msra.mxu2 %v1315_v61  ;;  %1442 = vmatpush.msra.mxu3 %v1316_v62 }
 0x28a   : > { %1383 = vmatpush.msra.mxu0 %v1309_v63  ;;  %1403 = vmatpush.msra.mxu1 %v1310_v6 }
 0x28b   : > { %1423 = vmatpush.msra.mxu2 %v1311_v7  ;;  %1443 = vmatpush.msra.mxu3 %v1312_v8 }
 0x28c   : > { %1384 = vmatpush.msra.mxu0 %v1305_v9  ;;  %1404 = vmatpush.msra.mxu1 %v1306_v10 }
 0x28d   : > { %1424 = vmatpush.msra.mxu2 %v1307_v11  ;;  %1444 = vmatpush.msra.mxu3 %v1308_v12 }
 0x28e   : > { %1385 = vmatmul.f32.vlgmr.msra.gmra.mxu0 %v2980_v46  ;;  %1405 = vmatmul.f32.vlgmr.msra.gmra.mxu1 %v2980_v46 }
 0x28f   : > { %1425 = vmatmul.f32.vlgmr.msra.gmra.mxu2 %v2980_v46  ;;  %1445 = vmatmul.f32.vlgmr.msra.gmra.mxu3 %v2980_v46 }
 0x2df   : > { %v1162_v13 = vpop.f32.mrf.mxu0  ;;  %v1182_v14 = vpop.f32.mrf.mxu1 }
 0x2e9   : > { %v1242_v17 = vpop.f32.mrf.mxu0  ;;  %v1262_v18 = vpop.f32.mrf.mxu1 }
 0x2ea   : > { %v1222_v15 = vpop.f32.mrf.mxu3  ;;  %v1243_v20 = vadd.f32 %v1242_v17, %v1162_v13  ;;  %v1263_v21 = vadd.f32 %v1262_v18, %v1182_v14 }
 0x2ee   : > { %v1202_v19 = vpop.f32.mrf.mxu2 }
 0x2f6   : > { %v1302_v5 = vpop.f32.mrf.mxu3 }
 0x2f7   : > { %v1303_v32 = vadd.f32 %v1302_v5, %v1222_v15 }
 0x300   : > { %v1282_v34 = vpop.f32.mrf.mxu2 }
 0x301   : > { %v1283_v47 = vadd.f32 %v1282_v34, %v1202_v19 }
 0x30b   : > { %v1386_v27 = vpop.f32.mrf.mxu0  ;;  %v1406_v28 = vpop.f32.mrf.mxu1 }
 0x30c   : > { %v1449_v0 = vadd.f32 %v1386_v27, %v1243_v20  ;;  %v1450_v4 = vadd.f32 %v1406_v28, %v1263_v21 }
 0x30e   : > { %v1462_v29 = vadd.f32 %v1454_v22, %v1449_v0  ;;  %v1463_v30 = vadd.f32 %v1455_v26, %v1450_v4 }
 0x310   : > { %v2259_v46 = vmul.f32 -1.442695, %v1462_v29  ;;  %v2260_v31 = vmul.f32 -1.442695, %v1463_v30  ;;  %v3350_v30 = vmov (%p1006_p2), 0.0  }
 0x312   : > { %2416 = vpow2.f32 %v2259_v46  ;;  %v1446_v35 = vpop.f32.mrf.mxu3  ;;  %v1426_v43 = vpop.f32.mrf.mxu2 }
 0x313   : > { %2418 = vpow2.f32 %v2260_v31  ;;  %v1452_v36 = vadd.f32 %v1446_v35, %v1303_v32  ;;  %v1451_v48 = vadd.f32 %v1426_v43, %v1283_v47  ;;  %v3352_v31 = vmov (%p1006_p2), 0.0  }
 0x315   : > { %v1465_v38 = vadd.f32 %v1457_v33, %v1452_v36  ;;  %v1464_v51 = vadd.f32 %v1456_v49, %v1451_v48 }
 0x317   : > { %v2261_v39 = vmul.f32 -1.442695, %v1465_v38 }
 0x318   : > { %v2417_v40 = vpop.eup %2416 }
 0x319   : > { %v2419_v41 = vpop.eup %2418  ;;  %v1469_v25 = vadd.f32 1.0, %v2417_v40  ;;  %2420 = vpow2.f32 %v2261_v39 }
 0x31a   : > { %v1488_v42 = vadd.f32 1.0, %v2419_v41 }
 0x31b   : > { %2422 = vrcp.f32 %v1469_v25  ;;  %v1481_v57 = vand.u32 2147483648, %v1469_v25  ;;  %v1479_v60 = vand.u32 2147483647, %v1469_v25  ;;  %vm1475_vm10 = vweird.f32 %v1469_v25 }
 0x31c   : > { %2424 = vrcp.f32 %v1488_v42  ;;  %v1500_v58 = vand.u32 2147483648, %v1488_v42  ;;  %v1498_v62 = vand.u32 2147483647, %v1488_v42  ;;  %vm1494_vm11 = vweird.f32 %v1488_v42 }
 0x31d   : > { %v1482_v7 = vor.u32 1.1754944e-38, %v1481_v57  ;;  %vm1480_vm14 = vcmp.eq.f32.partialorder %v1479_v60, 8.507059e+37 }
 0x31e   : > { %v1501_v10 = vor.u32 1.1754944e-38, %v1500_v58  ;;  %vm1499_vm15 = vcmp.eq.f32.partialorder %v1498_v62, 8.507059e+37 }
 0x31f   : > { %v2421_v1 = vpop.eup %2420 }
 0x320   : > { %v1508_v24 = vadd.f32 1.0, %v2421_v1 }
 0x321   : > { %v2423_v50 = vpop.eup %2422 }
 0x322   : > { %v2425_v52 = vpop.eup %2424  ;;  %v1471_v53 = vmul.f32 %v2423_v50, %v1469_v25  ;;  %2426 = vrcp.f32 %v1508_v24  ;;  %vm1476_vm8 = vweird.f32 %v2423_v50  ;;  %v1520_v22 = vand.u32 2147483648, %v1508_v24 }
 0x323   : > { %v1490_v54 = vmul.f32 %v2425_v52, %v1488_v42  ;;  %2428 = vtanh.f32 %v1464_v51  ;;  %vm1495_vm9 = vweird.f32 %v2425_v52  ;;  %vm1477_vm12 = vmor %vm1475_vm10, %vm1476_vm8  ;;  %vm1514_vm1 = vweird.f32 %v1508_v24 }
 0x324   : > { %v1472_v55 = vsub.f32 1.0, %v1471_v53  ;;  %vm1496_vm13 = vmor %vm1494_vm11, %vm1495_vm9  ;;  %v1518_v26 = vand.u32 2147483647, %v1508_v24  ;;  %v1521_v28 = vor.u32 1.1754944e-38, %v1520_v22 }
 0x325   : > { %v1491_v56 = vsub.f32 1.0, %v1490_v54 }
 0x326   : > { %v1473_v59 = vmul.f32 %v2423_v50, %v1472_v55  ;;  %vm1519_vm3 = vcmp.eq.f32.partialorder %v1518_v26, 8.507059e+37 }
 0x327   : > { %v1492_v61 = vmul.f32 %v2425_v52, %v1491_v56 }
 0x328   : > { %v2427_v63 = vpop.eup %2426  ;;  %v1474_v6 = vadd.f32 %v2423_v50, %v1473_v59 }
 0x329   : > { %v1493_v8 = vadd.f32 %v2425_v52, %v1492_v61  ;;  %v1510_v9 = vmul.f32 %v2427_v63, %v1508_v24  ;;  %v2429_v12 = vpop.eup %2428  ;;  %vm1515_vm0 = vweird.f32 %v2427_v63 }
 0x32a   : > { %v1478_v11 = vsel %vm1477_vm12, %v2423_v50, %v1474_v6  ;;  %vm1516_vm2 = vmor %vm1514_vm1, %vm1515_vm0 }
 0x32b   : > { %v1483_v13 = vsel %vm1480_vm14, %v1482_v7, %v1478_v11  ;;  %v1497_v14 = vsel %vm1496_vm13, %v2425_v52, %v1493_v8  ;;  %v1511_v15 = vsub.f32 1.0, %v1510_v9 }
 0x32c   : > { %v1502_v17 = vsel %vm1499_vm15, %v1501_v10, %v1497_v14  ;;  %v1525_v18 = vmul.f32 %v2429_v12, %v1483_v13 }
 0x32d   : > { %v1524_v19 = vmul.f32 %v2976_v45, %v1502_v17  ;;  %v1512_v20 = vmul.f32 %v2427_v63, %v1511_v15 }
 0x32f   : > { %v3334_v45 = vadd.f32 %v1525_v18, %v1524_v19   ;;  %v1513_v5 = vadd.f32 %v2427_v63, %v1512_v20 }
 0x331   : > { %v3474_v21 = vmov %v3334_v45  ;;  %v1517_v27 = vsel %vm1516_vm2, %v2427_v63, %v1513_v5 }
 0x332   : > { %2430 = vtanh.f32 %v3474_v21  ;;  %v1522_v4 = vsel %vm1519_vm3, %v1521_v28, %v1517_v27  ;;  %v3476_v45 = vmov %v3474_v21 }
 0x338   : > { %v2431_v0 = vpop.eup %2430  ;;  %1008 = sbr.rel (!%p1006_p2) target bundleno = 553 (0x229), region = 234 }
 0x339   : > { %v3337_v46 = vmul.f32 %v2431_v0, %v1522_v4  }
 0x33b   : > { %v3475_v29 = vmov %v3337_v46 }
 0x33c   : > { %1530 = vst [vmem:[%s1529_s1] sm:$0xff] %v3475_v29  ;;  %v3477_v46 = vmov %v3475_v29 }
 0x33d LB: > { %v1669_v46 = vld [vmem:[#allocation19 + $0x1e0] sm:$0xff]  ;;  %v1670_v32 = vld [vmem:[#allocation19 + $0x1e8] sm:$0xff]  ;;  %v1671_v33 = vld [vmem:[#allocation19 + $0x1f0] sm:$0xff]  ;;  %s1539_s3 = ssub.s32 7, %s2996_s11  ;;  %s1536_s11 = sadd.s32 1, %s2996_s11   ;;  %s2996_s11 = sphi %s3354_s11, %s1536_s11   ;;  %v2992_v31 = vphi %v3352_v31, %v3479_v31   ;;  %v2988_v30 = vphi %v3350_v30, %v3478_v30  }
 0x33e   : > { %1673 = vmatpush.msra.mxu0 %v1669_v46  ;;  %1693 = vmatpush.msra.mxu1 %v1670_v32  ;;  %v1672_v2 = vld [vmem:[#allocation19 + $0x1f8] sm:$0xff]  ;;  %v1665_v45 = vld [vmem:[#allocation19 + $0x1c0] sm:$0xff]  ;;  %v1666_v34 = vld [vmem:[#allocation19 + $0x1c8] sm:$0xff]  ;;  %s3366_s12 = sshll.u32 %s1539_s3, 3  ;;  %p1533_p3 = scmp.ge.s32.totalorder %s1536_s11, 8  }
 0x33f   : > { %1713 = vmatpush.msra.mxu2 %v1671_v33  ;;  %1733 = vmatpush.msra.mxu3 %v1672_v2  ;;  %v1667_v35 = vld [vmem:[#allocation19 + $0x1d0] sm:$0xff]  ;;  %v1668_v36 = vld [vmem:[#allocation19 + $0x1d8] sm:$0xff]  ;;  %v1661_v38 = vld [vmem:[#allocation19 + $0x1a0] sm:$0xff]  ;;  %s1607_s13 = scalar_lea.vmem [#allocation29], %s3366_s12  ;;  %s1541_s24 = scalar_lea.vmem [#allocation28], %s3366_s12  ;;  %2066 = vst [vmem:[#allocation26] sm:$0xff] (%p1533_p3), %v3466_v16 }
 0x340   : > { %1674 = vmatpush.msra.mxu0 %v1665_v45  ;;  %1694 = vmatpush.msra.mxu1 %v1666_v34  ;;  %v1662_v39 = vld [vmem:[#allocation19 + $0x1a8] sm:$0xff]  ;;  %v1663_v40 = vld [vmem:[#allocation19 + $0x1b0] sm:$0xff]  ;;  %v1664_v41 = vld [vmem:[#allocation19 + $0x1b8] sm:$0xff]  ;;  %s2057_s4 = scalar_lea.vmem [#allocation23], %s3366_s12  ;;  %s2092_s21 = sshll.u32 (%p1533_p3), %s3451_s16, 4  ;;  %2068 = vst [vmem:[#allocation26 + $0x8] sm:$0xff] (%p1533_p3), %v3470_v37  ;;  %s2093_s21 = int_to_ptr.hbm [resolvable:$true] %s2092_s21 }
 0x341   : > { %1714 = vmatpush.msra.mxu2 %v1667_v35  ;;  %1734 = vmatpush.msra.mxu3 %v1668_v36  ;;  %v1657_v25 = vld [vmem:[#allocation19 + $0x180] sm:$0xff]  ;;  %v1658_v42 = vld [vmem:[#allocation19 + $0x188] sm:$0xff]  ;;  %v1659_v43 = vld [vmem:[#allocation19 + $0x190] sm:$0xff]  ;;  %s3014_s28 = smov (%p1533_p3), [#allocation23]   ;;  %2070 = vst [vmem:[#allocation26 + $0x10] sm:$0xff] (%p1533_p3), %v3474_v21  ;;  %s3015_s10 = smov (%p1533_p3), [#allocation26]  }
 0x342   : > { %1675 = vmatpush.msra.mxu0 %v1661_v38  ;;  %1695 = vmatpush.msra.mxu1 %v1662_v39  ;;  %v1660_v47 = vld [vmem:[#allocation19 + $0x198] sm:$0xff]  ;;  %v1653_v48 = vld [vmem:[#allocation19 + $0x160] sm:$0xff]  ;;  %v1654_v49 = vld [vmem:[#allocation19 + $0x168] sm:$0xff]  ;;  %s2090_s6 = sshll.u32 (%p1533_p3), %s3014_s28, 4  ;;  %2059 = vst [vmem:[#allocation25] sm:$0xff] (%p1533_p3), %v3467_v23  ;;  %s2116_s14 = sshll.u32 (%p1533_p3), %s3015_s10, 4  ;;  %s2091_s6 = int_to_ptr.vmem [resolvable:$true] %s2090_s6  ;;  %s2117_s14 = int_to_ptr.vmem [resolvable:$true] %s2116_s14 }
 0x343   : > { %1715 = vmatpush.msra.mxu2 %v1663_v40  ;;  %1735 = vmatpush.msra.mxu3 %v1664_v41  ;;  %v1655_v1 = vld [vmem:[#allocation19 + $0x170] sm:$0xff]  ;;  %v1656_v24 = vld [vmem:[#allocation19 + $0x178] sm:$0xff]  ;;  %v1649_v50 = vld [vmem:[#allocation19 + $0x140] sm:$0xff]  ;;  %s2118_s16 = sshll.u32 (%p1533_p3), %s3453_s18, 4  ;;  %2061 = vst [vmem:[#allocation25 + $0x8] sm:$0xff] (%p1533_p3), %v3471_v44  ;;  %s2079_s5 = sshll.u32 (%p1533_p3), %s3450_s15, 4  ;;  %s2119_s16 = int_to_ptr.hbm [resolvable:$true] %s2118_s16  ;;  %s2080_s5 = int_to_ptr.hbm [resolvable:$true] %s2079_s5 }
 0x344   : > { %1676 = vmatpush.msra.mxu0 %v1657_v25  ;;  %1696 = vmatpush.msra.mxu1 %v1658_v42  ;;  %v1650_v51 = vld [vmem:[#allocation19 + $0x148] sm:$0xff]  ;;  %v1651_v52 = vld [vmem:[#allocation19 + $0x150] sm:$0xff]  ;;  %v1652_v53 = vld [vmem:[#allocation19 + $0x158] sm:$0xff]  ;;  %2063 = vst [vmem:[#allocation25 + $0x10] sm:$0xff] (%p1533_p3), %v3475_v29  ;;  %s3016_s2 = smov (%p1533_p3), [#allocation22]   ;;  %s3017_s18 = smov (%p1533_p3), [#allocation25]  }
 0x345   : > { %1716 = vmatpush.msra.mxu2 %v1659_v43  ;;  %1736 = vmatpush.msra.mxu3 %v1660_v47  ;;  %v1645_v54 = vld [vmem:[#allocation19 + $0x120] sm:$0xff]  ;;  %v1646_v55 = vld [vmem:[#allocation19 + $0x128] sm:$0xff]  ;;  %v1647_v56 = vld [vmem:[#allocation19 + $0x130] sm:$0xff]  ;;  %s2077_s9 = sshll.u32 (%p1533_p3), %s3016_s2, 4  ;;  %s2103_s23 = sshll.u32 (%p1533_p3), %s3017_s18, 4  ;;  %s2078_s9 = int_to_ptr.vmem [resolvable:$true] %s2077_s9  ;;  %s2104_s23 = int_to_ptr.vmem [resolvable:$true] %s2103_s23 }
 0x346   : > { %1677 = vmatpush.msra.mxu0 %v1653_v48  ;;  %1697 = vmatpush.msra.mxu1 %v1654_v49  ;;  %v1648_v57 = vld [vmem:[#allocation19 + $0x138] sm:$0xff]  ;;  %v1641_v58 = vld [vmem:[#allocation19 + $0x100] sm:$0xff]  ;;  %v1642_v59 = vld [vmem:[#allocation19 + $0x108] sm:$0xff]  ;;  %2085 = dma.vmem_to_hbm [thread:$0]  (%p1533_p3), %s2078_s9, 1024, %s2080_s5, [#allocation4], %s3006_s26, %s3006_s26, %s3007_s27  }
 0x347   : > { %1717 = vmatpush.msra.mxu2 %v1655_v1  ;;  %1737 = vmatpush.msra.mxu3 %v1656_v24  ;;  %v1643_v60 = vld [vmem:[#allocation19 + $0x110] sm:$0xff]  ;;  %v1644_v61 = vld [vmem:[#allocation19 + $0x118] sm:$0xff]  ;;  %v1637_v62 = vld [vmem:[#allocation19 + $0xe0] sm:$0xff]  ;;  %s2105_s11 = sshll.u32 (%p1533_p3), %s3452_s17, 4  ;;  %s2131_s12 = sshll.u32 (%p1533_p3), %s3454_s19, 4  ;;  %s2106_s11 = int_to_ptr.hbm [resolvable:$true] %s2105_s11  ;;  %s2132_s12 = int_to_ptr.hbm [resolvable:$true] %s2131_s12 }
 0x348   : > { %1678 = vmatpush.msra.mxu0 %v1649_v50  ;;  %1698 = vmatpush.msra.mxu1 %v1650_v51  ;;  %v1638_v63 = vld [vmem:[#allocation19 + $0xe8] sm:$0xff]  ;;  %v1639_v6 = vld [vmem:[#allocation19 + $0xf0] sm:$0xff]  ;;  %v1640_v7 = vld [vmem:[#allocation19 + $0xf8] sm:$0xff] }
 0x349   : > { %1718 = vmatpush.msra.mxu2 %v1651_v52  ;;  %1738 = vmatpush.msra.mxu3 %v1652_v53  ;;  %v1633_v8 = vld [vmem:[#allocation19 + $0xc0] sm:$0xff]  ;;  %v1634_v9 = vld [vmem:[#allocation19 + $0xc8] sm:$0xff]  ;;  %v1635_v10 = vld [vmem:[#allocation19 + $0xd0] sm:$0xff] }
 0x34a   : > { %1679 = vmatpush.msra.mxu0 %v1645_v54  ;;  %1699 = vmatpush.msra.mxu1 %v1646_v55  ;;  %v1636_v11 = vld [vmem:[#allocation19 + $0xd8] sm:$0xff]  ;;  %v1629_v12 = vld [vmem:[#allocation19 + $0xa0] sm:$0xff]  ;;  %v1630_v13 = vld [vmem:[#allocation19 + $0xa8] sm:$0xff] }
 0x34b   : > { %1719 = vmatpush.msra.mxu2 %v1647_v56  ;;  %1739 = vmatpush.msra.mxu3 %v1648_v57  ;;  %v1631_v14 = vld [vmem:[#allocation19 + $0xb0] sm:$0xff]  ;;  %v1632_v15 = vld [vmem:[#allocation19 + $0xb8] sm:$0xff]  ;;  %v1625_v17 = vld [vmem:[#allocation19 + $0x80] sm:$0xff] }
 0x34c   : > { %1680 = vmatpush.msra.mxu0 %v1641_v58  ;;  %1700 = vmatpush.msra.mxu1 %v1642_v59  ;;  %v1626_v18 = vld [vmem:[#allocation19 + $0x88] sm:$0xff]  ;;  %v1627_v19 = vld [vmem:[#allocation19 + $0x90] sm:$0xff]  ;;  %v1628_v20 = vld [vmem:[#allocation19 + $0x98] sm:$0xff] }
 0x34d   : > { %1720 = vmatpush.msra.mxu2 %v1643_v60  ;;  %1740 = vmatpush.msra.mxu3 %v1644_v61  ;;  %v1621_v5 = vld [vmem:[#allocation19 + $0x60] sm:$0xff]  ;;  %v1622_v22 = vld [vmem:[#allocation19 + $0x68] sm:$0xff]  ;;  %v1623_v26 = vld [vmem:[#allocation19 + $0x70] sm:$0xff] }
 0x34e   : > { %1681 = vmatpush.msra.mxu0 %v1637_v62  ;;  %1701 = vmatpush.msra.mxu1 %v1638_v63  ;;  %v1624_v27 = vld [vmem:[#allocation19 + $0x78] sm:$0xff]  ;;  %v1617_v28 = vld [vmem:[#allocation19 + $0x40] sm:$0xff]  ;;  %v1618_v0 = vld [vmem:[#allocation19 + $0x48] sm:$0xff] }
 0x34f   : > { %1721 = vmatpush.msra.mxu2 %v1639_v6  ;;  %1741 = vmatpush.msra.mxu3 %v1640_v7  ;;  %v1619_v4 = vld [vmem:[#allocation19 + $0x50] sm:$0xff]  ;;  %v1620_v46 = vld [vmem:[#allocation19 + $0x58] sm:$0xff]  ;;  %v1613_v32 = vld [vmem:[#allocation19 + $0x20] sm:$0xff] }
 0x350   : > { %1682 = vmatpush.msra.mxu0 %v1633_v8  ;;  %1702 = vmatpush.msra.mxu1 %v1634_v9  ;;  %v1614_v33 = vld [vmem:[#allocation19 + $0x28] sm:$0xff]  ;;  %v1615_v2 = vld [vmem:[#allocation19 + $0x30] sm:$0xff]  ;;  %v1616_v45 = vld [vmem:[#allocation19 + $0x38] sm:$0xff] }
 0x351   : > { %1722 = vmatpush.msra.mxu2 %v1635_v10  ;;  %1742 = vmatpush.msra.mxu3 %v1636_v11  ;;  %v1609_v34 = vld [vmem:[#allocation19] sm:$0xff]  ;;  %v1610_v35 = vld [vmem:[#allocation19 + $0x8] sm:$0xff]  ;;  %v1611_v36 = vld [vmem:[#allocation19 + $0x10] sm:$0xff] }
 0x352   : > { %1683 = vmatpush.msra.mxu0 %v1629_v12  ;;  %1703 = vmatpush.msra.mxu1 %v1630_v13  ;;  %v1612_v38 = vld [vmem:[#allocation19 + $0x18] sm:$0xff]  ;;  %v1603_v39 = vld [vmem:[#allocation17 + $0x1e0] sm:$0xff]  ;;  %v1604_v40 = vld [vmem:[#allocation17 + $0x1e8] sm:$0xff] }
 0x353   : > { %1723 = vmatpush.msra.mxu2 %v1631_v14  ;;  %1743 = vmatpush.msra.mxu3 %v1632_v15  ;;  %v1605_v41 = vld [vmem:[#allocation17 + $0x1f0] sm:$0xff]  ;;  %v1606_v25 = vld [vmem:[#allocation17 + $0x1f8] sm:$0xff]  ;;  %v1599_v42 = vld [vmem:[#allocation17 + $0x1c0] sm:$0xff] }
 0x354   : > { %1684 = vmatpush.msra.mxu0 %v1625_v17  ;;  %1704 = vmatpush.msra.mxu1 %v1626_v18  ;;  %v1600_v43 = vld [vmem:[#allocation17 + $0x1c8] sm:$0xff]  ;;  %v1601_v47 = vld [vmem:[#allocation17 + $0x1d0] sm:$0xff]  ;;  %v1602_v48 = vld [vmem:[#allocation17 + $0x1d8] sm:$0xff] }
 0x355   : > { %1724 = vmatpush.msra.mxu2 %v1627_v19  ;;  %1744 = vmatpush.msra.mxu3 %v1628_v20  ;;  %v1595_v49 = vld [vmem:[#allocation17 + $0x1a0] sm:$0xff]  ;;  %v1596_v1 = vld [vmem:[#allocation17 + $0x1a8] sm:$0xff]  ;;  %v1597_v24 = vld [vmem:[#allocation17 + $0x1b0] sm:$0xff] }
 0x356   : > { %1685 = vmatpush.msra.mxu0 %v1621_v5  ;;  %1705 = vmatpush.msra.mxu1 %v1622_v22  ;;  %v1598_v50 = vld [vmem:[#allocation17 + $0x1b8] sm:$0xff]  ;;  %v1591_v51 = vld [vmem:[#allocation17 + $0x180] sm:$0xff]  ;;  %v1592_v52 = vld [vmem:[#allocation17 + $0x188] sm:$0xff] }
 0x357   : > { %1725 = vmatpush.msra.mxu2 %v1623_v26  ;;  %1745 = vmatpush.msra.mxu3 %v1624_v27  ;;  %v1593_v53 = vld [vmem:[#allocation17 + $0x190] sm:$0xff]  ;;  %v1594_v54 = vld [vmem:[#allocation17 + $0x198] sm:$0xff]  ;;  %v1587_v55 = vld [vmem:[#allocation17 + $0x160] sm:$0xff] }
 0x358   : > { %1686 = vmatpush.msra.mxu0 %v1617_v28  ;;  %1706 = vmatpush.msra.mxu1 %v1618_v0  ;;  %v1588_v56 = vld [vmem:[#allocation17 + $0x168] sm:$0xff]  ;;  %v1589_v57 = vld [vmem:[#allocation17 + $0x170] sm:$0xff]  ;;  %v1590_v58 = vld [vmem:[#allocation17 + $0x178] sm:$0xff] }
 0x359   : > { %1726 = vmatpush.msra.mxu2 %v1619_v4  ;;  %1746 = vmatpush.msra.mxu3 %v1620_v46  ;;  %v1583_v59 = vld [vmem:[#allocation17 + $0x140] sm:$0xff]  ;;  %v1584_v60 = vld [vmem:[#allocation17 + $0x148] sm:$0xff]  ;;  %v1585_v61 = vld [vmem:[#allocation17 + $0x150] sm:$0xff] }
 0x35a   : > { %1687 = vmatpush.msra.mxu0 %v1613_v32  ;;  %1707 = vmatpush.msra.mxu1 %v1614_v33  ;;  %v1586_v62 = vld [vmem:[#allocation17 + $0x158] sm:$0xff]  ;;  %v1579_v63 = vld [vmem:[#allocation17 + $0x120] sm:$0xff]  ;;  %v1580_v6 = vld [vmem:[#allocation17 + $0x128] sm:$0xff] }
 0x35b   : > { %1727 = vmatpush.msra.mxu2 %v1615_v2  ;;  %1747 = vmatpush.msra.mxu3 %v1616_v45  ;;  %v1581_v7 = vld [vmem:[#allocation17 + $0x130] sm:$0xff]  ;;  %v1582_v8 = vld [vmem:[#allocation17 + $0x138] sm:$0xff]  ;;  %v1575_v9 = vld [vmem:[#allocation17 + $0x100] sm:$0xff] }
 0x35c   : > { %1688 = vmatpush.msra.mxu0 %v1609_v34  ;;  %1708 = vmatpush.msra.mxu1 %v1610_v35  ;;  %v1576_v10 = vld [vmem:[#allocation17 + $0x108] sm:$0xff]  ;;  %v1577_v11 = vld [vmem:[#allocation17 + $0x110] sm:$0xff]  ;;  %v1578_v12 = vld [vmem:[#allocation17 + $0x118] sm:$0xff] }
 0x35d   : > { %1728 = vmatpush.msra.mxu2 %v1611_v36  ;;  %1748 = vmatpush.msra.mxu3 %v1612_v38  ;;  %v1571_v13 = vld [vmem:[#allocation17 + $0xe0] sm:$0xff]  ;;  %v1572_v14 = vld [vmem:[#allocation17 + $0xe8] sm:$0xff]  ;;  %v1573_v15 = vld [vmem:[#allocation17 + $0xf0] sm:$0xff] }
 0x35e   : > { %1753 = vmatpush.msrb.mxu0 %v1603_v39  ;;  %1773 = vmatpush.msrb.mxu1 %v1604_v40  ;;  %v1574_v17 = vld [vmem:[#allocation17 + $0xf8] sm:$0xff]  ;;  %v1567_v18 = vld [vmem:[#allocation17 + $0xc0] sm:$0xff]  ;;  %v1568_v19 = vld [vmem:[#allocation17 + $0xc8] sm:$0xff] }
 0x35f   : > { %1793 = vmatpush.msrb.mxu2 %v1605_v41  ;;  %1813 = vmatpush.msrb.mxu3 %v1606_v25  ;;  %v1569_v20 = vld [vmem:[#allocation17 + $0xd0] sm:$0xff]  ;;  %v1570_v5 = vld [vmem:[#allocation17 + $0xd8] sm:$0xff]  ;;  %v1563_v22 = vld [vmem:[#allocation17 + $0xa0] sm:$0xff] }
 0x360   : > { %1754 = vmatpush.msrb.mxu0 %v1599_v42  ;;  %1774 = vmatpush.msrb.mxu1 %v1600_v43  ;;  %v1564_v26 = vld [vmem:[#allocation17 + $0xa8] sm:$0xff]  ;;  %v1565_v27 = vld [vmem:[#allocation17 + $0xb0] sm:$0xff]  ;;  %v1566_v28 = vld [vmem:[#allocation17 + $0xb8] sm:$0xff] }
 0x361   : > { %1794 = vmatpush.msrb.mxu2 %v1601_v47  ;;  %1814 = vmatpush.msrb.mxu3 %v1602_v48  ;;  %v1559_v0 = vld [vmem:[#allocation17 + $0x80] sm:$0xff]  ;;  %v1560_v4 = vld [vmem:[#allocation17 + $0x88] sm:$0xff]  ;;  %v1561_v46 = vld [vmem:[#allocation17 + $0x90] sm:$0xff] }
 0x362   : > { %1755 = vmatpush.msrb.mxu0 %v1595_v49  ;;  %1775 = vmatpush.msrb.mxu1 %v1596_v1  ;;  %v1562_v32 = vld [vmem:[#allocation17 + $0x98] sm:$0xff]  ;;  %v1555_v2 = vld [vmem:[#allocation17 + $0x60] sm:$0xff]  ;;  %v1556_v45 = vld [vmem:[#allocation17 + $0x68] sm:$0xff] }
 0x363   : > { %1795 = vmatpush.msrb.mxu2 %v1597_v24  ;;  %1815 = vmatpush.msrb.mxu3 %v1598_v50  ;;  %v1608_v33 = vld [vmem:[%s1607_s13] sm:$0xff]  ;;  %v1557_v34 = vld [vmem:[#allocation17 + $0x70] sm:$0xff]  ;;  %v1552_v38 = vld [vmem:[#allocation17 + $0x48] sm:$0xff]  ;;  %s3018_s13 = smov (%p1533_p3), [#allocation28]  }
 0x364   : > { %1756 = vmatpush.msrb.mxu0 %v1591_v51  ;;  %1776 = vmatpush.msrb.mxu1 %v1592_v52  ;;  %v1558_v35 = vld [vmem:[#allocation17 + $0x78] sm:$0xff]  ;;  %v1551_v36 = vld [vmem:[#allocation17 + $0x40] sm:$0xff]  ;;  %v1553_v39 = vld [vmem:[#allocation17 + $0x50] sm:$0xff] }
 0x365   : > { %1796 = vmatpush.msrb.mxu2 %v1593_v53  ;;  %1816 = vmatpush.msrb.mxu3 %v1594_v54  ;;  %v1554_v40 = vld [vmem:[#allocation17 + $0x58] sm:$0xff]  ;;  %v1547_v41 = vld [vmem:[#allocation17 + $0x20] sm:$0xff]  ;;  %v1548_v25 = vld [vmem:[#allocation17 + $0x28] sm:$0xff] }
 0x366   : > { %1757 = vmatpush.msrb.mxu0 %v1587_v55  ;;  %1777 = vmatpush.msrb.mxu1 %v1588_v56  ;;  %v1549_v42 = vld [vmem:[#allocation17 + $0x30] sm:$0xff]  ;;  %v1550_v43 = vld [vmem:[#allocation17 + $0x38] sm:$0xff]  ;;  %v1543_v47 = vld [vmem:[#allocation17] sm:$0xff] }
 0x367   : > { %1797 = vmatpush.msrb.mxu2 %v1589_v57  ;;  %1817 = vmatpush.msrb.mxu3 %v1590_v58  ;;  %v1544_v48 = vld [vmem:[#allocation17 + $0x8] sm:$0xff]  ;;  %v1545_v49 = vld [vmem:[#allocation17 + $0x10] sm:$0xff]  ;;  %v1546_v1 = vld [vmem:[#allocation17 + $0x18] sm:$0xff] }
 0x368   : > { %1758 = vmatpush.msrb.mxu0 %v1583_v59  ;;  %1778 = vmatpush.msrb.mxu1 %v1584_v60  ;;  %v3370_v24 = vld [vmem:[%s1541_s24] sm:$0xff]  ;;  %v1894_v51 = vld [vmem:[#allocation20 + $0x1e8] sm:$0xff]  ;;  %v1895_v52 = vld [vmem:[#allocation20 + $0x1f0] sm:$0xff]  ;;  %s2129_s24 = sshll.u32 (%p1533_p3), %s3018_s13, 4  ;;  %s2130_s24 = int_to_ptr.vmem [resolvable:$true] %s2129_s24 }
 0x369   : > { %1798 = vmatpush.msrb.mxu2 %v1585_v61  ;;  %1818 = vmatpush.msrb.mxu3 %v1586_v62  ;;  %v1893_v50 = vld [vmem:[#allocation20 + $0x1e0] sm:$0xff]  ;;  %v1896_v53 = vld [vmem:[#allocation20 + $0x1f8] sm:$0xff]  ;;  %v1890_v55 = vld [vmem:[#allocation20 + $0x1c8] sm:$0xff] }
 0x36a   : > { %1759 = vmatpush.msrb.mxu0 %v1579_v63  ;;  %1779 = vmatpush.msrb.mxu1 %v1580_v6  ;;  %v1889_v54 = vld [vmem:[#allocation20 + $0x1c0] sm:$0xff]  ;;  %v1891_v56 = vld [vmem:[#allocation20 + $0x1d0] sm:$0xff]  ;;  %v1892_v57 = vld [vmem:[#allocation20 + $0x1d8] sm:$0xff] }
 0x36b   : > { %1799 = vmatpush.msrb.mxu2 %v1581_v7  ;;  %1819 = vmatpush.msrb.mxu3 %v1582_v8  ;;  %v1885_v58 = vld [vmem:[#allocation20 + $0x1a0] sm:$0xff]  ;;  %v1886_v59 = vld [vmem:[#allocation20 + $0x1a8] sm:$0xff]  ;;  %v1887_v60 = vld [vmem:[#allocation20 + $0x1b0] sm:$0xff] }
 0x36c   : > { %1760 = vmatpush.msrb.mxu0 %v1575_v9  ;;  %1780 = vmatpush.msrb.mxu1 %v1576_v10  ;;  %v1888_v61 = vld [vmem:[#allocation20 + $0x1b8] sm:$0xff]  ;;  %v1881_v62 = vld [vmem:[#allocation20 + $0x180] sm:$0xff]  ;;  %v1882_v63 = vld [vmem:[#allocation20 + $0x188] sm:$0xff] }
 0x36d   : > { %1800 = vmatpush.msrb.mxu2 %v1577_v11  ;;  %1820 = vmatpush.msrb.mxu3 %v1578_v12  ;;  %v1883_v6 = vld [vmem:[#allocation20 + $0x190] sm:$0xff]  ;;  %v1884_v7 = vld [vmem:[#allocation20 + $0x198] sm:$0xff]  ;;  %v1877_v8 = vld [vmem:[#allocation20 + $0x160] sm:$0xff] }
 0x36e   : > { %1761 = vmatpush.msrb.mxu0 %v1571_v13  ;;  %1781 = vmatpush.msrb.mxu1 %v1572_v14  ;;  %v1878_v9 = vld [vmem:[#allocation20 + $0x168] sm:$0xff]  ;;  %v1879_v10 = vld [vmem:[#allocation20 + $0x170] sm:$0xff]  ;;  %v1880_v11 = vld [vmem:[#allocation20 + $0x178] sm:$0xff] }
 0x36f   : > { %1801 = vmatpush.msrb.mxu2 %v1573_v15  ;;  %1821 = vmatpush.msrb.mxu3 %v1574_v17  ;;  %v1873_v12 = vld [vmem:[#allocation20 + $0x140] sm:$0xff]  ;;  %v1874_v13 = vld [vmem:[#allocation20 + $0x148] sm:$0xff]  ;;  %v1875_v14 = vld [vmem:[#allocation20 + $0x150] sm:$0xff] }
 0x370   : > { %1762 = vmatpush.msrb.mxu0 %v1567_v18  ;;  %1782 = vmatpush.msrb.mxu1 %v1568_v19  ;;  %v1876_v15 = vld [vmem:[#allocation20 + $0x158] sm:$0xff]  ;;  %v1869_v17 = vld [vmem:[#allocation20 + $0x120] sm:$0xff]  ;;  %v1870_v18 = vld [vmem:[#allocation20 + $0x128] sm:$0xff] }
 0x371   : > { %1802 = vmatpush.msrb.mxu2 %v1569_v20  ;;  %1822 = vmatpush.msrb.mxu3 %v1570_v5  ;;  %v1871_v19 = vld [vmem:[#allocation20 + $0x130] sm:$0xff]  ;;  %v1872_v20 = vld [vmem:[#allocation20 + $0x138] sm:$0xff]  ;;  %v1865_v5 = vld [vmem:[#allocation20 + $0x100] sm:$0xff] }
 0x372   : > { %1763 = vmatpush.msrb.mxu0 %v1563_v22  ;;  %1783 = vmatpush.msrb.mxu1 %v1564_v26  ;;  %v1866_v22 = vld [vmem:[#allocation20 + $0x108] sm:$0xff]  ;;  %v1867_v26 = vld [vmem:[#allocation20 + $0x110] sm:$0xff] }
 0x373   : > { %1803 = vmatpush.msrb.mxu2 %v1565_v27  ;;  %1823 = vmatpush.msrb.mxu3 %v1566_v28  ;;  %v1868_v27 = vld [vmem:[#allocation20 + $0x118] sm:$0xff]  ;;  %v1861_v28 = vld [vmem:[#allocation20 + $0xe0] sm:$0xff] }
 0x374   : > { %1764 = vmatpush.msrb.mxu0 %v1559_v0  ;;  %1784 = vmatpush.msrb.mxu1 %v1560_v4  ;;  %v1862_v0 = vld [vmem:[#allocation20 + $0xe8] sm:$0xff]  ;;  %v1863_v4 = vld [vmem:[#allocation20 + $0xf0] sm:$0xff] }
 0x375   : > { %1804 = vmatpush.msrb.mxu2 %v1561_v46  ;;  %1824 = vmatpush.msrb.mxu3 %v1562_v32  ;;  %v1864_v46 = vld [vmem:[#allocation20 + $0xf8] sm:$0xff]  ;;  %v1857_v32 = vld [vmem:[#allocation20 + $0xc0] sm:$0xff] }
 0x376   : > { %1689 = vmatmul.f32.vlgmr.msra.gmra.mxu0 %v1608_v33  ;;  %1709 = vmatmul.f32.vlgmr.msra.gmra.mxu1 %v1608_v33 }
 0x377   : > { %1765 = vmatpush.msrb.mxu0 %v1555_v2  ;;  %1785 = vmatpush.msrb.mxu1 %v1556_v45  ;;  %v1859_v2 = vld [vmem:[#allocation20 + $0xd0] sm:$0xff]  ;;  %v1860_v45 = vld [vmem:[#allocation20 + $0xd8] sm:$0xff] }
 0x378   : > { %1805 = vmatpush.msrb.mxu2 %v1557_v34  ;;  %1825 = vmatpush.msrb.mxu3 %v1558_v35  ;;  %v1853_v34 = vld [vmem:[#allocation20 + $0xa0] sm:$0xff]  ;;  %v1854_v35 = vld [vmem:[#allocation20 + $0xa8] sm:$0xff] }
 0x379   : > { %1766 = vmatpush.msrb.mxu0 %v1551_v36  ;;  %1786 = vmatpush.msrb.mxu1 %v1552_v38  ;;  %v1855_v36 = vld [vmem:[#allocation20 + $0xb0] sm:$0xff]  ;;  %v1856_v38 = vld [vmem:[#allocation20 + $0xb8] sm:$0xff] }
 0x37a   : > { %1806 = vmatpush.msrb.mxu2 %v1553_v39  ;;  %1826 = vmatpush.msrb.mxu3 %v1554_v40  ;;  %v1849_v39 = vld [vmem:[#allocation20 + $0x80] sm:$0xff]  ;;  %v1850_v40 = vld [vmem:[#allocation20 + $0x88] sm:$0xff] }
 0x37b   : > { %1749 = vmatmul.f32.vlgmr.msra.gmra.mxu3 %v1608_v33  ;;  %1767 = vmatpush.msrb.mxu0 %v1547_v41  ;;  %v1851_v41 = vld [vmem:[#allocation20 + $0x90] sm:$0xff] }
 0x37c   : > { %1787 = vmatpush.msrb.mxu1 %v1548_v25  ;;  %1807 = vmatpush.msrb.mxu2 %v1549_v42  ;;  %v1852_v25 = vld [vmem:[#allocation20 + $0x98] sm:$0xff]  ;;  %v1845_v42 = vld [vmem:[#allocation20 + $0x60] sm:$0xff] }
 0x37d   : > { %1827 = vmatpush.msrb.mxu3 %v1550_v43  ;;  %1768 = vmatpush.msrb.mxu0 %v1543_v47  ;;  %v1846_v43 = vld [vmem:[#allocation20 + $0x68] sm:$0xff]  ;;  %v1847_v47 = vld [vmem:[#allocation20 + $0x70] sm:$0xff] }
 0x37e   : > { %1788 = vmatpush.msrb.mxu1 %v1544_v48  ;;  %1808 = vmatpush.msrb.mxu2 %v1545_v49  ;;  %v1848_v48 = vld [vmem:[#allocation20 + $0x78] sm:$0xff]  ;;  %v1841_v49 = vld [vmem:[#allocation20 + $0x40] sm:$0xff] }
 0x37f   : > { %1828 = vmatpush.msrb.mxu3 %v1546_v1  ;;  %1729 = vmatmul.f32.vlgmr.msra.gmra.mxu2 %v1608_v33  ;;  %v1858_v33 = vld [vmem:[#allocation20 + $0xc8] sm:$0xff] }
 0x380   : > { %1769 = vmatmul.f32.vlgmr.msrb.gmra.mxu0 %v3370_v24  ;;  %1789 = vmatmul.f32.vlgmr.msrb.gmra.mxu1 %v3370_v24  ;;  %v1842_v1 = vld [vmem:[#allocation20 + $0x48] sm:$0xff] }
 0x381   : > { %1897 = vmatpush.msra.mxu0 %v1893_v50  ;;  %1917 = vmatpush.msra.mxu1 %v1894_v51  ;;  %v1844_v50 = vld [vmem:[#allocation20 + $0x58] sm:$0xff]  ;;  %v1837_v51 = vld [vmem:[#allocation20 + $0x20] sm:$0xff] }
 0x382   : > { %1937 = vmatpush.msra.mxu2 %v1895_v52  ;;  %1957 = vmatpush.msra.mxu3 %v1896_v53  ;;  %v1838_v52 = vld [vmem:[#allocation20 + $0x28] sm:$0xff]  ;;  %v1839_v53 = vld [vmem:[#allocation20 + $0x30] sm:$0xff] }
 0x383   : > { %1898 = vmatpush.msra.mxu0 %v1889_v54  ;;  %1918 = vmatpush.msra.mxu1 %v1890_v55  ;;  %v1840_v54 = vld [vmem:[#allocation20 + $0x38] sm:$0xff]  ;;  %v1833_v55 = vld [vmem:[#allocation20] sm:$0xff] }
 0x384   : > { %1938 = vmatpush.msra.mxu2 %v1891_v56  ;;  %1958 = vmatpush.msra.mxu3 %v1892_v57  ;;  %v1834_v56 = vld [vmem:[#allocation20 + $0x8] sm:$0xff]  ;;  %v1835_v57 = vld [vmem:[#allocation20 + $0x10] sm:$0xff] }
 0x385   : > { %1899 = vmatpush.msra.mxu0 %v1885_v58  ;;  %1919 = vmatpush.msra.mxu1 %v1886_v59  ;;  %v1836_v58 = vld [vmem:[#allocation20 + $0x18] sm:$0xff] }
 0x386   : > { %1939 = vmatpush.msra.mxu2 %v1887_v60  ;;  %1959 = vmatpush.msra.mxu3 %v1888_v61 }
 0x387   : > { %1829 = vmatmul.f32.vlgmr.msrb.gmra.mxu3 %v3370_v24  ;;  %1900 = vmatpush.msra.mxu0 %v1881_v62 }
 0x388   : > { %1920 = vmatpush.msra.mxu1 %v1882_v63  ;;  %1940 = vmatpush.msra.mxu2 %v1883_v6 }
 0x389   : > { %1960 = vmatpush.msra.mxu3 %v1884_v7  ;;  %1901 = vmatpush.msra.mxu0 %v1877_v8 }
 0x38a   : > { %1921 = vmatpush.msra.mxu1 %v1878_v9  ;;  %1941 = vmatpush.msra.mxu2 %v1879_v10  ;;  %v1982_v10 = vperm.slane %v3209_v3, 0 }
 0x38b   : > { %1961 = vmatpush.msra.mxu3 %v1880_v11  ;;  %1902 = vmatpush.msra.mxu0 %v1873_v12  ;;  %v1983_v11 = vperm.slane %v3209_v3, 1 }
 0x38c   : > { %1922 = vmatpush.msra.mxu1 %v1874_v13  ;;  %1942 = vmatpush.msra.mxu2 %v1875_v14 }
 0x38d   : > { %1962 = vmatpush.msra.mxu3 %v1876_v15  ;;  %1903 = vmatpush.msra.mxu0 %v1869_v17 }
 0x38e   : > { %1923 = vmatpush.msra.mxu1 %v1870_v18  ;;  %1943 = vmatpush.msra.mxu2 %v1871_v19 }
 0x38f   : > { %1963 = vmatpush.msra.mxu3 %v1872_v20  ;;  %1904 = vmatpush.msra.mxu0 %v1865_v5  ;;  %v1985_v5 = vperm.slane %v3209_v3, 3 }
 0x390   : > { %1924 = vmatpush.msra.mxu1 %v1866_v22  ;;  %1944 = vmatpush.msra.mxu2 %v1867_v26 }
 0x391   : > { %1964 = vmatpush.msra.mxu3 %v1868_v27  ;;  %1809 = vmatmul.f32.vlgmr.msrb.gmra.mxu2 %v3370_v24  ;;  %v1843_v24 = vld [vmem:[#allocation20 + $0x50] sm:$0xff] }
 0x392   : > { %1905 = vmatpush.msra.mxu0 %v1861_v28  ;;  %1925 = vmatpush.msra.mxu1 %v1862_v0 }
 0x393   : > { %1945 = vmatpush.msra.mxu2 %v1863_v4  ;;  %1965 = vmatpush.msra.mxu3 %v1864_v46 }
 0x394   : > { %1906 = vmatpush.msra.mxu0 %v1857_v32  ;;  %1926 = vmatpush.msra.mxu1 %v1858_v33 }
 0x395   : > { %1946 = vmatpush.msra.mxu2 %v1859_v2  ;;  %1966 = vmatpush.msra.mxu3 %v1860_v45 }
 0x396   : > { %1907 = vmatpush.msra.mxu0 %v1853_v34  ;;  %1927 = vmatpush.msra.mxu1 %v1854_v35  ;;  %v1984_v35 = vperm.slane %v3209_v3, 2 }
 0x397   : > { %1947 = vmatpush.msra.mxu2 %v1855_v36  ;;  %1967 = vmatpush.msra.mxu3 %v1856_v38 }
 0x398   : > { %1908 = vmatpush.msra.mxu0 %v1849_v39  ;;  %1928 = vmatpush.msra.mxu1 %v1850_v40 }
 0x399   : > { %1948 = vmatpush.msra.mxu2 %v1851_v41  ;;  %1968 = vmatpush.msra.mxu3 %v1852_v25 }
 0x39a   : > { %1909 = vmatpush.msra.mxu0 %v1845_v42  ;;  %1929 = vmatpush.msra.mxu1 %v1846_v43 }
 0x39b   : > { %1949 = vmatpush.msra.mxu2 %v1847_v47  ;;  %1969 = vmatpush.msra.mxu3 %v1848_v48 }
 0x39c   : > { %1910 = vmatpush.msra.mxu0 %v1841_v49  ;;  %1930 = vmatpush.msra.mxu1 %v1842_v1 }
 0x39d   : > { %1950 = vmatpush.msra.mxu2 %v1843_v24  ;;  %1970 = vmatpush.msra.mxu3 %v1844_v50 }
 0x39e   : > { %1911 = vmatpush.msra.mxu0 %v1837_v51  ;;  %1931 = vmatpush.msra.mxu1 %v1838_v52 }
 0x39f   : > { %1951 = vmatpush.msra.mxu2 %v1839_v53  ;;  %1971 = vmatpush.msra.mxu3 %v1840_v54 }
 0x3a0   : > { %1912 = vmatpush.msra.mxu0 %v1833_v55  ;;  %1932 = vmatpush.msra.mxu1 %v1834_v56 }
 0x3a1   : > { %1952 = vmatpush.msra.mxu2 %v1835_v57  ;;  %1972 = vmatpush.msra.mxu3 %v1836_v58 }
 0x3a2   : > { %1913 = vmatmul.f32.vlgmr.msra.gmra.mxu0 %v2992_v31  ;;  %1933 = vmatmul.f32.vlgmr.msra.gmra.mxu1 %v2992_v31 }
 0x3a3   : > { %1953 = vmatmul.f32.vlgmr.msra.gmra.mxu2 %v2992_v31  ;;  %1973 = vmatmul.f32.vlgmr.msra.gmra.mxu3 %v2992_v31 }
 0x3f3   : > { %v1690_v59 = vpop.f32.mrf.mxu0  ;;  %v1710_v60 = vpop.f32.mrf.mxu1 }
 0x3fd   : > { %v1770_v62 = vpop.f32.mrf.mxu0  ;;  %v1790_v63 = vpop.f32.mrf.mxu1 }
 0x3fe   : > { %v1750_v61 = vpop.f32.mrf.mxu3  ;;  %v1771_v7 = vadd.f32 %v1770_v62, %v1690_v59  ;;  %v1791_v8 = vadd.f32 %v1790_v63, %v1710_v60 }
 0x402   : > { %v1730_v6 = vpop.f32.mrf.mxu2 }
 0x40a   : > { %v1830_v9 = vpop.f32.mrf.mxu3 }
 0x40b   : > { %v1831_v20 = vadd.f32 %v1830_v9, %v1750_v61 }
 0x414   : > { %v1810_v22 = vpop.f32.mrf.mxu2 }
 0x415   : > { %v1811_v45 = vadd.f32 %v1810_v22, %v1730_v6 }
 0x41f   : > { %v1914_v12 = vpop.f32.mrf.mxu0  ;;  %v1934_v13 = vpop.f32.mrf.mxu1 }
 0x420   : > { %v1977_v14 = vadd.f32 %v1914_v12, %v1771_v7  ;;  %v1978_v15 = vadd.f32 %v1934_v13, %v1791_v8 }
 0x422   : > { %v1990_v17 = vadd.f32 %v1982_v10, %v1977_v14  ;;  %v1991_v18 = vadd.f32 %v1983_v11, %v1978_v15 }
 0x424   : > { %v2263_v31 = vmul.f32 -1.442695, %v1990_v17  ;;  %v2264_v19 = vmul.f32 -1.442695, %v1991_v18 }
 0x426   : > { %2432 = vpow2.f32 %v2263_v31  ;;  %v1974_v26 = vpop.f32.mrf.mxu3  ;;  %v1954_v2 = vpop.f32.mrf.mxu2 }
 0x427   : > { %2434 = vpow2.f32 %v2264_v19  ;;  %v1980_v27 = vadd.f32 %v1974_v26, %v1831_v20  ;;  %v1979_v34 = vadd.f32 %v1954_v2, %v1811_v45 }
 0x429   : > { %v1993_v28 = vadd.f32 %v1985_v5, %v1980_v27  ;;  %v1992_v40 = vadd.f32 %v1984_v35, %v1979_v34 }
 0x42b   : > { %v2265_v0 = vmul.f32 -1.442695, %v1993_v28 }
 0x42c   : > { %v2433_v4 = vpop.eup %2432 }
 0x42d   : > { %v2435_v46 = vpop.eup %2434  ;;  %v1997_v32 = vadd.f32 1.0, %v2433_v4  ;;  %2436 = vpow2.f32 %v2265_v0 }
 0x42e   : > { %v2016_v33 = vadd.f32 1.0, %v2435_v46 }
 0x42f   : > { %2438 = vrcp.f32 %v1997_v32  ;;  %v2009_v48 = vand.u32 2147483648, %v1997_v32  ;;  %v2007_v24 = vand.u32 2147483647, %v1997_v32  ;;  %vm2003_vm6 = vweird.f32 %v1997_v32 }
 0x430   : > { %2440 = vrcp.f32 %v2016_v33  ;;  %v2028_v49 = vand.u32 2147483648, %v2016_v33  ;;  %v2026_v51 = vand.u32 2147483647, %v2016_v33  ;;  %vm2022_vm7 = vweird.f32 %v2016_v33 }
 0x431   : > { %v2010_v54 = vor.u32 1.1754944e-38, %v2009_v48  ;;  %vm2008_vm10 = vcmp.eq.f32.partialorder %v2007_v24, 8.507059e+37 }
 0x432   : > { %v2029_v57 = vor.u32 1.1754944e-38, %v2028_v49  ;;  %vm2027_vm11 = vcmp.eq.f32.partialorder %v2026_v51, 8.507059e+37 }
 0x433   : > { %v2437_v36 = vpop.eup %2436 }
 0x434   : > { %v2036_v38 = vadd.f32 1.0, %v2437_v36 }
 0x435   : > { %v2439_v39 = vpop.eup %2438 }
 0x436   : > { %v2441_v41 = vpop.eup %2440  ;;  %v1999_v25 = vmul.f32 %v2439_v39, %v1997_v32  ;;  %2442 = vrcp.f32 %v2036_v38  ;;  %vm2004_vm4 = vweird.f32 %v2439_v39  ;;  %v2048_v11 = vand.u32 2147483648, %v2036_v38 }
 0x437   : > { %v2018_v42 = vmul.f32 %v2441_v41, %v2016_v33  ;;  %2444 = vtanh.f32 %v1992_v40  ;;  %vm2023_vm5 = vweird.f32 %v2441_v41  ;;  %vm2005_vm8 = vmor %vm2003_vm6, %vm2004_vm4  ;;  %vm2042_vm13 = vweird.f32 %v2036_v38 }
 0x438   : > { %v2000_v43 = vsub.f32 1.0, %v1999_v25  ;;  %vm2024_vm9 = vmor %vm2022_vm7, %vm2023_vm5  ;;  %v2046_v12 = vand.u32 2147483647, %v2036_v38  ;;  %v2049_v14 = vor.u32 1.1754944e-38, %v2048_v11 }
 0x439   : > { %v2019_v47 = vsub.f32 1.0, %v2018_v42 }
 0x43a   : > { %v2001_v1 = vmul.f32 %v2439_v39, %v2000_v43  ;;  %vm2047_vm15 = vcmp.eq.f32.partialorder %v2046_v12, 8.507059e+37 }
 0x43b   : > { %v2020_v50 = vmul.f32 %v2441_v41, %v2019_v47 }
 0x43c   : > { %v2443_v52 = vpop.eup %2442  ;;  %v2002_v53 = vadd.f32 %v2439_v39, %v2001_v1 }
 0x43d   : > { %v2021_v55 = vadd.f32 %v2441_v41, %v2020_v50  ;;  %v2038_v56 = vmul.f32 %v2443_v52, %v2036_v38  ;;  %v2445_v59 = vpop.eup %2444  ;;  %vm2043_vm12 = vweird.f32 %v2443_v52 }
 0x43e   : > { %v2006_v58 = vsel %vm2005_vm8, %v2439_v39, %v2002_v53  ;;  %vm2044_vm14 = vmor %vm2042_vm13, %vm2043_vm12 }
 0x43f   : > { %v2011_v60 = vsel %vm2008_vm10, %v2010_v54, %v2006_v58  ;;  %v2025_v61 = vsel %vm2024_vm9, %v2441_v41, %v2021_v55  ;;  %v2039_v62 = vsub.f32 1.0, %v2038_v56 }
 0x440   : > { %v2030_v63 = vsel %vm2027_vm11, %v2029_v57, %v2025_v61  ;;  %v2053_v6 = vmul.f32 %v2445_v59, %v2011_v60 }
 0x441   : > { %v2052_v7 = vmul.f32 %v2988_v30, %v2030_v63  ;;  %v2040_v8 = vmul.f32 %v2443_v52, %v2039_v62 }
 0x443   : > { %v2054_v9 = vadd.f32 %v2053_v6, %v2052_v7   ;;  %v2041_v10 = vadd.f32 %v2443_v52, %v2040_v8 }
 0x445   : > { %2446 = vtanh.f32 %v2054_v9  ;;  %v2045_v13 = vsel %vm2044_vm14, %v2443_v52, %v2041_v10  ;;  %v3478_v30 = vmov %v2054_v9  ;;  %2072 = vst [vmem:[#allocation26 + $0x18] sm:$0xff] (%p1533_p3), %v2054_v9 }
 0x446   : > { %v2050_v17 = vsel %vm2047_vm15, %v2049_v14, %v2045_v13  ;;  %2124 = dma.vmem_to_hbm [thread:$0]  (%p1533_p3), %s2117_s14, 512, %s2119_s16, [#allocation27], %s3006_s26, %s3006_s26, %s3007_s27  }
 0x447   :  { %2137 = dma.vmem_to_hbm [thread:$0]  (%p1533_p3), %s2130_s24, 1024, %s2132_s12, [#allocation27], %s3006_s26, %s3006_s26, %s3007_s27  }
 0x44a   :  { %1535 = sbr.rel (!%p1533_p3) target bundleno = 829 (0x33d), region = 245 }
 0x44b   : > { %v2447_v15 = vpop.eup %2446 }
 0x44c   : > { %v2056_v18 = vmul.f32 %v2447_v15, %v2050_v17  }
 0x44e   : > { %2058 = vst [vmem:[%s2057_s4] sm:$0xff] %v2056_v18  ;;  %v3479_v31 = vmov %v2056_v18  ;;  %s3019_s4 = smov (%p1533_p3), [#allocation29]  }
 0x44f   :  { %2098 = dma.vmem_to_hbm [thread:$0]  %s2091_s6, 1024, %s2093_s21, [#allocation24], %s3006_s26, %s3006_s26, %s3007_s27   ;;  %2065 = vst [vmem:[#allocation25 + $0x18] sm:$0xff] %v2056_v18 }
 0x450   :  { %2111 = dma.vmem_to_hbm [thread:$0]  %s2104_s23, 512, %s2106_s11, [#allocation24], %s3006_s26, %s3006_s26, %s3007_s27  }
 0x451   :  { %s2142_s17 = sshll.u32 %s3019_s4, 4  ;;  %s2144_s21 = sshll.u32 %s3455_s20, 4  ;;  %s2143_s17 = int_to_ptr.vmem [resolvable:$true] %s2142_s17  ;;  %s2145_s21 = int_to_ptr.hbm [resolvable:$true] %s2144_s21 }
 0x452   :  { %2150 = dma.vmem_to_hbm [thread:$0]  %s2143_s17, 1024, %s2145_s21, [#allocation30], %s3006_s26, %s3006_s26, %s3007_s27  }
 0x453   :  { %2942 = dma.done.wait [#allocation4], 1024  }
 0x454   :  { %2943 = vsyncadd [#allocation4], 4294966272 }
 0x455   :  { %2944 = dma.done.wait [#allocation24], 1536  }
 0x456   :  { %2945 = vsyncadd [#allocation24], 4294965760 }
 0x457   :  { %2946 = dma.done.wait [#allocation27], 1536  }
 0x458   :  { %2947 = vsyncadd [#allocation27], 4294965760 }
 0x459   :  { %2948 = dma.done.wait [#allocation30], 1024  }
 0x45a   :  { %2949 = vsyncadd [#allocation30], 4294966272 }
 0x45b   :  { %2175 = vsyncpa [#allocation3], 1 }
 0x45c   :  { %2176 = vsyncpa [#allocation6], 1 }
 0x45d   :  { %2177 = vsyncpa [#allocation9], 1 }
 0x45e   :  { %2178 = vsyncpa [#allocation12], 1 }
 0x45f   :  { %2179 = vsyncpa [#allocation15], 1 }
 0x460   :  { %2180 = vsyncpa [#allocation18], 1 }
 0x461   :  { %2181 = vsyncpa [#allocation21], 1 }
 0x462   :  { %2182 = vsyncpa [#allocation4], 1 }
 0x463   :  { %2183 = vsyncpa [#allocation24], 1 }
 0x464   :  { %2184 = vsyncpa [#allocation27], 1 }
 0x465   :  { %2185 = vsyncpa [#allocation30], 1 }

</bundles_post_ra>
